<compile_context>
chip_gen: v5e
topology: v5e:2x2
jax: 0.10.0
libtpu: 0.0.40
codegen_flags: <defaults>
</compile_context>

<pallas_src>
import functools

import jax
import jax.numpy as jnp
from jax import lax
from jax.experimental import pallas as pl
from jax.experimental.pallas import tpu as pltpu


# ----------------------------------------------------------------------------
# helpers
# ----------------------------------------------------------------------------
def _round_up(v, m):
    return ((v + m - 1) // m) * m


def _pick_unroll(n, cap=8):
    """Largest divisor of n not exceeding cap (static python int)."""
    for u in range(min(n, cap), 0, -1):
        if n % u == 0:
            return u
    return 1


def _vmem_limit_bytes(t_chunk, b_tile, in_max, h_pad, nout_pad, n_layers):
    f32, bf16 = 4, 2
    est = 0
    est += 2 * t_chunk * b_tile * in_max * f32                  # x block (x2 buffers)
    est += 2 * n_layers * b_tile * h_pad * f32                  # h0
    est += 2 * n_layers * in_max * 3 * h_pad * bf16             # W_ih (bf16)
    est += 2 * n_layers * h_pad * 3 * h_pad * bf16              # W_hh (bf16)
    est += 2 * n_layers * (3 * h_pad + h_pad) * f32             # biases
    est += 2 * (h_pad * nout_pad * bf16 + nout_pad * f32)       # fc
    est += 2 * (b_tile * nout_pad * f32 + n_layers * b_tile * h_pad * f32)  # outputs
    est += n_layers * b_tile * h_pad * f32                      # h_scr
    est += t_chunk * b_tile * h_pad * f32                       # seq_scr
    est += t_chunk * b_tile * 3 * h_pad * f32                   # gi_scr
    # generous headroom for compiler temporaries (gi value, reshapes, casts);
    # clamp to [32 MiB, 64 MiB] so we never regress below defaults and never
    # exceed v7x's physical VMEM.
    return int(min(64 << 20, max(32 << 20, 2 * est + (8 << 20))))


# ----------------------------------------------------------------------------
# fused Pallas kernel (all GRU layers + sigmoid-FC head)
# ----------------------------------------------------------------------------
def make_recovery_kernel(n_layers, h_pad, in_max, t_chunk, t_total, unroll):
    """Kernel factory closing over static dims."""
    ragged = (t_total % t_chunk) != 0

    def kernel(x_ref, h0_ref, wih_ref, whh_ref, bgi_ref, bhn_ref,
               fcw_ref, fcb_ref, out_ref, hn_ref, h_scr, seq_scr, gi_scr):
        c = pl.program_id(1)                      # time-chunk index (inner axis)
        b_tile = x_ref.shape[1]
        rows = t_chunk * b_tile

        @pl.when(c == 0)
        def _init():
            h_scr[...] = h0_ref[...]

        # number of real (unpadded) timesteps in this chunk
        valid = t_total - c * t_chunk

        for l in range(n_layers):
            # ---- batched input projection for the whole chunk -------------
            # One wide MXU matmul (M = t_chunk * b_tile) + a single bias add,
            # entirely off the serial recurrence chain.
            if l == 0:
                inp = x_ref[...].reshape(rows, in_max)
                w_in = wih_ref[0]                                  # (in_max, 3Hp) bf16
            else:
                inp = seq_scr[...].reshape(rows, h_pad)
                w_in = (wih_ref[l] if in_max == h_pad
                        else wih_ref[l, :h_pad, :])                # (h_pad, 3Hp) bf16
            gi = jnp.dot(inp.astype(jnp.bfloat16), w_in,
                         preferred_element_type=jnp.float32)       # (rows, 3Hp) f32
            gi_scr[...] = (gi + bgi_ref[l]).reshape(t_chunk, b_tile, 3 * h_pad)

            b_hn = bhn_ref[l]                                      # (1, h_pad) f32

            # ---- serial recurrence: one matmul + gate math per step --------
            def tstep(t, carry):
                h_prev = h_scr[l]                                  # (b_tile, h_pad) f32
                gh = jnp.dot(h_prev.astype(jnp.bfloat16), whh_ref[l],
                             preferred_element_type=jnp.float32)   # (b_tile, 3Hp)
                gi_t = gi_scr[t]                                   # (b_tile, 3Hp)
                rz = jax.nn.sigmoid(gi_t[:, :2 * h_pad] + gh[:, :2 * h_pad])
                r = rz[:, :h_pad]
                z = rz[:, h_pad:]
                n = jnp.tanh(gi_t[:, 2 * h_pad:] + r * (gh[:, 2 * h_pad:] + b_hn))
                h_new = n + z * (h_prev - n)       # == (1-z)*n + z*h_prev
                if ragged:
                    h_new = jnp.where(t < valid, h_new, h_prev)
                h_scr[l] = h_new
                if l < n_layers - 1:
                    seq_scr[t] = h_new             # next layer's chunk input
                return carry

            lax.fori_loop(0, t_chunk, tstep, 0, unroll=unroll)

        @pl.when(c == pl.num_programs(1) - 1)
        def _finalize():
            hn_ref[...] = h_scr[...]
            sig = jax.nn.sigmoid(h_scr[n_layers - 1])
            out_ref[...] = (jnp.dot(sig.astype(jnp.bfloat16), fcw_ref[...],
                                    preferred_element_type=jnp.float32)
                            + fcb_ref[...])

    return kernel


# ----------------------------------------------------------------------------
# wrapper: gate fusion + padding + pallas_call
# ----------------------------------------------------------------------------
def _fuse_and_pad_layer(layer, in_max, h_pad):
    """(3,in,H) gate-stacked params -> fused, zero-padded, bf16 weights."""
    w_ih, w_hh = layer["w_ih_t"], layer["w_hh_t"]
    b_ih, b_hh = layer["b_ih"], layer["b_hh"]
    _, in_dim, H = w_ih.shape
    wih_p = jnp.pad(w_ih, ((0, 0), (0, in_max - in_dim), (0, h_pad - H)))
    whh_p = jnp.pad(w_hh, ((0, 0), (0, h_pad - H), (0, h_pad - H)))
    # (3, in, Hp) -> (in, 3*Hp) laid out as [r | z | n] lane-aligned gate blocks
    wih_f = jnp.transpose(wih_p, (1, 0, 2)).reshape(in_max, 3 * h_pad)
    whh_f = jnp.transpose(whh_p, (1, 0, 2)).reshape(h_pad, 3 * h_pad)
    bih_p = jnp.pad(b_ih, ((0, 0), (0, 0), (0, h_pad - H)))       # (3,1,Hp)
    bhh_p = jnp.pad(b_hh, ((0, 0), (0, 0), (0, h_pad - H)))
    # bias folded into the chunk-batched input projection: [bi_r+bh_r | bi_z+bh_z | bi_n]
    bgi = jnp.concatenate([bih_p[0] + bhh_p[0],
                           bih_p[1] + bhh_p[1],
                           bih_p[2]], axis=-1)                     # (1, 3*Hp)
    bhn = bhh_p[2]                                                 # (1, Hp)
    return (wih_f.astype(jnp.bfloat16), whh_f.astype(jnp.bfloat16), bgi, bhn)


@functools.partial(jax.jit, static_argnames=("t_chunk_cap",))
def recovery_forward(x, h0, params, t_chunk_cap=64):
    """Pallas implementation of Recovery.forward (model_type='GRU').

    x  : (B, T, input_dim)   batch-first, like nn.GRU(batch_first=True)
    h0 : (n_layers, B, hidden_dim)
    returns (out, h_n): out (B, n_out), h_n (n_layers, B, hidden_dim)
    """
    B, T, I = x.shape
    n_layers, _, H = h0.shape
    n_out = params["fc_w"].shape[-1]

    b_pad = _round_up(B, 8)
    h_pad = _round_up(H, 128)
    in_max = max(_round_up(I, 128), h_pad)
    nout_pad = _round_up(n_out, 128)

    # Batch tiling: split into 2 tiles when possible so v7x's second TensorCore
    # gets a "parallel" grid slice; no-op on single-TC chips.
    b_tile = b_pad // 2 if (b_pad >= 16 and b_pad % 16 == 0) else b_pad
    n_btiles = b_pad // b_tile

    # Large, ragged-safe time chunks.
    t_chunk = min(T, t_chunk_cap)
    n_chunks = -(-T // t_chunk)
    t_pad = n_chunks * t_chunk
    unroll = _pick_unroll(t_chunk, cap=8)

    # time-major + zero padding to lane-dense (8,128) tiles (x kept f32 so the
    # in-kernel chunk reshape is tile-aligned; cast to bf16 happens in-kernel).
    x_tm = jnp.transpose(x, (1, 0, 2))                             # (T, B, I)
    x_p = jnp.pad(x_tm, ((0, t_pad - T), (0, b_pad - B), (0, in_max - I)))
    h0_p = jnp.pad(h0, ((0, 0), (0, b_pad - B), (0, h_pad - H)))

    fused = [_fuse_and_pad_layer(layer, in_max, h_pad) for layer in params["gru"]]
    wih_s = jnp.stack([f[0] for f in fused])                       # (L, in_max, 3Hp) bf16
    whh_s = jnp.stack([f[1] for f in fused])                       # (L, h_pad, 3Hp) bf16
    bgi_s = jnp.stack([f[2] for f in fused])                       # (L, 1, 3Hp) f32
    bhn_s = jnp.stack([f[3] for f in fused])                       # (L, 1, Hp) f32

    fcw_p = jnp.pad(params["fc_w"],
                    ((0, h_pad - H), (0, nout_pad - n_out))).astype(jnp.bfloat16)
    fcb_p = jnp.pad(params["fc_b"], ((0, 0), (0, nout_pad - n_out)))

    kernel = make_recovery_kernel(n_layers, h_pad, in_max, t_chunk, T, unroll)
    vmem_limit = _vmem_limit_bytes(t_chunk, b_tile, in_max, h_pad, nout_pad, n_layers)

    grid_spec = pltpu.PrefetchScalarGridSpec(
        num_scalar_prefetch=0,
        grid=(n_btiles, n_chunks),                                 # (parallel, arbitrary)
        in_specs=[
            pl.BlockSpec((t_chunk, b_tile, in_max), lambda bt, c: (c, bt, 0)),     # x
            pl.BlockSpec((n_layers, b_tile, h_pad), lambda bt, c: (0, bt, 0)),     # h0
            pl.BlockSpec((n_layers, in_max, 3 * h_pad), lambda bt, c: (0, 0, 0)),  # W_ih
            pl.BlockSpec((n_layers, h_pad, 3 * h_pad), lambda bt, c: (0, 0, 0)),   # W_hh
            pl.BlockSpec((n_layers, 1, 3 * h_pad), lambda bt, c: (0, 0, 0)),       # b_gi
            pl.BlockSpec((n_layers, 1, h_pad), lambda bt, c: (0, 0, 0)),           # b_hn
            pl.BlockSpec((h_pad, nout_pad), lambda bt, c: (0, 0)),                 # fc_w
            pl.BlockSpec((1, nout_pad), lambda bt, c: (0, 0)),                     # fc_b
        ],
        out_specs=[
            pl.BlockSpec((b_tile, nout_pad), lambda bt, c: (bt, 0)),               # out
            pl.BlockSpec((n_layers, b_tile, h_pad), lambda bt, c: (0, bt, 0)),     # h_n
        ],
        scratch_shapes=[
            pltpu.VMEM((n_layers, b_tile, h_pad), jnp.float32),      # hidden state
            pltpu.VMEM((t_chunk, b_tile, h_pad), jnp.float32),       # layer chunk output
            pltpu.VMEM((t_chunk, b_tile, 3 * h_pad), jnp.float32),   # batched gi
        ],
    )

    out_p, hn_p = pl.pallas_call(
        kernel,
        out_shape=(jax.ShapeDtypeStruct((b_pad, nout_pad), jnp.float32),
                   jax.ShapeDtypeStruct((n_layers, b_pad, h_pad), jnp.float32)),
        grid_spec=grid_spec,
        compiler_params=pltpu.CompilerParams(
            dimension_semantics=("parallel", "arbitrary"),
            vmem_limit_bytes=vmem_limit),
    )(x_p, h0_p, wih_s, whh_s, bgi_s, bhn_s, fcw_p, fcb_p)

    return out_p[:B, :n_out], hn_p[:, :B, :H]


# ----------------------------------------------------------------------------
# Pure-JAX reference (correctness check)
# ----------------------------------------------------------------------------
def gru_layer_ref(x_tmajor, h0, w_ih_t, w_hh_t, b_ih, b_hh):
    def step(h, x_t):
        gi_r = x_t @ w_ih_t[0] + b_ih[0]
        gi_z = x_t @ w_ih_t[1] + b_ih[1]
        gi_n = x_t @ w_ih_t[2] + b_ih[2]
        gh_r = h @ w_hh_t[0] + b_hh[0]
        gh_z = h @ w_hh_t[1] + b_hh[1]
        gh_n = h @ w_hh_t[2] + b_hh[2]
        r = jax.nn.sigmoid(gi_r + gh_r)
        z = jax.nn.sigmoid(gi_z + gh_z)
        n = jnp.tanh(gi_n + r * gh_n)
        h_new = (1.0 - z) * n + z * h
        return h_new, h_new
    _, ys = lax.scan(step, h0, x_tmajor)
    return ys


def recovery_forward_ref(x, h0, params):
    seq = jnp.transpose(x, (1, 0, 2))
    h_finals = []
    for l, layer in enumerate(params["gru"]):
        seq = gru_layer_ref(seq, h0[l],
                            layer["w_ih_t"], layer["w_hh_t"],
                            layer["b_ih"], layer["b_hh"])
        h_finals.append(seq[-1])
    h_n = jnp.stack(h_finals, axis=0)
    out = jax.nn.sigmoid(seq[-1]) @ params["fc_w"] + params["fc_b"]
    return out, h_n


# ----------------------------------------------------------------------------
# Deterministic parameter init (PyTorch-style U(-1/sqrt(H), 1/sqrt(H)))
# ----------------------------------------------------------------------------
def init_params(key, input_dim, hidden_dim, n_out, n_layers):
    k_gru = 1.0 / jnp.sqrt(hidden_dim)
    k_fc = 1.0 / jnp.sqrt(hidden_dim)
    gru_layers = []
    for l in range(n_layers):
        in_dim = input_dim if l == 0 else hidden_dim
        key, k1, k2, k3, k4 = jax.random.split(key, 5)
        gru_layers.append({
            # gate order [r, z, n]; pre-transposed: (3, in_dim, H)
            "w_ih_t": jax.random.uniform(k1, (3, in_dim, hidden_dim),
                                         jnp.float32, -k_gru, k_gru),
            "w_hh_t": jax.random.uniform(k2, (3, hidden_dim, hidden_dim),
                                         jnp.float32, -k_gru, k_gru),
            "b_ih": jax.random.uniform(k3, (3, 1, hidden_dim),
                                       jnp.float32, -k_gru, k_gru),
            "b_hh": jax.random.uniform(k4, (3, 1, hidden_dim),
                                       jnp.float32, -k_gru, k_gru),
        })
    key, kw, kb = jax.random.split(key, 3)
    return {
        "gru": gru_layers,
        "fc_w": jax.random.uniform(kw, (hidden_dim, n_out),
                                   jnp.float32, -k_fc, k_fc),
        "fc_b": jax.random.uniform(kb, (1, n_out), jnp.float32, -k_fc, k_fc),
    }


# ----------------------------------------------------------------------------
if __name__ == "__main__":
    batch_size = 4
    seq_len = 8
    input_dim = 16
    hidden_dim = 32
    n_out = 8
    n_layers = 2
    # model_type = 'GRU'

    key = jax.random.PRNGKey(0)
    key, kx = jax.random.split(key)
    x = jax.random.normal(kx, (batch_size, seq_len, input_dim), jnp.float32)
    # init_hidden(): zeros, shape (n_layers, B, H)
    h0 = jnp.zeros((n_layers, batch_size, hidden_dim), jnp.float32)

    params = init_params(key, input_dim, hidden_dim, n_out, n_layers)

    out_ref, h_n_ref = recovery_forward_ref(x, h0, params)

    # bf16 matmuls (f32 accumulation) => loosened parity tolerance vs f32 ref.
    TOL = 3e-2

    # default path: one chunk covers the full sequence
    out, h_n = recovery_forward(x, h0, params)
    jax.block_until_ready((out, h_n))
    assert out.shape == (batch_size, n_out)
    assert h_n.shape == (n_layers, batch_size, hidden_dim)
    assert jnp.allclose(out, out_ref, atol=TOL, rtol=TOL), \
        float(jnp.max(jnp.abs(out - out_ref)))
    assert jnp.allclose(h_n, h_n_ref, atol=TOL, rtol=TOL), \
        float(jnp.max(jnp.abs(h_n - h_n_ref)))

    # multi-chunk + ragged last chunk path (exercises the validity guard and
    # the cross-chunk hidden-state carry)
    out2, h_n2 = recovery_forward(x, h0, params, t_chunk_cap=3)
    jax.block_until_ready((out2, h_n2))
    assert jnp.allclose(out2, out_ref, atol=TOL, rtol=TOL), \
        float(jnp.max(jnp.abs(out2 - out_ref)))
    assert jnp.allclose(h_n2, h_n_ref, atol=TOL, rtol=TOL), \
        float(jnp.max(jnp.abs(h_n2 - h_n_ref)))

    print("KERNEL_OK")
</pallas_src>

<mosaic_0001>
module attributes {stable_mosaic.version = 11 : i64} {
  func.func @kernel(%arg0: i32, %arg1: i32, %arg2: memref<8x8x128xf32, #tpu.memory_space<vmem>>, %arg3: memref<2x8x128xf32, #tpu.memory_space<vmem>>, %arg4: memref<2x128x384xbf16, #tpu.memory_space<vmem>>, %arg5: memref<2x128x384xbf16, #tpu.memory_space<vmem>>, %arg6: memref<2x1x384xf32, #tpu.memory_space<vmem>>, %arg7: memref<2x1x128xf32, #tpu.memory_space<vmem>>, %arg8: memref<128x128xbf16, #tpu.memory_space<vmem>>, %arg9: memref<1x128xf32, #tpu.memory_space<vmem>>, %arg10: memref<8x128xf32, #tpu.memory_space<vmem>>, %arg11: memref<2x8x128xf32, #tpu.memory_space<vmem>>, %arg12: memref<2x8x128xf32, #tpu.memory_space<vmem>>, %arg13: memref<8x8x128xf32, #tpu.memory_space<vmem>>, %arg14: memref<8x8x384xf32, #tpu.memory_space<vmem>>) attributes {dimension_semantics = [#tpu.dimension_semantics<parallel>, #tpu.dimension_semantics<arbitrary>], iteration_bounds = array<i64: 1, 1>, scalar_prefetch = 0 : i64, scratch_operands = 3 : i64, tpu.core_type = #tpu.core_type<tc>, window_params = [{transform_indices = @transform_0, window_bounds = array<i64: 8, 8, 128>}, {transform_indices = @transform_1, window_bounds = array<i64: 2, 8, 128>}, {pipeline_mode = #tpu.pipeline_mode<synchronous>, transform_indices = @transform_2, window_bounds = array<i64: 2, 128, 384>}, {pipeline_mode = #tpu.pipeline_mode<synchronous>, transform_indices = @transform_3, window_bounds = array<i64: 2, 128, 384>}, {pipeline_mode = #tpu.pipeline_mode<synchronous>, transform_indices = @transform_4, window_bounds = array<i64: 2, 1, 384>}, {pipeline_mode = #tpu.pipeline_mode<synchronous>, transform_indices = @transform_5, window_bounds = array<i64: 2, 1, 128>}, {pipeline_mode = #tpu.pipeline_mode<synchronous>, transform_indices = @transform_6, window_bounds = array<i64: 128, 128>}, {pipeline_mode = #tpu.pipeline_mode<synchronous>, transform_indices = @transform_7, window_bounds = array<i64: 1, 128>}, {transform_indices = @transform_8, window_bounds = array<i64: 8, 128>}, {transform_indices = @transform_9, window_bounds = array<i64: 2, 8, 128>}]} {
    %c0_i32 = arith.constant 0 : i32
    %0 = arith.cmpi eq, %arg1, %c0_i32 : i32
    %1 = arith.extui %0 : i1 to i32
    %c0_i32_0 = arith.constant 0 : i32
    %2 = arith.cmpi ne, %1, %c0_i32_0 : i32
    scf.if %2 {
      %c0_266 = arith.constant 0 : index
      %c0_267 = arith.constant 0 : index
      %c0_268 = arith.constant 0 : index
      %578 = vector.load %arg3[%c0_266, %c0_267, %c0_268] : memref<2x8x128xf32, #tpu.memory_space<vmem>>, vector<2x8x128xf32>
      %c0_269 = arith.constant 0 : index
      %c0_270 = arith.constant 0 : index
      %c0_271 = arith.constant 0 : index
      %579 = vector.load %arg12[%c0_269, %c0_270, %c0_271] : memref<2x8x128xf32, #tpu.memory_space<vmem>>, vector<2x8x128xf32>
      tpu.vector_store %arg12[%c0_269, %c0_270, %c0_271], %578 {strides = array<i32>} : memref<2x8x128xf32, #tpu.memory_space<vmem>>, vector<2x8x128xf32>,
    } else {
    }
    %c0 = arith.constant 0 : index
    %c0_1 = arith.constant 0 : index
    %c0_2 = arith.constant 0 : index
    %3 = vector.load %arg2[%c0, %c0_1, %c0_2] : memref<8x8x128xf32, #tpu.memory_space<vmem>>, vector<8x8x128xf32>
    %4 = vector.shape_cast %3 : vector<8x8x128xf32> to vector<64x128xf32>
    %c0_3 = arith.constant 0 : index
    %c0_4 = arith.constant 0 : index
    %c0_5 = arith.constant 0 : index
    %5 = vector.load %arg4[%c0_3, %c0_4, %c0_5] : memref<2x128x384xbf16, #tpu.memory_space<vmem>>, vector<1x128x384xbf16>
    %6 = vector.shape_cast %5 : vector<1x128x384xbf16> to vector<128x384xbf16>
    %7 = arith.truncf %4 : vector<64x128xf32> to vector<64x128xbf16>
    %cst = arith.constant dense<0.000000e+00> : vector<64x384xf32>
    %8 = tpu.matmul %7, %6, %cst {dimension_numbers = #tpu.dot_dimension_numbers<[1], [0], [0], [1], [0, 0, 1, 1], [], []>} : vector<64x128xbf16>, vector<128x384xbf16>, vector<64x384xf32> -> vector<64x384xf32>
    %c0_6 = arith.constant 0 : index
    %c0_7 = arith.constant 0 : index
    %c0_8 = arith.constant 0 : index
    %9 = vector.load %arg6[%c0_6, %c0_7, %c0_8] : memref<2x1x384xf32, #tpu.memory_space<vmem>>, vector<1x1x384xf32>
    %10 = vector.shape_cast %9 : vector<1x1x384xf32> to vector<1x384xf32>
    %11 = vector.broadcast %10 : vector<1x384xf32> to vector<64x384xf32>
    %12 = arith.addf %8, %11 : vector<64x384xf32>
    %13 = vector.shape_cast %12 : vector<64x384xf32> to vector<8x8x384xf32>
    %c0_9 = arith.constant 0 : index
    %c0_10 = arith.constant 0 : index
    %c0_11 = arith.constant 0 : index
    %14 = vector.load %arg14[%c0_9, %c0_10, %c0_11] : memref<8x8x384xf32, #tpu.memory_space<vmem>>, vector<8x8x384xf32>
    tpu.vector_store %arg14[%c0_9, %c0_10, %c0_11], %13 {strides = array<i32>} : memref<8x8x384xf32, #tpu.memory_space<vmem>>, vector<8x8x384xf32>,
    %c0_12 = arith.constant 0 : index
    %c0_13 = arith.constant 0 : index
    %c0_14 = arith.constant 0 : index
    %15 = vector.load %arg7[%c0_12, %c0_13, %c0_14] : memref<2x1x128xf32, #tpu.memory_space<vmem>>, vector<1x1x128xf32>
    %16 = vector.shape_cast %15 : vector<1x1x128xf32> to vector<1x128xf32>
    %c0_i32_15 = arith.constant 0 : i32
    %c0_16 = arith.constant 0 : index
    %c0_17 = arith.constant 0 : index
    %c0_18 = arith.constant 0 : index
    %17 = vector.load %arg12[%c0_16, %c0_17, %c0_18] : memref<2x8x128xf32, #tpu.memory_space<vmem>>, vector<1x8x128xf32>
    %18 = vector.shape_cast %17 : vector<1x8x128xf32> to vector<8x128xf32>
    %19 = arith.truncf %18 : vector<8x128xf32> to vector<8x128xbf16>
    %c0_19 = arith.constant 0 : index
    %c0_20 = arith.constant 0 : index
    %c0_21 = arith.constant 0 : index
    %20 = vector.load %arg5[%c0_19, %c0_20, %c0_21] : memref<2x128x384xbf16, #tpu.memory_space<vmem>>, vector<1x128x384xbf16>
    %21 = vector.shape_cast %20 : vector<1x128x384xbf16> to vector<128x384xbf16>
    %cst_22 = arith.constant dense<0.000000e+00> : vector<8x384xf32>
    %22 = tpu.matmul %19, %21, %cst_22 {dimension_numbers = #tpu.dot_dimension_numbers<[1], [0], [0], [1], [0, 0, 1, 1], [], []>} : vector<8x128xbf16>, vector<128x384xbf16>, vector<8x384xf32> -> vector<8x384xf32>
    %23 = arith.index_cast %c0_i32_15 : i32 to index
    %c0_23 = arith.constant 0 : index
    %c0_24 = arith.constant 0 : index
    %24 = vector.load %arg14[%23, %c0_23, %c0_24] : memref<8x8x384xf32, #tpu.memory_space<vmem>>, vector<1x8x384xf32>
    %25 = vector.shape_cast %24 : vector<1x8x384xf32> to vector<8x384xf32>
    %26 = vector.extract_strided_slice %25 {offsets = [0, 0], sizes = [8, 256], strides = [1, 1]} : vector<8x384xf32> to vector<8x256xf32>
    %27 = vector.extract_strided_slice %22 {offsets = [0, 0], sizes = [8, 256], strides = [1, 1]} : vector<8x384xf32> to vector<8x256xf32>
    %28 = arith.addf %26, %27 : vector<8x256xf32>
    %29 = arith.negf %28 : vector<8x256xf32>
    %30 = math.exp %29 : vector<8x256xf32>
    %cst_25 = arith.constant 1.000000e+00 : f32
    %31 = vector.broadcast %cst_25 : f32 to vector<8x256xf32>
    %32 = arith.addf %31, %30 : vector<8x256xf32>
    %33 = arith.divf %31, %32 : vector<8x256xf32>
    %34 = vector.extract_strided_slice %33 {offsets = [0, 0], sizes = [8, 128], strides = [1, 1]} : vector<8x256xf32> to vector<8x128xf32>
    %35 = vector.extract_strided_slice %33 {offsets = [0, 128], sizes = [8, 128], strides = [1, 1]} : vector<8x256xf32> to vector<8x128xf32>
    %36 = vector.extract_strided_slice %25 {offsets = [0, 256], sizes = [8, 128], strides = [1, 1]} : vector<8x384xf32> to vector<8x128xf32>
    %37 = vector.extract_strided_slice %22 {offsets = [0, 256], sizes = [8, 128], strides = [1, 1]} : vector<8x384xf32> to vector<8x128xf32>
    %38 = vector.broadcast %16 : vector<1x128xf32> to vector<8x128xf32>
    %39 = arith.addf %37, %38 : vector<8x128xf32>
    %40 = arith.mulf %34, %39 : vector<8x128xf32>
    %41 = arith.addf %36, %40 : vector<8x128xf32>
    %42 = math.tanh %41 : vector<8x128xf32>
    %43 = arith.subf %18, %42 : vector<8x128xf32>
    %44 = arith.mulf %35, %43 : vector<8x128xf32>
    %45 = arith.addf %42, %44 : vector<8x128xf32>
    %c0_26 = arith.constant 0 : index
    %c0_27 = arith.constant 0 : index
    %c0_28 = arith.constant 0 : index
    %46 = vector.load %arg12[%c0_26, %c0_27, %c0_28] : memref<2x8x128xf32, #tpu.memory_space<vmem>>, vector<1x8x128xf32>
    %47 = vector.shape_cast %46 : vector<1x8x128xf32> to vector<8x128xf32>
    %48 = vector.shape_cast %45 : vector<8x128xf32> to vector<1x8x128xf32>
    tpu.vector_store %arg12[%c0_26, %c0_27, %c0_28], %48 {strides = array<i32>} : memref<2x8x128xf32, #tpu.memory_space<vmem>>, vector<1x8x128xf32>,
    %49 = arith.index_cast %c0_i32_15 : i32 to index
    %c0_29 = arith.constant 0 : index
    %c0_30 = arith.constant 0 : index
    %50 = vector.load %arg13[%49, %c0_29, %c0_30] : memref<8x8x128xf32, #tpu.memory_space<vmem>>, vector<1x8x128xf32>
    %51 = vector.shape_cast %50 : vector<1x8x128xf32> to vector<8x128xf32>
    %52 = vector.shape_cast %45 : vector<8x128xf32> to vector<1x8x128xf32>
    tpu.vector_store %arg13[%49, %c0_29, %c0_30], %52 {strides = array<i32>} : memref<8x8x128xf32, #tpu.memory_space<vmem>>, vector<1x8x128xf32>,
    %c1_i32 = arith.constant 1 : i32
    %c0_31 = arith.constant 0 : index
    %c0_32 = arith.constant 0 : index
    %c0_33 = arith.constant 0 : index
    %53 = vector.load %arg12[%c0_31, %c0_32, %c0_33] : memref<2x8x128xf32, #tpu.memory_space<vmem>>, vector<1x8x128xf32>
    %54 = vector.shape_cast %53 : vector<1x8x128xf32> to vector<8x128xf32>
    %55 = arith.truncf %54 : vector<8x128xf32> to vector<8x128xbf16>
    %c0_34 = arith.constant 0 : index
    %c0_35 = arith.constant 0 : index
    %c0_36 = arith.constant 0 : index
    %56 = vector.load %arg5[%c0_34, %c0_35, %c0_36] : memref<2x128x384xbf16, #tpu.memory_space<vmem>>, vector<1x128x384xbf16>
    %57 = vector.shape_cast %56 : vector<1x128x384xbf16> to vector<128x384xbf16>
    %cst_37 = arith.constant dense<0.000000e+00> : vector<8x384xf32>
    %58 = tpu.matmul %55, %57, %cst_37 {dimension_numbers = #tpu.dot_dimension_numbers<[1], [0], [0], [1], [0, 0, 1, 1], [], []>} : vector<8x128xbf16>, vector<128x384xbf16>, vector<8x384xf32> -> vector<8x384xf32>
    %59 = arith.index_cast %c1_i32 : i32 to index
    %c0_38 = arith.constant 0 : index
    %c0_39 = arith.constant 0 : index
    %60 = vector.load %arg14[%59, %c0_38, %c0_39] : memref<8x8x384xf32, #tpu.memory_space<vmem>>, vector<1x8x384xf32>
    %61 = vector.shape_cast %60 : vector<1x8x384xf32> to vector<8x384xf32>
    %62 = vector.extract_strided_slice %61 {offsets = [0, 0], sizes = [8, 256], strides = [1, 1]} : vector<8x384xf32> to vector<8x256xf32>
    %63 = vector.extract_strided_slice %58 {offsets = [0, 0], sizes = [8, 256], strides = [1, 1]} : vector<8x384xf32> to vector<8x256xf32>
    %64 = arith.addf %62, %63 : vector<8x256xf32>
    %65 = arith.negf %64 : vector<8x256xf32>
    %66 = math.exp %65 : vector<8x256xf32>
    %cst_40 = arith.constant 1.000000e+00 : f32
    %67 = vector.broadcast %cst_40 : f32 to vector<8x256xf32>
    %68 = arith.addf %67, %66 : vector<8x256xf32>
    %69 = arith.divf %67, %68 : vector<8x256xf32>
    %70 = vector.extract_strided_slice %69 {offsets = [0, 0], sizes = [8, 128], strides = [1, 1]} : vector<8x256xf32> to vector<8x128xf32>
    %71 = vector.extract_strided_slice %69 {offsets = [0, 128], sizes = [8, 128], strides = [1, 1]} : vector<8x256xf32> to vector<8x128xf32>
    %72 = vector.extract_strided_slice %61 {offsets = [0, 256], sizes = [8, 128], strides = [1, 1]} : vector<8x384xf32> to vector<8x128xf32>
    %73 = vector.extract_strided_slice %58 {offsets = [0, 256], sizes = [8, 128], strides = [1, 1]} : vector<8x384xf32> to vector<8x128xf32>
    %74 = vector.broadcast %16 : vector<1x128xf32> to vector<8x128xf32>
    %75 = arith.addf %73, %74 : vector<8x128xf32>
    %76 = arith.mulf %70, %75 : vector<8x128xf32>
    %77 = arith.addf %72, %76 : vector<8x128xf32>
    %78 = math.tanh %77 : vector<8x128xf32>
    %79 = arith.subf %54, %78 : vector<8x128xf32>
    %80 = arith.mulf %71, %79 : vector<8x128xf32>
    %81 = arith.addf %78, %80 : vector<8x128xf32>
    %c0_41 = arith.constant 0 : index
    %c0_42 = arith.constant 0 : index
    %c0_43 = arith.constant 0 : index
    %82 = vector.load %arg12[%c0_41, %c0_42, %c0_43] : memref<2x8x128xf32, #tpu.memory_space<vmem>>, vector<1x8x128xf32>
    %83 = vector.shape_cast %82 : vector<1x8x128xf32> to vector<8x128xf32>
    %84 = vector.shape_cast %81 : vector<8x128xf32> to vector<1x8x128xf32>
    tpu.vector_store %arg12[%c0_41, %c0_42, %c0_43], %84 {strides = array<i32>} : memref<2x8x128xf32, #tpu.memory_space<vmem>>, vector<1x8x128xf32>,
    %85 = arith.index_cast %c1_i32 : i32 to index
    %c0_44 = arith.constant 0 : index
    %c0_45 = arith.constant 0 : index
    %86 = vector.load %arg13[%85, %c0_44, %c0_45] : memref<8x8x128xf32, #tpu.memory_space<vmem>>, vector<1x8x128xf32>
    %87 = vector.shape_cast %86 : vector<1x8x128xf32> to vector<8x128xf32>
    %88 = vector.shape_cast %81 : vector<8x128xf32> to vector<1x8x128xf32>
    tpu.vector_store %arg13[%85, %c0_44, %c0_45], %88 {strides = array<i32>} : memref<8x8x128xf32, #tpu.memory_space<vmem>>, vector<1x8x128xf32>,
    %c2_i32 = arith.constant 2 : i32
    %c0_46 = arith.constant 0 : index
    %c0_47 = arith.constant 0 : index
    %c0_48 = arith.constant 0 : index
    %89 = vector.load %arg12[%c0_46, %c0_47, %c0_48] : memref<2x8x128xf32, #tpu.memory_space<vmem>>, vector<1x8x128xf32>
    %90 = vector.shape_cast %89 : vector<1x8x128xf32> to vector<8x128xf32>
    %91 = arith.truncf %90 : vector<8x128xf32> to vector<8x128xbf16>
    %c0_49 = arith.constant 0 : index
    %c0_50 = arith.constant 0 : index
    %c0_51 = arith.constant 0 : index
    %92 = vector.load %arg5[%c0_49, %c0_50, %c0_51] : memref<2x128x384xbf16, #tpu.memory_space<vmem>>, vector<1x128x384xbf16>
    %93 = vector.shape_cast %92 : vector<1x128x384xbf16> to vector<128x384xbf16>
    %cst_52 = arith.constant dense<0.000000e+00> : vector<8x384xf32>
    %94 = tpu.matmul %91, %93, %cst_52 {dimension_numbers = #tpu.dot_dimension_numbers<[1], [0], [0], [1], [0, 0, 1, 1], [], []>} : vector<8x128xbf16>, vector<128x384xbf16>, vector<8x384xf32> -> vector<8x384xf32>
    %95 = arith.index_cast %c2_i32 : i32 to index
    %c0_53 = arith.constant 0 : index
    %c0_54 = arith.constant 0 : index
    %96 = vector.load %arg14[%95, %c0_53, %c0_54] : memref<8x8x384xf32, #tpu.memory_space<vmem>>, vector<1x8x384xf32>
    %97 = vector.shape_cast %96 : vector<1x8x384xf32> to vector<8x384xf32>
    %98 = vector.extract_strided_slice %97 {offsets = [0, 0], sizes = [8, 256], strides = [1, 1]} : vector<8x384xf32> to vector<8x256xf32>
    %99 = vector.extract_strided_slice %94 {offsets = [0, 0], sizes = [8, 256], strides = [1, 1]} : vector<8x384xf32> to vector<8x256xf32>
    %100 = arith.addf %98, %99 : vector<8x256xf32>
    %101 = arith.negf %100 : vector<8x256xf32>
    %102 = math.exp %101 : vector<8x256xf32>
    %cst_55 = arith.constant 1.000000e+00 : f32
    %103 = vector.broadcast %cst_55 : f32 to vector<8x256xf32>
    %104 = arith.addf %103, %102 : vector<8x256xf32>
    %105 = arith.divf %103, %104 : vector<8x256xf32>
    %106 = vector.extract_strided_slice %105 {offsets = [0, 0], sizes = [8, 128], strides = [1, 1]} : vector<8x256xf32> to vector<8x128xf32>
    %107 = vector.extract_strided_slice %105 {offsets = [0, 128], sizes = [8, 128], strides = [1, 1]} : vector<8x256xf32> to vector<8x128xf32>
    %108 = vector.extract_strided_slice %97 {offsets = [0, 256], sizes = [8, 128], strides = [1, 1]} : vector<8x384xf32> to vector<8x128xf32>
    %109 = vector.extract_strided_slice %94 {offsets = [0, 256], sizes = [8, 128], strides = [1, 1]} : vector<8x384xf32> to vector<8x128xf32>
    %110 = vector.broadcast %16 : vector<1x128xf32> to vector<8x128xf32>
    %111 = arith.addf %109, %110 : vector<8x128xf32>
    %112 = arith.mulf %106, %111 : vector<8x128xf32>
    %113 = arith.addf %108, %112 : vector<8x128xf32>
    %114 = math.tanh %113 : vector<8x128xf32>
    %115 = arith.subf %90, %114 : vector<8x128xf32>
    %116 = arith.mulf %107, %115 : vector<8x128xf32>
    %117 = arith.addf %114, %116 : vector<8x128xf32>
    %c0_56 = arith.constant 0 : index
    %c0_57 = arith.constant 0 : index
    %c0_58 = arith.constant 0 : index
    %118 = vector.load %arg12[%c0_56, %c0_57, %c0_58] : memref<2x8x128xf32, #tpu.memory_space<vmem>>, vector<1x8x128xf32>
    %119 = vector.shape_cast %118 : vector<1x8x128xf32> to vector<8x128xf32>
    %120 = vector.shape_cast %117 : vector<8x128xf32> to vector<1x8x128xf32>
    tpu.vector_store %arg12[%c0_56, %c0_57, %c0_58], %120 {strides = array<i32>} : memref<2x8x128xf32, #tpu.memory_space<vmem>>, vector<1x8x128xf32>,
    %121 = arith.index_cast %c2_i32 : i32 to index
    %c0_59 = arith.constant 0 : index
    %c0_60 = arith.constant 0 : index
    %122 = vector.load %arg13[%121, %c0_59, %c0_60] : memref<8x8x128xf32, #tpu.memory_space<vmem>>, vector<1x8x128xf32>
    %123 = vector.shape_cast %122 : vector<1x8x128xf32> to vector<8x128xf32>
    %124 = vector.shape_cast %117 : vector<8x128xf32> to vector<1x8x128xf32>
    tpu.vector_store %arg13[%121, %c0_59, %c0_60], %124 {strides = array<i32>} : memref<8x8x128xf32, #tpu.memory_space<vmem>>, vector<1x8x128xf32>,
    %c3_i32 = arith.constant 3 : i32
    %c0_61 = arith.constant 0 : index
    %c0_62 = arith.constant 0 : index
    %c0_63 = arith.constant 0 : index
    %125 = vector.load %arg12[%c0_61, %c0_62, %c0_63] : memref<2x8x128xf32, #tpu.memory_space<vmem>>, vector<1x8x128xf32>
    %126 = vector.shape_cast %125 : vector<1x8x128xf32> to vector<8x128xf32>
    %127 = arith.truncf %126 : vector<8x128xf32> to vector<8x128xbf16>
    %c0_64 = arith.constant 0 : index
    %c0_65 = arith.constant 0 : index
    %c0_66 = arith.constant 0 : index
    %128 = vector.load %arg5[%c0_64, %c0_65, %c0_66] : memref<2x128x384xbf16, #tpu.memory_space<vmem>>, vector<1x128x384xbf16>
    %129 = vector.shape_cast %128 : vector<1x128x384xbf16> to vector<128x384xbf16>
    %cst_67 = arith.constant dense<0.000000e+00> : vector<8x384xf32>
    %130 = tpu.matmul %127, %129, %cst_67 {dimension_numbers = #tpu.dot_dimension_numbers<[1], [0], [0], [1], [0, 0, 1, 1], [], []>} : vector<8x128xbf16>, vector<128x384xbf16>, vector<8x384xf32> -> vector<8x384xf32>
    %131 = arith.index_cast %c3_i32 : i32 to index
    %c0_68 = arith.constant 0 : index
    %c0_69 = arith.constant 0 : index
    %132 = vector.load %arg14[%131, %c0_68, %c0_69] : memref<8x8x384xf32, #tpu.memory_space<vmem>>, vector<1x8x384xf32>
    %133 = vector.shape_cast %132 : vector<1x8x384xf32> to vector<8x384xf32>
    %134 = vector.extract_strided_slice %133 {offsets = [0, 0], sizes = [8, 256], strides = [1, 1]} : vector<8x384xf32> to vector<8x256xf32>
    %135 = vector.extract_strided_slice %130 {offsets = [0, 0], sizes = [8, 256], strides = [1, 1]} : vector<8x384xf32> to vector<8x256xf32>
    %136 = arith.addf %134, %135 : vector<8x256xf32>
    %137 = arith.negf %136 : vector<8x256xf32>
    %138 = math.exp %137 : vector<8x256xf32>
    %cst_70 = arith.constant 1.000000e+00 : f32
    %139 = vector.broadcast %cst_70 : f32 to vector<8x256xf32>
    %140 = arith.addf %139, %138 : vector<8x256xf32>
    %141 = arith.divf %139, %140 : vector<8x256xf32>
    %142 = vector.extract_strided_slice %141 {offsets = [0, 0], sizes = [8, 128], strides = [1, 1]} : vector<8x256xf32> to vector<8x128xf32>
    %143 = vector.extract_strided_slice %141 {offsets = [0, 128], sizes = [8, 128], strides = [1, 1]} : vector<8x256xf32> to vector<8x128xf32>
    %144 = vector.extract_strided_slice %133 {offsets = [0, 256], sizes = [8, 128], strides = [1, 1]} : vector<8x384xf32> to vector<8x128xf32>
    %145 = vector.extract_strided_slice %130 {offsets = [0, 256], sizes = [8, 128], strides = [1, 1]} : vector<8x384xf32> to vector<8x128xf32>
    %146 = vector.broadcast %16 : vector<1x128xf32> to vector<8x128xf32>
    %147 = arith.addf %145, %146 : vector<8x128xf32>
    %148 = arith.mulf %142, %147 : vector<8x128xf32>
    %149 = arith.addf %144, %148 : vector<8x128xf32>
    %150 = math.tanh %149 : vector<8x128xf32>
    %151 = arith.subf %126, %150 : vector<8x128xf32>
    %152 = arith.mulf %143, %151 : vector<8x128xf32>
    %153 = arith.addf %150, %152 : vector<8x128xf32>
    %c0_71 = arith.constant 0 : index
    %c0_72 = arith.constant 0 : index
    %c0_73 = arith.constant 0 : index
    %154 = vector.load %arg12[%c0_71, %c0_72, %c0_73] : memref<2x8x128xf32, #tpu.memory_space<vmem>>, vector<1x8x128xf32>
    %155 = vector.shape_cast %154 : vector<1x8x128xf32> to vector<8x128xf32>
    %156 = vector.shape_cast %153 : vector<8x128xf32> to vector<1x8x128xf32>
    tpu.vector_store %arg12[%c0_71, %c0_72, %c0_73], %156 {strides = array<i32>} : memref<2x8x128xf32, #tpu.memory_space<vmem>>, vector<1x8x128xf32>,
    %157 = arith.index_cast %c3_i32 : i32 to index
    %c0_74 = arith.constant 0 : index
    %c0_75 = arith.constant 0 : index
    %158 = vector.load %arg13[%157, %c0_74, %c0_75] : memref<8x8x128xf32, #tpu.memory_space<vmem>>, vector<1x8x128xf32>
    %159 = vector.shape_cast %158 : vector<1x8x128xf32> to vector<8x128xf32>
    %160 = vector.shape_cast %153 : vector<8x128xf32> to vector<1x8x128xf32>
    tpu.vector_store %arg13[%157, %c0_74, %c0_75], %160 {strides = array<i32>} : memref<8x8x128xf32, #tpu.memory_space<vmem>>, vector<1x8x128xf32>,
    %c4_i32 = arith.constant 4 : i32
    %c0_76 = arith.constant 0 : index
    %c0_77 = arith.constant 0 : index
    %c0_78 = arith.constant 0 : index
    %161 = vector.load %arg12[%c0_76, %c0_77, %c0_78] : memref<2x8x128xf32, #tpu.memory_space<vmem>>, vector<1x8x128xf32>
    %162 = vector.shape_cast %161 : vector<1x8x128xf32> to vector<8x128xf32>
    %163 = arith.truncf %162 : vector<8x128xf32> to vector<8x128xbf16>
    %c0_79 = arith.constant 0 : index
    %c0_80 = arith.constant 0 : index
    %c0_81 = arith.constant 0 : index
    %164 = vector.load %arg5[%c0_79, %c0_80, %c0_81] : memref<2x128x384xbf16, #tpu.memory_space<vmem>>, vector<1x128x384xbf16>
    %165 = vector.shape_cast %164 : vector<1x128x384xbf16> to vector<128x384xbf16>
    %cst_82 = arith.constant dense<0.000000e+00> : vector<8x384xf32>
    %166 = tpu.matmul %163, %165, %cst_82 {dimension_numbers = #tpu.dot_dimension_numbers<[1], [0], [0], [1], [0, 0, 1, 1], [], []>} : vector<8x128xbf16>, vector<128x384xbf16>, vector<8x384xf32> -> vector<8x384xf32>
    %167 = arith.index_cast %c4_i32 : i32 to index
    %c0_83 = arith.constant 0 : index
    %c0_84 = arith.constant 0 : index
    %168 = vector.load %arg14[%167, %c0_83, %c0_84] : memref<8x8x384xf32, #tpu.memory_space<vmem>>, vector<1x8x384xf32>
    %169 = vector.shape_cast %168 : vector<1x8x384xf32> to vector<8x384xf32>
    %170 = vector.extract_strided_slice %169 {offsets = [0, 0], sizes = [8, 256], strides = [1, 1]} : vector<8x384xf32> to vector<8x256xf32>
    %171 = vector.extract_strided_slice %166 {offsets = [0, 0], sizes = [8, 256], strides = [1, 1]} : vector<8x384xf32> to vector<8x256xf32>
    %172 = arith.addf %170, %171 : vector<8x256xf32>
    %173 = arith.negf %172 : vector<8x256xf32>
    %174 = math.exp %173 : vector<8x256xf32>
    %cst_85 = arith.constant 1.000000e+00 : f32
    %175 = vector.broadcast %cst_85 : f32 to vector<8x256xf32>
    %176 = arith.addf %175, %174 : vector<8x256xf32>
    %177 = arith.divf %175, %176 : vector<8x256xf32>
    %178 = vector.extract_strided_slice %177 {offsets = [0, 0], sizes = [8, 128], strides = [1, 1]} : vector<8x256xf32> to vector<8x128xf32>
    %179 = vector.extract_strided_slice %177 {offsets = [0, 128], sizes = [8, 128], strides = [1, 1]} : vector<8x256xf32> to vector<8x128xf32>
    %180 = vector.extract_strided_slice %169 {offsets = [0, 256], sizes = [8, 128], strides = [1, 1]} : vector<8x384xf32> to vector<8x128xf32>
    %181 = vector.extract_strided_slice %166 {offsets = [0, 256], sizes = [8, 128], strides = [1, 1]} : vector<8x384xf32> to vector<8x128xf32>
    %182 = vector.broadcast %16 : vector<1x128xf32> to vector<8x128xf32>
    %183 = arith.addf %181, %182 : vector<8x128xf32>
    %184 = arith.mulf %178, %183 : vector<8x128xf32>
    %185 = arith.addf %180, %184 : vector<8x128xf32>
    %186 = math.tanh %185 : vector<8x128xf32>
    %187 = arith.subf %162, %186 : vector<8x128xf32>
    %188 = arith.mulf %179, %187 : vector<8x128xf32>
    %189 = arith.addf %186, %188 : vector<8x128xf32>
    %c0_86 = arith.constant 0 : index
    %c0_87 = arith.constant 0 : index
    %c0_88 = arith.constant 0 : index
    %190 = vector.load %arg12[%c0_86, %c0_87, %c0_88] : memref<2x8x128xf32, #tpu.memory_space<vmem>>, vector<1x8x128xf32>
    %191 = vector.shape_cast %190 : vector<1x8x128xf32> to vector<8x128xf32>
    %192 = vector.shape_cast %189 : vector<8x128xf32> to vector<1x8x128xf32>
    tpu.vector_store %arg12[%c0_86, %c0_87, %c0_88], %192 {strides = array<i32>} : memref<2x8x128xf32, #tpu.memory_space<vmem>>, vector<1x8x128xf32>,
    %193 = arith.index_cast %c4_i32 : i32 to index
    %c0_89 = arith.constant 0 : index
    %c0_90 = arith.constant 0 : index
    %194 = vector.load %arg13[%193, %c0_89, %c0_90] : memref<8x8x128xf32, #tpu.memory_space<vmem>>, vector<1x8x128xf32>
    %195 = vector.shape_cast %194 : vector<1x8x128xf32> to vector<8x128xf32>
    %196 = vector.shape_cast %189 : vector<8x128xf32> to vector<1x8x128xf32>
    tpu.vector_store %arg13[%193, %c0_89, %c0_90], %196 {strides = array<i32>} : memref<8x8x128xf32, #tpu.memory_space<vmem>>, vector<1x8x128xf32>,
    %c5_i32 = arith.constant 5 : i32
    %c0_91 = arith.constant 0 : index
    %c0_92 = arith.constant 0 : index
    %c0_93 = arith.constant 0 : index
    %197 = vector.load %arg12[%c0_91, %c0_92, %c0_93] : memref<2x8x128xf32, #tpu.memory_space<vmem>>, vector<1x8x128xf32>
    %198 = vector.shape_cast %197 : vector<1x8x128xf32> to vector<8x128xf32>
    %199 = arith.truncf %198 : vector<8x128xf32> to vector<8x128xbf16>
    %c0_94 = arith.constant 0 : index
    %c0_95 = arith.constant 0 : index
    %c0_96 = arith.constant 0 : index
    %200 = vector.load %arg5[%c0_94, %c0_95, %c0_96] : memref<2x128x384xbf16, #tpu.memory_space<vmem>>, vector<1x128x384xbf16>
    %201 = vector.shape_cast %200 : vector<1x128x384xbf16> to vector<128x384xbf16>
    %cst_97 = arith.constant dense<0.000000e+00> : vector<8x384xf32>
    %202 = tpu.matmul %199, %201, %cst_97 {dimension_numbers = #tpu.dot_dimension_numbers<[1], [0], [0], [1], [0, 0, 1, 1], [], []>} : vector<8x128xbf16>, vector<128x384xbf16>, vector<8x384xf32> -> vector<8x384xf32>
    %203 = arith.index_cast %c5_i32 : i32 to index
    %c0_98 = arith.constant 0 : index
    %c0_99 = arith.constant 0 : index
    %204 = vector.load %arg14[%203, %c0_98, %c0_99] : memref<8x8x384xf32, #tpu.memory_space<vmem>>, vector<1x8x384xf32>
    %205 = vector.shape_cast %204 : vector<1x8x384xf32> to vector<8x384xf32>
    %206 = vector.extract_strided_slice %205 {offsets = [0, 0], sizes = [8, 256], strides = [1, 1]} : vector<8x384xf32> to vector<8x256xf32>
    %207 = vector.extract_strided_slice %202 {offsets = [0, 0], sizes = [8, 256], strides = [1, 1]} : vector<8x384xf32> to vector<8x256xf32>
    %208 = arith.addf %206, %207 : vector<8x256xf32>
    %209 = arith.negf %208 : vector<8x256xf32>
    %210 = math.exp %209 : vector<8x256xf32>
    %cst_100 = arith.constant 1.000000e+00 : f32
    %211 = vector.broadcast %cst_100 : f32 to vector<8x256xf32>
    %212 = arith.addf %211, %210 : vector<8x256xf32>
    %213 = arith.divf %211, %212 : vector<8x256xf32>
    %214 = vector.extract_strided_slice %213 {offsets = [0, 0], sizes = [8, 128], strides = [1, 1]} : vector<8x256xf32> to vector<8x128xf32>
    %215 = vector.extract_strided_slice %213 {offsets = [0, 128], sizes = [8, 128], strides = [1, 1]} : vector<8x256xf32> to vector<8x128xf32>
    %216 = vector.extract_strided_slice %205 {offsets = [0, 256], sizes = [8, 128], strides = [1, 1]} : vector<8x384xf32> to vector<8x128xf32>
    %217 = vector.extract_strided_slice %202 {offsets = [0, 256], sizes = [8, 128], strides = [1, 1]} : vector<8x384xf32> to vector<8x128xf32>
    %218 = vector.broadcast %16 : vector<1x128xf32> to vector<8x128xf32>
    %219 = arith.addf %217, %218 : vector<8x128xf32>
    %220 = arith.mulf %214, %219 : vector<8x128xf32>
    %221 = arith.addf %216, %220 : vector<8x128xf32>
    %222 = math.tanh %221 : vector<8x128xf32>
    %223 = arith.subf %198, %222 : vector<8x128xf32>
    %224 = arith.mulf %215, %223 : vector<8x128xf32>
    %225 = arith.addf %222, %224 : vector<8x128xf32>
    %c0_101 = arith.constant 0 : index
    %c0_102 = arith.constant 0 : index
    %c0_103 = arith.constant 0 : index
    %226 = vector.load %arg12[%c0_101, %c0_102, %c0_103] : memref<2x8x128xf32, #tpu.memory_space<vmem>>, vector<1x8x128xf32>
    %227 = vector.shape_cast %226 : vector<1x8x128xf32> to vector<8x128xf32>
    %228 = vector.shape_cast %225 : vector<8x128xf32> to vector<1x8x128xf32>
    tpu.vector_store %arg12[%c0_101, %c0_102, %c0_103], %228 {strides = array<i32>} : memref<2x8x128xf32, #tpu.memory_space<vmem>>, vector<1x8x128xf32>,
    %229 = arith.index_cast %c5_i32 : i32 to index
    %c0_104 = arith.constant 0 : index
    %c0_105 = arith.constant 0 : index
    %230 = vector.load %arg13[%229, %c0_104, %c0_105] : memref<8x8x128xf32, #tpu.memory_space<vmem>>, vector<1x8x128xf32>
    %231 = vector.shape_cast %230 : vector<1x8x128xf32> to vector<8x128xf32>
    %232 = vector.shape_cast %225 : vector<8x128xf32> to vector<1x8x128xf32>
    tpu.vector_store %arg13[%229, %c0_104, %c0_105], %232 {strides = array<i32>} : memref<8x8x128xf32, #tpu.memory_space<vmem>>, vector<1x8x128xf32>,
    %c6_i32 = arith.constant 6 : i32
    %c0_106 = arith.constant 0 : index
    %c0_107 = arith.constant 0 : index
    %c0_108 = arith.constant 0 : index
    %233 = vector.load %arg12[%c0_106, %c0_107, %c0_108] : memref<2x8x128xf32, #tpu.memory_space<vmem>>, vector<1x8x128xf32>
    %234 = vector.shape_cast %233 : vector<1x8x128xf32> to vector<8x128xf32>
    %235 = arith.truncf %234 : vector<8x128xf32> to vector<8x128xbf16>
    %c0_109 = arith.constant 0 : index
    %c0_110 = arith.constant 0 : index
    %c0_111 = arith.constant 0 : index
    %236 = vector.load %arg5[%c0_109, %c0_110, %c0_111] : memref<2x128x384xbf16, #tpu.memory_space<vmem>>, vector<1x128x384xbf16>
    %237 = vector.shape_cast %236 : vector<1x128x384xbf16> to vector<128x384xbf16>
    %cst_112 = arith.constant dense<0.000000e+00> : vector<8x384xf32>
    %238 = tpu.matmul %235, %237, %cst_112 {dimension_numbers = #tpu.dot_dimension_numbers<[1], [0], [0], [1], [0, 0, 1, 1], [], []>} : vector<8x128xbf16>, vector<128x384xbf16>, vector<8x384xf32> -> vector<8x384xf32>
    %239 = arith.index_cast %c6_i32 : i32 to index
    %c0_113 = arith.constant 0 : index
    %c0_114 = arith.constant 0 : index
    %240 = vector.load %arg14[%239, %c0_113, %c0_114] : memref<8x8x384xf32, #tpu.memory_space<vmem>>, vector<1x8x384xf32>
    %241 = vector.shape_cast %240 : vector<1x8x384xf32> to vector<8x384xf32>
    %242 = vector.extract_strided_slice %241 {offsets = [0, 0], sizes = [8, 256], strides = [1, 1]} : vector<8x384xf32> to vector<8x256xf32>
    %243 = vector.extract_strided_slice %238 {offsets = [0, 0], sizes = [8, 256], strides = [1, 1]} : vector<8x384xf32> to vector<8x256xf32>
    %244 = arith.addf %242, %243 : vector<8x256xf32>
    %245 = arith.negf %244 : vector<8x256xf32>
    %246 = math.exp %245 : vector<8x256xf32>
    %cst_115 = arith.constant 1.000000e+00 : f32
    %247 = vector.broadcast %cst_115 : f32 to vector<8x256xf32>
    %248 = arith.addf %247, %246 : vector<8x256xf32>
    %249 = arith.divf %247, %248 : vector<8x256xf32>
    %250 = vector.extract_strided_slice %249 {offsets = [0, 0], sizes = [8, 128], strides = [1, 1]} : vector<8x256xf32> to vector<8x128xf32>
    %251 = vector.extract_strided_slice %249 {offsets = [0, 128], sizes = [8, 128], strides = [1, 1]} : vector<8x256xf32> to vector<8x128xf32>
    %252 = vector.extract_strided_slice %241 {offsets = [0, 256], sizes = [8, 128], strides = [1, 1]} : vector<8x384xf32> to vector<8x128xf32>
    %253 = vector.extract_strided_slice %238 {offsets = [0, 256], sizes = [8, 128], strides = [1, 1]} : vector<8x384xf32> to vector<8x128xf32>
    %254 = vector.broadcast %16 : vector<1x128xf32> to vector<8x128xf32>
    %255 = arith.addf %253, %254 : vector<8x128xf32>
    %256 = arith.mulf %250, %255 : vector<8x128xf32>
    %257 = arith.addf %252, %256 : vector<8x128xf32>
    %258 = math.tanh %257 : vector<8x128xf32>
    %259 = arith.subf %234, %258 : vector<8x128xf32>
    %260 = arith.mulf %251, %259 : vector<8x128xf32>
    %261 = arith.addf %258, %260 : vector<8x128xf32>
    %c0_116 = arith.constant 0 : index
    %c0_117 = arith.constant 0 : index
    %c0_118 = arith.constant 0 : index
    %262 = vector.load %arg12[%c0_116, %c0_117, %c0_118] : memref<2x8x128xf32, #tpu.memory_space<vmem>>, vector<1x8x128xf32>
    %263 = vector.shape_cast %262 : vector<1x8x128xf32> to vector<8x128xf32>
    %264 = vector.shape_cast %261 : vector<8x128xf32> to vector<1x8x128xf32>
    tpu.vector_store %arg12[%c0_116, %c0_117, %c0_118], %264 {strides = array<i32>} : memref<2x8x128xf32, #tpu.memory_space<vmem>>, vector<1x8x128xf32>,
    %265 = arith.index_cast %c6_i32 : i32 to index
    %c0_119 = arith.constant 0 : index
    %c0_120 = arith.constant 0 : index
    %266 = vector.load %arg13[%265, %c0_119, %c0_120] : memref<8x8x128xf32, #tpu.memory_space<vmem>>, vector<1x8x128xf32>
    %267 = vector.shape_cast %266 : vector<1x8x128xf32> to vector<8x128xf32>
    %268 = vector.shape_cast %261 : vector<8x128xf32> to vector<1x8x128xf32>
    tpu.vector_store %arg13[%265, %c0_119, %c0_120], %268 {strides = array<i32>} : memref<8x8x128xf32, #tpu.memory_space<vmem>>, vector<1x8x128xf32>,
    %c7_i32 = arith.constant 7 : i32
    %c0_121 = arith.constant 0 : index
    %c0_122 = arith.constant 0 : index
    %c0_123 = arith.constant 0 : index
    %269 = vector.load %arg12[%c0_121, %c0_122, %c0_123] : memref<2x8x128xf32, #tpu.memory_space<vmem>>, vector<1x8x128xf32>
    %270 = vector.shape_cast %269 : vector<1x8x128xf32> to vector<8x128xf32>
    %271 = arith.truncf %270 : vector<8x128xf32> to vector<8x128xbf16>
    %c0_124 = arith.constant 0 : index
    %c0_125 = arith.constant 0 : index
    %c0_126 = arith.constant 0 : index
    %272 = vector.load %arg5[%c0_124, %c0_125, %c0_126] : memref<2x128x384xbf16, #tpu.memory_space<vmem>>, vector<1x128x384xbf16>
    %273 = vector.shape_cast %272 : vector<1x128x384xbf16> to vector<128x384xbf16>
    %cst_127 = arith.constant dense<0.000000e+00> : vector<8x384xf32>
    %274 = tpu.matmul %271, %273, %cst_127 {dimension_numbers = #tpu.dot_dimension_numbers<[1], [0], [0], [1], [0, 0, 1, 1], [], []>} : vector<8x128xbf16>, vector<128x384xbf16>, vector<8x384xf32> -> vector<8x384xf32>
    %275 = arith.index_cast %c7_i32 : i32 to index
    %c0_128 = arith.constant 0 : index
    %c0_129 = arith.constant 0 : index
    %276 = vector.load %arg14[%275, %c0_128, %c0_129] : memref<8x8x384xf32, #tpu.memory_space<vmem>>, vector<1x8x384xf32>
    %277 = vector.shape_cast %276 : vector<1x8x384xf32> to vector<8x384xf32>
    %278 = vector.extract_strided_slice %277 {offsets = [0, 0], sizes = [8, 256], strides = [1, 1]} : vector<8x384xf32> to vector<8x256xf32>
    %279 = vector.extract_strided_slice %274 {offsets = [0, 0], sizes = [8, 256], strides = [1, 1]} : vector<8x384xf32> to vector<8x256xf32>
    %280 = arith.addf %278, %279 : vector<8x256xf32>
    %281 = arith.negf %280 : vector<8x256xf32>
    %282 = math.exp %281 : vector<8x256xf32>
    %cst_130 = arith.constant 1.000000e+00 : f32
    %283 = vector.broadcast %cst_130 : f32 to vector<8x256xf32>
    %284 = arith.addf %283, %282 : vector<8x256xf32>
    %285 = arith.divf %283, %284 : vector<8x256xf32>
    %286 = vector.extract_strided_slice %285 {offsets = [0, 0], sizes = [8, 128], strides = [1, 1]} : vector<8x256xf32> to vector<8x128xf32>
    %287 = vector.extract_strided_slice %285 {offsets = [0, 128], sizes = [8, 128], strides = [1, 1]} : vector<8x256xf32> to vector<8x128xf32>
    %288 = vector.extract_strided_slice %277 {offsets = [0, 256], sizes = [8, 128], strides = [1, 1]} : vector<8x384xf32> to vector<8x128xf32>
    %289 = vector.extract_strided_slice %274 {offsets = [0, 256], sizes = [8, 128], strides = [1, 1]} : vector<8x384xf32> to vector<8x128xf32>
    %290 = vector.broadcast %16 : vector<1x128xf32> to vector<8x128xf32>
    %291 = arith.addf %289, %290 : vector<8x128xf32>
    %292 = arith.mulf %286, %291 : vector<8x128xf32>
    %293 = arith.addf %288, %292 : vector<8x128xf32>
    %294 = math.tanh %293 : vector<8x128xf32>
    %295 = arith.subf %270, %294 : vector<8x128xf32>
    %296 = arith.mulf %287, %295 : vector<8x128xf32>
    %297 = arith.addf %294, %296 : vector<8x128xf32>
    %c0_131 = arith.constant 0 : index
    %c0_132 = arith.constant 0 : index
    %c0_133 = arith.constant 0 : index
    %298 = vector.load %arg12[%c0_131, %c0_132, %c0_133] : memref<2x8x128xf32, #tpu.memory_space<vmem>>, vector<1x8x128xf32>
    %299 = vector.shape_cast %298 : vector<1x8x128xf32> to vector<8x128xf32>
    %300 = vector.shape_cast %297 : vector<8x128xf32> to vector<1x8x128xf32>
    tpu.vector_store %arg12[%c0_131, %c0_132, %c0_133], %300 {strides = array<i32>} : memref<2x8x128xf32, #tpu.memory_space<vmem>>, vector<1x8x128xf32>,
    %301 = arith.index_cast %c7_i32 : i32 to index
    %c0_134 = arith.constant 0 : index
    %c0_135 = arith.constant 0 : index
    %302 = vector.load %arg13[%301, %c0_134, %c0_135] : memref<8x8x128xf32, #tpu.memory_space<vmem>>, vector<1x8x128xf32>
    %303 = vector.shape_cast %302 : vector<1x8x128xf32> to vector<8x128xf32>
    %304 = vector.shape_cast %297 : vector<8x128xf32> to vector<1x8x128xf32>
    tpu.vector_store %arg13[%301, %c0_134, %c0_135], %304 {strides = array<i32>} : memref<8x8x128xf32, #tpu.memory_space<vmem>>, vector<1x8x128xf32>,
    %c8_i32 = arith.constant 8 : i32
    %c0_136 = arith.constant 0 : index
    %c0_137 = arith.constant 0 : index
    %c0_138 = arith.constant 0 : index
    %305 = vector.load %arg13[%c0_136, %c0_137, %c0_138] : memref<8x8x128xf32, #tpu.memory_space<vmem>>, vector<8x8x128xf32>
    %306 = vector.shape_cast %305 : vector<8x8x128xf32> to vector<64x128xf32>
    %c1 = arith.constant 1 : index
    %c0_139 = arith.constant 0 : index
    %c0_140 = arith.constant 0 : index
    %307 = vector.load %arg4[%c1, %c0_139, %c0_140] : memref<2x128x384xbf16, #tpu.memory_space<vmem>>, vector<1x128x384xbf16>
    %308 = vector.shape_cast %307 : vector<1x128x384xbf16> to vector<128x384xbf16>
    %309 = arith.truncf %306 : vector<64x128xf32> to vector<64x128xbf16>
    %cst_141 = arith.constant dense<0.000000e+00> : vector<64x384xf32>
    %310 = tpu.matmul %309, %308, %cst_141 {dimension_numbers = #tpu.dot_dimension_numbers<[1], [0], [0], [1], [0, 0, 1, 1], [], []>} : vector<64x128xbf16>, vector<128x384xbf16>, vector<64x384xf32> -> vector<64x384xf32>
    %c1_142 = arith.constant 1 : index
    %c0_143 = arith.constant 0 : index
    %c0_144 = arith.constant 0 : index
    %311 = vector.load %arg6[%c1_142, %c0_143, %c0_144] : memref<2x1x384xf32, #tpu.memory_space<vmem>>, vector<1x1x384xf32>
    %312 = vector.shape_cast %311 : vector<1x1x384xf32> to vector<1x384xf32>
    %313 = vector.broadcast %312 : vector<1x384xf32> to vector<64x384xf32>
    %314 = arith.addf %310, %313 : vector<64x384xf32>
    %315 = vector.shape_cast %314 : vector<64x384xf32> to vector<8x8x384xf32>
    %c0_145 = arith.constant 0 : index
    %c0_146 = arith.constant 0 : index
    %c0_147 = arith.constant 0 : index
    %316 = vector.load %arg14[%c0_145, %c0_146, %c0_147] : memref<8x8x384xf32, #tpu.memory_space<vmem>>, vector<8x8x384xf32>
    tpu.vector_store %arg14[%c0_145, %c0_146, %c0_147], %315 {strides = array<i32>} : memref<8x8x384xf32, #tpu.memory_space<vmem>>, vector<8x8x384xf32>,
    %c1_148 = arith.constant 1 : index
    %c0_149 = arith.constant 0 : index
    %c0_150 = arith.constant 0 : index
    %317 = vector.load %arg7[%c1_148, %c0_149, %c0_150] : memref<2x1x128xf32, #tpu.memory_space<vmem>>, vector<1x1x128xf32>
    %318 = vector.shape_cast %317 : vector<1x1x128xf32> to vector<1x128xf32>
    %c0_i32_151 = arith.constant 0 : i32
    %c1_152 = arith.constant 1 : index
    %c0_153 = arith.constant 0 : index
    %c0_154 = arith.constant 0 : index
    %319 = vector.load %arg12[%c1_152, %c0_153, %c0_154] : memref<2x8x128xf32, #tpu.memory_space<vmem>>, vector<1x8x128xf32>
    %320 = vector.shape_cast %319 : vector<1x8x128xf32> to vector<8x128xf32>
    %321 = arith.truncf %320 : vector<8x128xf32> to vector<8x128xbf16>
    %c1_155 = arith.constant 1 : index
    %c0_156 = arith.constant 0 : index
    %c0_157 = arith.constant 0 : index
    %322 = vector.load %arg5[%c1_155, %c0_156, %c0_157] : memref<2x128x384xbf16, #tpu.memory_space<vmem>>, vector<1x128x384xbf16>
    %323 = vector.shape_cast %322 : vector<1x128x384xbf16> to vector<128x384xbf16>
    %cst_158 = arith.constant dense<0.000000e+00> : vector<8x384xf32>
    %324 = tpu.matmul %321, %323, %cst_158 {dimension_numbers = #tpu.dot_dimension_numbers<[1], [0], [0], [1], [0, 0, 1, 1], [], []>} : vector<8x128xbf16>, vector<128x384xbf16>, vector<8x384xf32> -> vector<8x384xf32>
    %325 = arith.index_cast %c0_i32_151 : i32 to index
    %c0_159 = arith.constant 0 : index
    %c0_160 = arith.constant 0 : index
    %326 = vector.load %arg14[%325, %c0_159, %c0_160] : memref<8x8x384xf32, #tpu.memory_space<vmem>>, vector<1x8x384xf32>
    %327 = vector.shape_cast %326 : vector<1x8x384xf32> to vector<8x384xf32>
    %328 = vector.extract_strided_slice %327 {offsets = [0, 0], sizes = [8, 256], strides = [1, 1]} : vector<8x384xf32> to vector<8x256xf32>
    %329 = vector.extract_strided_slice %324 {offsets = [0, 0], sizes = [8, 256], strides = [1, 1]} : vector<8x384xf32> to vector<8x256xf32>
    %330 = arith.addf %328, %329 : vector<8x256xf32>
    %331 = arith.negf %330 : vector<8x256xf32>
    %332 = math.exp %331 : vector<8x256xf32>
    %cst_161 = arith.constant 1.000000e+00 : f32
    %333 = vector.broadcast %cst_161 : f32 to vector<8x256xf32>
    %334 = arith.addf %333, %332 : vector<8x256xf32>
    %335 = arith.divf %333, %334 : vector<8x256xf32>
    %336 = vector.extract_strided_slice %335 {offsets = [0, 0], sizes = [8, 128], strides = [1, 1]} : vector<8x256xf32> to vector<8x128xf32>
    %337 = vector.extract_strided_slice %335 {offsets = [0, 128], sizes = [8, 128], strides = [1, 1]} : vector<8x256xf32> to vector<8x128xf32>
    %338 = vector.extract_strided_slice %327 {offsets = [0, 256], sizes = [8, 128], strides = [1, 1]} : vector<8x384xf32> to vector<8x128xf32>
    %339 = vector.extract_strided_slice %324 {offsets = [0, 256], sizes = [8, 128], strides = [1, 1]} : vector<8x384xf32> to vector<8x128xf32>
    %340 = vector.broadcast %318 : vector<1x128xf32> to vector<8x128xf32>
    %341 = arith.addf %339, %340 : vector<8x128xf32>
    %342 = arith.mulf %336, %341 : vector<8x128xf32>
    %343 = arith.addf %338, %342 : vector<8x128xf32>
    %344 = math.tanh %343 : vector<8x128xf32>
    %345 = arith.subf %320, %344 : vector<8x128xf32>
    %346 = arith.mulf %337, %345 : vector<8x128xf32>
    %347 = arith.addf %344, %346 : vector<8x128xf32>
    %c1_162 = arith.constant 1 : index
    %c0_163 = arith.constant 0 : index
    %c0_164 = arith.constant 0 : index
    %348 = vector.load %arg12[%c1_162, %c0_163, %c0_164] : memref<2x8x128xf32, #tpu.memory_space<vmem>>, vector<1x8x128xf32>
    %349 = vector.shape_cast %348 : vector<1x8x128xf32> to vector<8x128xf32>
    %350 = vector.shape_cast %347 : vector<8x128xf32> to vector<1x8x128xf32>
    tpu.vector_store %arg12[%c1_162, %c0_163, %c0_164], %350 {strides = array<i32>} : memref<2x8x128xf32, #tpu.memory_space<vmem>>, vector<1x8x128xf32>,
    %c1_i32_165 = arith.constant 1 : i32
    %c1_166 = arith.constant 1 : index
    %c0_167 = arith.constant 0 : index
    %c0_168 = arith.constant 0 : index
    %351 = vector.load %arg12[%c1_166, %c0_167, %c0_168] : memref<2x8x128xf32, #tpu.memory_space<vmem>>, vector<1x8x128xf32>
    %352 = vector.shape_cast %351 : vector<1x8x128xf32> to vector<8x128xf32>
    %353 = arith.truncf %352 : vector<8x128xf32> to vector<8x128xbf16>
    %c1_169 = arith.constant 1 : index
    %c0_170 = arith.constant 0 : index
    %c0_171 = arith.constant 0 : index
    %354 = vector.load %arg5[%c1_169, %c0_170, %c0_171] : memref<2x128x384xbf16, #tpu.memory_space<vmem>>, vector<1x128x384xbf16>
    %355 = vector.shape_cast %354 : vector<1x128x384xbf16> to vector<128x384xbf16>
    %cst_172 = arith.constant dense<0.000000e+00> : vector<8x384xf32>
    %356 = tpu.matmul %353, %355, %cst_172 {dimension_numbers = #tpu.dot_dimension_numbers<[1], [0], [0], [1], [0, 0, 1, 1], [], []>} : vector<8x128xbf16>, vector<128x384xbf16>, vector<8x384xf32> -> vector<8x384xf32>
    %357 = arith.index_cast %c1_i32_165 : i32 to index
    %c0_173 = arith.constant 0 : index
    %c0_174 = arith.constant 0 : index
    %358 = vector.load %arg14[%357, %c0_173, %c0_174] : memref<8x8x384xf32, #tpu.memory_space<vmem>>, vector<1x8x384xf32>
    %359 = vector.shape_cast %358 : vector<1x8x384xf32> to vector<8x384xf32>
    %360 = vector.extract_strided_slice %359 {offsets = [0, 0], sizes = [8, 256], strides = [1, 1]} : vector<8x384xf32> to vector<8x256xf32>
    %361 = vector.extract_strided_slice %356 {offsets = [0, 0], sizes = [8, 256], strides = [1, 1]} : vector<8x384xf32> to vector<8x256xf32>
    %362 = arith.addf %360, %361 : vector<8x256xf32>
    %363 = arith.negf %362 : vector<8x256xf32>
    %364 = math.exp %363 : vector<8x256xf32>
    %cst_175 = arith.constant 1.000000e+00 : f32
    %365 = vector.broadcast %cst_175 : f32 to vector<8x256xf32>
    %366 = arith.addf %365, %364 : vector<8x256xf32>
    %367 = arith.divf %365, %366 : vector<8x256xf32>
    %368 = vector.extract_strided_slice %367 {offsets = [0, 0], sizes = [8, 128], strides = [1, 1]} : vector<8x256xf32> to vector<8x128xf32>
    %369 = vector.extract_strided_slice %367 {offsets = [0, 128], sizes = [8, 128], strides = [1, 1]} : vector<8x256xf32> to vector<8x128xf32>
    %370 = vector.extract_strided_slice %359 {offsets = [0, 256], sizes = [8, 128], strides = [1, 1]} : vector<8x384xf32> to vector<8x128xf32>
    %371 = vector.extract_strided_slice %356 {offsets = [0, 256], sizes = [8, 128], strides = [1, 1]} : vector<8x384xf32> to vector<8x128xf32>
    %372 = vector.broadcast %318 : vector<1x128xf32> to vector<8x128xf32>
    %373 = arith.addf %371, %372 : vector<8x128xf32>
    %374 = arith.mulf %368, %373 : vector<8x128xf32>
    %375 = arith.addf %370, %374 : vector<8x128xf32>
    %376 = math.tanh %375 : vector<8x128xf32>
    %377 = arith.subf %352, %376 : vector<8x128xf32>
    %378 = arith.mulf %369, %377 : vector<8x128xf32>
    %379 = arith.addf %376, %378 : vector<8x128xf32>
    %c1_176 = arith.constant 1 : index
    %c0_177 = arith.constant 0 : index
    %c0_178 = arith.constant 0 : index
    %380 = vector.load %arg12[%c1_176, %c0_177, %c0_178] : memref<2x8x128xf32, #tpu.memory_space<vmem>>, vector<1x8x128xf32>
    %381 = vector.shape_cast %380 : vector<1x8x128xf32> to vector<8x128xf32>
    %382 = vector.shape_cast %379 : vector<8x128xf32> to vector<1x8x128xf32>
    tpu.vector_store %arg12[%c1_176, %c0_177, %c0_178], %382 {strides = array<i32>} : memref<2x8x128xf32, #tpu.memory_space<vmem>>, vector<1x8x128xf32>,
    %c2_i32_179 = arith.constant 2 : i32
    %c1_180 = arith.constant 1 : index
    %c0_181 = arith.constant 0 : index
    %c0_182 = arith.constant 0 : index
    %383 = vector.load %arg12[%c1_180, %c0_181, %c0_182] : memref<2x8x128xf32, #tpu.memory_space<vmem>>, vector<1x8x128xf32>
    %384 = vector.shape_cast %383 : vector<1x8x128xf32> to vector<8x128xf32>
    %385 = arith.truncf %384 : vector<8x128xf32> to vector<8x128xbf16>
    %c1_183 = arith.constant 1 : index
    %c0_184 = arith.constant 0 : index
    %c0_185 = arith.constant 0 : index
    %386 = vector.load %arg5[%c1_183, %c0_184, %c0_185] : memref<2x128x384xbf16, #tpu.memory_space<vmem>>, vector<1x128x384xbf16>
    %387 = vector.shape_cast %386 : vector<1x128x384xbf16> to vector<128x384xbf16>
    %cst_186 = arith.constant dense<0.000000e+00> : vector<8x384xf32>
    %388 = tpu.matmul %385, %387, %cst_186 {dimension_numbers = #tpu.dot_dimension_numbers<[1], [0], [0], [1], [0, 0, 1, 1], [], []>} : vector<8x128xbf16>, vector<128x384xbf16>, vector<8x384xf32> -> vector<8x384xf32>
    %389 = arith.index_cast %c2_i32_179 : i32 to index
    %c0_187 = arith.constant 0 : index
    %c0_188 = arith.constant 0 : index
    %390 = vector.load %arg14[%389, %c0_187, %c0_188] : memref<8x8x384xf32, #tpu.memory_space<vmem>>, vector<1x8x384xf32>
    %391 = vector.shape_cast %390 : vector<1x8x384xf32> to vector<8x384xf32>
    %392 = vector.extract_strided_slice %391 {offsets = [0, 0], sizes = [8, 256], strides = [1, 1]} : vector<8x384xf32> to vector<8x256xf32>
    %393 = vector.extract_strided_slice %388 {offsets = [0, 0], sizes = [8, 256], strides = [1, 1]} : vector<8x384xf32> to vector<8x256xf32>
    %394 = arith.addf %392, %393 : vector<8x256xf32>
    %395 = arith.negf %394 : vector<8x256xf32>
    %396 = math.exp %395 : vector<8x256xf32>
    %cst_189 = arith.constant 1.000000e+00 : f32
    %397 = vector.broadcast %cst_189 : f32 to vector<8x256xf32>
    %398 = arith.addf %397, %396 : vector<8x256xf32>
    %399 = arith.divf %397, %398 : vector<8x256xf32>
    %400 = vector.extract_strided_slice %399 {offsets = [0, 0], sizes = [8, 128], strides = [1, 1]} : vector<8x256xf32> to vector<8x128xf32>
    %401 = vector.extract_strided_slice %399 {offsets = [0, 128], sizes = [8, 128], strides = [1, 1]} : vector<8x256xf32> to vector<8x128xf32>
    %402 = vector.extract_strided_slice %391 {offsets = [0, 256], sizes = [8, 128], strides = [1, 1]} : vector<8x384xf32> to vector<8x128xf32>
    %403 = vector.extract_strided_slice %388 {offsets = [0, 256], sizes = [8, 128], strides = [1, 1]} : vector<8x384xf32> to vector<8x128xf32>
    %404 = vector.broadcast %318 : vector<1x128xf32> to vector<8x128xf32>
    %405 = arith.addf %403, %404 : vector<8x128xf32>
    %406 = arith.mulf %400, %405 : vector<8x128xf32>
    %407 = arith.addf %402, %406 : vector<8x128xf32>
    %408 = math.tanh %407 : vector<8x128xf32>
    %409 = arith.subf %384, %408 : vector<8x128xf32>
    %410 = arith.mulf %401, %409 : vector<8x128xf32>
    %411 = arith.addf %408, %410 : vector<8x128xf32>
    %c1_190 = arith.constant 1 : index
    %c0_191 = arith.constant 0 : index
    %c0_192 = arith.constant 0 : index
    %412 = vector.load %arg12[%c1_190, %c0_191, %c0_192] : memref<2x8x128xf32, #tpu.memory_space<vmem>>, vector<1x8x128xf32>
    %413 = vector.shape_cast %412 : vector<1x8x128xf32> to vector<8x128xf32>
    %414 = vector.shape_cast %411 : vector<8x128xf32> to vector<1x8x128xf32>
    tpu.vector_store %arg12[%c1_190, %c0_191, %c0_192], %414 {strides = array<i32>} : memref<2x8x128xf32, #tpu.memory_space<vmem>>, vector<1x8x128xf32>,
    %c3_i32_193 = arith.constant 3 : i32
    %c1_194 = arith.constant 1 : index
    %c0_195 = arith.constant 0 : index
    %c0_196 = arith.constant 0 : index
    %415 = vector.load %arg12[%c1_194, %c0_195, %c0_196] : memref<2x8x128xf32, #tpu.memory_space<vmem>>, vector<1x8x128xf32>
    %416 = vector.shape_cast %415 : vector<1x8x128xf32> to vector<8x128xf32>
    %417 = arith.truncf %416 : vector<8x128xf32> to vector<8x128xbf16>
    %c1_197 = arith.constant 1 : index
    %c0_198 = arith.constant 0 : index
    %c0_199 = arith.constant 0 : index
    %418 = vector.load %arg5[%c1_197, %c0_198, %c0_199] : memref<2x128x384xbf16, #tpu.memory_space<vmem>>, vector<1x128x384xbf16>
    %419 = vector.shape_cast %418 : vector<1x128x384xbf16> to vector<128x384xbf16>
    %cst_200 = arith.constant dense<0.000000e+00> : vector<8x384xf32>
    %420 = tpu.matmul %417, %419, %cst_200 {dimension_numbers = #tpu.dot_dimension_numbers<[1], [0], [0], [1], [0, 0, 1, 1], [], []>} : vector<8x128xbf16>, vector<128x384xbf16>, vector<8x384xf32> -> vector<8x384xf32>
    %421 = arith.index_cast %c3_i32_193 : i32 to index
    %c0_201 = arith.constant 0 : index
    %c0_202 = arith.constant 0 : index
    %422 = vector.load %arg14[%421, %c0_201, %c0_202] : memref<8x8x384xf32, #tpu.memory_space<vmem>>, vector<1x8x384xf32>
    %423 = vector.shape_cast %422 : vector<1x8x384xf32> to vector<8x384xf32>
    %424 = vector.extract_strided_slice %423 {offsets = [0, 0], sizes = [8, 256], strides = [1, 1]} : vector<8x384xf32> to vector<8x256xf32>
    %425 = vector.extract_strided_slice %420 {offsets = [0, 0], sizes = [8, 256], strides = [1, 1]} : vector<8x384xf32> to vector<8x256xf32>
    %426 = arith.addf %424, %425 : vector<8x256xf32>
    %427 = arith.negf %426 : vector<8x256xf32>
    %428 = math.exp %427 : vector<8x256xf32>
    %cst_203 = arith.constant 1.000000e+00 : f32
    %429 = vector.broadcast %cst_203 : f32 to vector<8x256xf32>
    %430 = arith.addf %429, %428 : vector<8x256xf32>
    %431 = arith.divf %429, %430 : vector<8x256xf32>
    %432 = vector.extract_strided_slice %431 {offsets = [0, 0], sizes = [8, 128], strides = [1, 1]} : vector<8x256xf32> to vector<8x128xf32>
    %433 = vector.extract_strided_slice %431 {offsets = [0, 128], sizes = [8, 128], strides = [1, 1]} : vector<8x256xf32> to vector<8x128xf32>
    %434 = vector.extract_strided_slice %423 {offsets = [0, 256], sizes = [8, 128], strides = [1, 1]} : vector<8x384xf32> to vector<8x128xf32>
    %435 = vector.extract_strided_slice %420 {offsets = [0, 256], sizes = [8, 128], strides = [1, 1]} : vector<8x384xf32> to vector<8x128xf32>
    %436 = vector.broadcast %318 : vector<1x128xf32> to vector<8x128xf32>
    %437 = arith.addf %435, %436 : vector<8x128xf32>
    %438 = arith.mulf %432, %437 : vector<8x128xf32>
    %439 = arith.addf %434, %438 : vector<8x128xf32>
    %440 = math.tanh %439 : vector<8x128xf32>
    %441 = arith.subf %416, %440 : vector<8x128xf32>
    %442 = arith.mulf %433, %441 : vector<8x128xf32>
    %443 = arith.addf %440, %442 : vector<8x128xf32>
    %c1_204 = arith.constant 1 : index
    %c0_205 = arith.constant 0 : index
    %c0_206 = arith.constant 0 : index
    %444 = vector.load %arg12[%c1_204, %c0_205, %c0_206] : memref<2x8x128xf32, #tpu.memory_space<vmem>>, vector<1x8x128xf32>
    %445 = vector.shape_cast %444 : vector<1x8x128xf32> to vector<8x128xf32>
    %446 = vector.shape_cast %443 : vector<8x128xf32> to vector<1x8x128xf32>
    tpu.vector_store %arg12[%c1_204, %c0_205, %c0_206], %446 {strides = array<i32>} : memref<2x8x128xf32, #tpu.memory_space<vmem>>, vector<1x8x128xf32>,
    %c4_i32_207 = arith.constant 4 : i32
    %c1_208 = arith.constant 1 : index
    %c0_209 = arith.constant 0 : index
    %c0_210 = arith.constant 0 : index
    %447 = vector.load %arg12[%c1_208, %c0_209, %c0_210] : memref<2x8x128xf32, #tpu.memory_space<vmem>>, vector<1x8x128xf32>
    %448 = vector.shape_cast %447 : vector<1x8x128xf32> to vector<8x128xf32>
    %449 = arith.truncf %448 : vector<8x128xf32> to vector<8x128xbf16>
    %c1_211 = arith.constant 1 : index
    %c0_212 = arith.constant 0 : index
    %c0_213 = arith.constant 0 : index
    %450 = vector.load %arg5[%c1_211, %c0_212, %c0_213] : memref<2x128x384xbf16, #tpu.memory_space<vmem>>, vector<1x128x384xbf16>
    %451 = vector.shape_cast %450 : vector<1x128x384xbf16> to vector<128x384xbf16>
    %cst_214 = arith.constant dense<0.000000e+00> : vector<8x384xf32>
    %452 = tpu.matmul %449, %451, %cst_214 {dimension_numbers = #tpu.dot_dimension_numbers<[1], [0], [0], [1], [0, 0, 1, 1], [], []>} : vector<8x128xbf16>, vector<128x384xbf16>, vector<8x384xf32> -> vector<8x384xf32>
    %453 = arith.index_cast %c4_i32_207 : i32 to index
    %c0_215 = arith.constant 0 : index
    %c0_216 = arith.constant 0 : index
    %454 = vector.load %arg14[%453, %c0_215, %c0_216] : memref<8x8x384xf32, #tpu.memory_space<vmem>>, vector<1x8x384xf32>
    %455 = vector.shape_cast %454 : vector<1x8x384xf32> to vector<8x384xf32>
    %456 = vector.extract_strided_slice %455 {offsets = [0, 0], sizes = [8, 256], strides = [1, 1]} : vector<8x384xf32> to vector<8x256xf32>
    %457 = vector.extract_strided_slice %452 {offsets = [0, 0], sizes = [8, 256], strides = [1, 1]} : vector<8x384xf32> to vector<8x256xf32>
    %458 = arith.addf %456, %457 : vector<8x256xf32>
    %459 = arith.negf %458 : vector<8x256xf32>
    %460 = math.exp %459 : vector<8x256xf32>
    %cst_217 = arith.constant 1.000000e+00 : f32
    %461 = vector.broadcast %cst_217 : f32 to vector<8x256xf32>
    %462 = arith.addf %461, %460 : vector<8x256xf32>
    %463 = arith.divf %461, %462 : vector<8x256xf32>
    %464 = vector.extract_strided_slice %463 {offsets = [0, 0], sizes = [8, 128], strides = [1, 1]} : vector<8x256xf32> to vector<8x128xf32>
    %465 = vector.extract_strided_slice %463 {offsets = [0, 128], sizes = [8, 128], strides = [1, 1]} : vector<8x256xf32> to vector<8x128xf32>
    %466 = vector.extract_strided_slice %455 {offsets = [0, 256], sizes = [8, 128], strides = [1, 1]} : vector<8x384xf32> to vector<8x128xf32>
    %467 = vector.extract_strided_slice %452 {offsets = [0, 256], sizes = [8, 128], strides = [1, 1]} : vector<8x384xf32> to vector<8x128xf32>
    %468 = vector.broadcast %318 : vector<1x128xf32> to vector<8x128xf32>
    %469 = arith.addf %467, %468 : vector<8x128xf32>
    %470 = arith.mulf %464, %469 : vector<8x128xf32>
    %471 = arith.addf %466, %470 : vector<8x128xf32>
    %472 = math.tanh %471 : vector<8x128xf32>
    %473 = arith.subf %448, %472 : vector<8x128xf32>
    %474 = arith.mulf %465, %473 : vector<8x128xf32>
    %475 = arith.addf %472, %474 : vector<8x128xf32>
    %c1_218 = arith.constant 1 : index
    %c0_219 = arith.constant 0 : index
    %c0_220 = arith.constant 0 : index
    %476 = vector.load %arg12[%c1_218, %c0_219, %c0_220] : memref<2x8x128xf32, #tpu.memory_space<vmem>>, vector<1x8x128xf32>
    %477 = vector.shape_cast %476 : vector<1x8x128xf32> to vector<8x128xf32>
    %478 = vector.shape_cast %475 : vector<8x128xf32> to vector<1x8x128xf32>
    tpu.vector_store %arg12[%c1_218, %c0_219, %c0_220], %478 {strides = array<i32>} : memref<2x8x128xf32, #tpu.memory_space<vmem>>, vector<1x8x128xf32>,
    %c5_i32_221 = arith.constant 5 : i32
    %c1_222 = arith.constant 1 : index
    %c0_223 = arith.constant 0 : index
    %c0_224 = arith.constant 0 : index
    %479 = vector.load %arg12[%c1_222, %c0_223, %c0_224] : memref<2x8x128xf32, #tpu.memory_space<vmem>>, vector<1x8x128xf32>
    %480 = vector.shape_cast %479 : vector<1x8x128xf32> to vector<8x128xf32>
    %481 = arith.truncf %480 : vector<8x128xf32> to vector<8x128xbf16>
    %c1_225 = arith.constant 1 : index
    %c0_226 = arith.constant 0 : index
    %c0_227 = arith.constant 0 : index
    %482 = vector.load %arg5[%c1_225, %c0_226, %c0_227] : memref<2x128x384xbf16, #tpu.memory_space<vmem>>, vector<1x128x384xbf16>
    %483 = vector.shape_cast %482 : vector<1x128x384xbf16> to vector<128x384xbf16>
    %cst_228 = arith.constant dense<0.000000e+00> : vector<8x384xf32>
    %484 = tpu.matmul %481, %483, %cst_228 {dimension_numbers = #tpu.dot_dimension_numbers<[1], [0], [0], [1], [0, 0, 1, 1], [], []>} : vector<8x128xbf16>, vector<128x384xbf16>, vector<8x384xf32> -> vector<8x384xf32>
    %485 = arith.index_cast %c5_i32_221 : i32 to index
    %c0_229 = arith.constant 0 : index
    %c0_230 = arith.constant 0 : index
    %486 = vector.load %arg14[%485, %c0_229, %c0_230] : memref<8x8x384xf32, #tpu.memory_space<vmem>>, vector<1x8x384xf32>
    %487 = vector.shape_cast %486 : vector<1x8x384xf32> to vector<8x384xf32>
    %488 = vector.extract_strided_slice %487 {offsets = [0, 0], sizes = [8, 256], strides = [1, 1]} : vector<8x384xf32> to vector<8x256xf32>
    %489 = vector.extract_strided_slice %484 {offsets = [0, 0], sizes = [8, 256], strides = [1, 1]} : vector<8x384xf32> to vector<8x256xf32>
    %490 = arith.addf %488, %489 : vector<8x256xf32>
    %491 = arith.negf %490 : vector<8x256xf32>
    %492 = math.exp %491 : vector<8x256xf32>
    %cst_231 = arith.constant 1.000000e+00 : f32
    %493 = vector.broadcast %cst_231 : f32 to vector<8x256xf32>
    %494 = arith.addf %493, %492 : vector<8x256xf32>
    %495 = arith.divf %493, %494 : vector<8x256xf32>
    %496 = vector.extract_strided_slice %495 {offsets = [0, 0], sizes = [8, 128], strides = [1, 1]} : vector<8x256xf32> to vector<8x128xf32>
    %497 = vector.extract_strided_slice %495 {offsets = [0, 128], sizes = [8, 128], strides = [1, 1]} : vector<8x256xf32> to vector<8x128xf32>
    %498 = vector.extract_strided_slice %487 {offsets = [0, 256], sizes = [8, 128], strides = [1, 1]} : vector<8x384xf32> to vector<8x128xf32>
    %499 = vector.extract_strided_slice %484 {offsets = [0, 256], sizes = [8, 128], strides = [1, 1]} : vector<8x384xf32> to vector<8x128xf32>
    %500 = vector.broadcast %318 : vector<1x128xf32> to vector<8x128xf32>
    %501 = arith.addf %499, %500 : vector<8x128xf32>
    %502 = arith.mulf %496, %501 : vector<8x128xf32>
    %503 = arith.addf %498, %502 : vector<8x128xf32>
    %504 = math.tanh %503 : vector<8x128xf32>
    %505 = arith.subf %480, %504 : vector<8x128xf32>
    %506 = arith.mulf %497, %505 : vector<8x128xf32>
    %507 = arith.addf %504, %506 : vector<8x128xf32>
    %c1_232 = arith.constant 1 : index
    %c0_233 = arith.constant 0 : index
    %c0_234 = arith.constant 0 : index
    %508 = vector.load %arg12[%c1_232, %c0_233, %c0_234] : memref<2x8x128xf32, #tpu.memory_space<vmem>>, vector<1x8x128xf32>
    %509 = vector.shape_cast %508 : vector<1x8x128xf32> to vector<8x128xf32>
    %510 = vector.shape_cast %507 : vector<8x128xf32> to vector<1x8x128xf32>
    tpu.vector_store %arg12[%c1_232, %c0_233, %c0_234], %510 {strides = array<i32>} : memref<2x8x128xf32, #tpu.memory_space<vmem>>, vector<1x8x128xf32>,
    %c6_i32_235 = arith.constant 6 : i32
    %c1_236 = arith.constant 1 : index
    %c0_237 = arith.constant 0 : index
    %c0_238 = arith.constant 0 : index
    %511 = vector.load %arg12[%c1_236, %c0_237, %c0_238] : memref<2x8x128xf32, #tpu.memory_space<vmem>>, vector<1x8x128xf32>
    %512 = vector.shape_cast %511 : vector<1x8x128xf32> to vector<8x128xf32>
    %513 = arith.truncf %512 : vector<8x128xf32> to vector<8x128xbf16>
    %c1_239 = arith.constant 1 : index
    %c0_240 = arith.constant 0 : index
    %c0_241 = arith.constant 0 : index
    %514 = vector.load %arg5[%c1_239, %c0_240, %c0_241] : memref<2x128x384xbf16, #tpu.memory_space<vmem>>, vector<1x128x384xbf16>
    %515 = vector.shape_cast %514 : vector<1x128x384xbf16> to vector<128x384xbf16>
    %cst_242 = arith.constant dense<0.000000e+00> : vector<8x384xf32>
    %516 = tpu.matmul %513, %515, %cst_242 {dimension_numbers = #tpu.dot_dimension_numbers<[1], [0], [0], [1], [0, 0, 1, 1], [], []>} : vector<8x128xbf16>, vector<128x384xbf16>, vector<8x384xf32> -> vector<8x384xf32>
    %517 = arith.index_cast %c6_i32_235 : i32 to index
    %c0_243 = arith.constant 0 : index
    %c0_244 = arith.constant 0 : index
    %518 = vector.load %arg14[%517, %c0_243, %c0_244] : memref<8x8x384xf32, #tpu.memory_space<vmem>>, vector<1x8x384xf32>
    %519 = vector.shape_cast %518 : vector<1x8x384xf32> to vector<8x384xf32>
    %520 = vector.extract_strided_slice %519 {offsets = [0, 0], sizes = [8, 256], strides = [1, 1]} : vector<8x384xf32> to vector<8x256xf32>
    %521 = vector.extract_strided_slice %516 {offsets = [0, 0], sizes = [8, 256], strides = [1, 1]} : vector<8x384xf32> to vector<8x256xf32>
    %522 = arith.addf %520, %521 : vector<8x256xf32>
    %523 = arith.negf %522 : vector<8x256xf32>
    %524 = math.exp %523 : vector<8x256xf32>
    %cst_245 = arith.constant 1.000000e+00 : f32
    %525 = vector.broadcast %cst_245 : f32 to vector<8x256xf32>
    %526 = arith.addf %525, %524 : vector<8x256xf32>
    %527 = arith.divf %525, %526 : vector<8x256xf32>
    %528 = vector.extract_strided_slice %527 {offsets = [0, 0], sizes = [8, 128], strides = [1, 1]} : vector<8x256xf32> to vector<8x128xf32>
    %529 = vector.extract_strided_slice %527 {offsets = [0, 128], sizes = [8, 128], strides = [1, 1]} : vector<8x256xf32> to vector<8x128xf32>
    %530 = vector.extract_strided_slice %519 {offsets = [0, 256], sizes = [8, 128], strides = [1, 1]} : vector<8x384xf32> to vector<8x128xf32>
    %531 = vector.extract_strided_slice %516 {offsets = [0, 256], sizes = [8, 128], strides = [1, 1]} : vector<8x384xf32> to vector<8x128xf32>
    %532 = vector.broadcast %318 : vector<1x128xf32> to vector<8x128xf32>
    %533 = arith.addf %531, %532 : vector<8x128xf32>
    %534 = arith.mulf %528, %533 : vector<8x128xf32>
    %535 = arith.addf %530, %534 : vector<8x128xf32>
    %536 = math.tanh %535 : vector<8x128xf32>
    %537 = arith.subf %512, %536 : vector<8x128xf32>
    %538 = arith.mulf %529, %537 : vector<8x128xf32>
    %539 = arith.addf %536, %538 : vector<8x128xf32>
    %c1_246 = arith.constant 1 : index
    %c0_247 = arith.constant 0 : index
    %c0_248 = arith.constant 0 : index
    %540 = vector.load %arg12[%c1_246, %c0_247, %c0_248] : memref<2x8x128xf32, #tpu.memory_space<vmem>>, vector<1x8x128xf32>
    %541 = vector.shape_cast %540 : vector<1x8x128xf32> to vector<8x128xf32>
    %542 = vector.shape_cast %539 : vector<8x128xf32> to vector<1x8x128xf32>
    tpu.vector_store %arg12[%c1_246, %c0_247, %c0_248], %542 {strides = array<i32>} : memref<2x8x128xf32, #tpu.memory_space<vmem>>, vector<1x8x128xf32>,
    %c7_i32_249 = arith.constant 7 : i32
    %c1_250 = arith.constant 1 : index
    %c0_251 = arith.constant 0 : index
    %c0_252 = arith.constant 0 : index
    %543 = vector.load %arg12[%c1_250, %c0_251, %c0_252] : memref<2x8x128xf32, #tpu.memory_space<vmem>>, vector<1x8x128xf32>
    %544 = vector.shape_cast %543 : vector<1x8x128xf32> to vector<8x128xf32>
    %545 = arith.truncf %544 : vector<8x128xf32> to vector<8x128xbf16>
    %c1_253 = arith.constant 1 : index
    %c0_254 = arith.constant 0 : index
    %c0_255 = arith.constant 0 : index
    %546 = vector.load %arg5[%c1_253, %c0_254, %c0_255] : memref<2x128x384xbf16, #tpu.memory_space<vmem>>, vector<1x128x384xbf16>
    %547 = vector.shape_cast %546 : vector<1x128x384xbf16> to vector<128x384xbf16>
    %cst_256 = arith.constant dense<0.000000e+00> : vector<8x384xf32>
    %548 = tpu.matmul %545, %547, %cst_256 {dimension_numbers = #tpu.dot_dimension_numbers<[1], [0], [0], [1], [0, 0, 1, 1], [], []>} : vector<8x128xbf16>, vector<128x384xbf16>, vector<8x384xf32> -> vector<8x384xf32>
    %549 = arith.index_cast %c7_i32_249 : i32 to index
    %c0_257 = arith.constant 0 : index
    %c0_258 = arith.constant 0 : index
    %550 = vector.load %arg14[%549, %c0_257, %c0_258] : memref<8x8x384xf32, #tpu.memory_space<vmem>>, vector<1x8x384xf32>
    %551 = vector.shape_cast %550 : vector<1x8x384xf32> to vector<8x384xf32>
    %552 = vector.extract_strided_slice %551 {offsets = [0, 0], sizes = [8, 256], strides = [1, 1]} : vector<8x384xf32> to vector<8x256xf32>
    %553 = vector.extract_strided_slice %548 {offsets = [0, 0], sizes = [8, 256], strides = [1, 1]} : vector<8x384xf32> to vector<8x256xf32>
    %554 = arith.addf %552, %553 : vector<8x256xf32>
    %555 = arith.negf %554 : vector<8x256xf32>
    %556 = math.exp %555 : vector<8x256xf32>
    %cst_259 = arith.constant 1.000000e+00 : f32
    %557 = vector.broadcast %cst_259 : f32 to vector<8x256xf32>
    %558 = arith.addf %557, %556 : vector<8x256xf32>
    %559 = arith.divf %557, %558 : vector<8x256xf32>
    %560 = vector.extract_strided_slice %559 {offsets = [0, 0], sizes = [8, 128], strides = [1, 1]} : vector<8x256xf32> to vector<8x128xf32>
    %561 = vector.extract_strided_slice %559 {offsets = [0, 128], sizes = [8, 128], strides = [1, 1]} : vector<8x256xf32> to vector<8x128xf32>
    %562 = vector.extract_strided_slice %551 {offsets = [0, 256], sizes = [8, 128], strides = [1, 1]} : vector<8x384xf32> to vector<8x128xf32>
    %563 = vector.extract_strided_slice %548 {offsets = [0, 256], sizes = [8, 128], strides = [1, 1]} : vector<8x384xf32> to vector<8x128xf32>
    %564 = vector.broadcast %318 : vector<1x128xf32> to vector<8x128xf32>
    %565 = arith.addf %563, %564 : vector<8x128xf32>
    %566 = arith.mulf %560, %565 : vector<8x128xf32>
    %567 = arith.addf %562, %566 : vector<8x128xf32>
    %568 = math.tanh %567 : vector<8x128xf32>
    %569 = arith.subf %544, %568 : vector<8x128xf32>
    %570 = arith.mulf %561, %569 : vector<8x128xf32>
    %571 = arith.addf %568, %570 : vector<8x128xf32>
    %c1_260 = arith.constant 1 : index
    %c0_261 = arith.constant 0 : index
    %c0_262 = arith.constant 0 : index
    %572 = vector.load %arg12[%c1_260, %c0_261, %c0_262] : memref<2x8x128xf32, #tpu.memory_space<vmem>>, vector<1x8x128xf32>
    %573 = vector.shape_cast %572 : vector<1x8x128xf32> to vector<8x128xf32>
    %574 = vector.shape_cast %571 : vector<8x128xf32> to vector<1x8x128xf32>
    tpu.vector_store %arg12[%c1_260, %c0_261, %c0_262], %574 {strides = array<i32>} : memref<2x8x128xf32, #tpu.memory_space<vmem>>, vector<1x8x128xf32>,
    %c8_i32_263 = arith.constant 8 : i32
    %c0_i32_264 = arith.constant 0 : i32
    %575 = arith.cmpi eq, %arg1, %c0_i32_264 : i32
    %576 = arith.extui %575 : i1 to i32
    %c0_i32_265 = arith.constant 0 : i32
    %577 = arith.cmpi ne, %576, %c0_i32_265 : i32
    scf.if %577 {
      %c0_266 = arith.constant 0 : index
      %c0_267 = arith.constant 0 : index
      %c0_268 = arith.constant 0 : index
      %578 = vector.load %arg12[%c0_266, %c0_267, %c0_268] : memref<2x8x128xf32, #tpu.memory_space<vmem>>, vector<2x8x128xf32>
      %c0_269 = arith.constant 0 : index
      %c0_270 = arith.constant 0 : index
      %c0_271 = arith.constant 0 : index
      %579 = vector.load %arg11[%c0_269, %c0_270, %c0_271] : memref<2x8x128xf32, #tpu.memory_space<vmem>>, vector<2x8x128xf32>
      tpu.vector_store %arg11[%c0_269, %c0_270, %c0_271], %578 {strides = array<i32>} : memref<2x8x128xf32, #tpu.memory_space<vmem>>, vector<2x8x128xf32>,
      %c1_272 = arith.constant 1 : index
      %c0_273 = arith.constant 0 : index
      %c0_274 = arith.constant 0 : index
      %580 = vector.load %arg12[%c1_272, %c0_273, %c0_274] : memref<2x8x128xf32, #tpu.memory_space<vmem>>, vector<1x8x128xf32>
      %581 = vector.shape_cast %580 : vector<1x8x128xf32> to vector<8x128xf32>
      %582 = arith.negf %581 : vector<8x128xf32>
      %583 = math.exp %582 : vector<8x128xf32>
      %cst_275 = arith.constant 1.000000e+00 : f32
      %584 = vector.broadcast %cst_275 : f32 to vector<8x128xf32>
      %585 = arith.addf %584, %583 : vector<8x128xf32>
      %586 = arith.divf %584, %585 : vector<8x128xf32>
      %587 = arith.truncf %586 : vector<8x128xf32> to vector<8x128xbf16>
      %c0_276 = arith.constant 0 : index
      %c0_277 = arith.constant 0 : index
      %588 = vector.load %arg8[%c0_276, %c0_277] : memref<128x128xbf16, #tpu.memory_space<vmem>>, vector<128x128xbf16>
      %cst_278 = arith.constant dense<0.000000e+00> : vector<8x128xf32>
      %589 = tpu.matmul %587, %588, %cst_278 {dimension_numbers = #tpu.dot_dimension_numbers<[1], [0], [0], [1], [0, 0, 1, 1], [], []>} : vector<8x128xbf16>, vector<128x128xbf16>, vector<8x128xf32> -> vector<8x128xf32>
      %c0_279 = arith.constant 0 : index
      %c0_280 = arith.constant 0 : index
      %590 = vector.load %arg9[%c0_279, %c0_280] : memref<1x128xf32, #tpu.memory_space<vmem>>, vector<1x128xf32>
      %591 = vector.broadcast %590 : vector<1x128xf32> to vector<8x128xf32>
      %592 = arith.addf %589, %591 : vector<8x128xf32>
      %c0_281 = arith.constant 0 : index
      %c0_282 = arith.constant 0 : index
      %593 = vector.load %arg10[%c0_281, %c0_282] : memref<8x128xf32, #tpu.memory_space<vmem>>, vector<8x128xf32>
      tpu.vector_store %arg10[%c0_281, %c0_282], %592 {strides = array<i32>} : memref<8x128xf32, #tpu.memory_space<vmem>>, vector<8x128xf32>,
    } else {
    }
    return
  }
  func.func @transform_0(%arg0: i32, %arg1: i32) -> (i32, i32, i32) {
    %c0_i32 = arith.constant 0 : i32
    %c0_i32_0 = arith.constant 0 : i32
    return %arg1, %arg0, %c0_i32 : i32, i32, i32
  }
  func.func @transform_1(%arg0: i32, %arg1: i32) -> (i32, i32, i32) {
    %c0_i32 = arith.constant 0 : i32
    %c0_i32_0 = arith.constant 0 : i32
    %c0_i32_1 = arith.constant 0 : i32
    return %c0_i32, %arg0, %c0_i32_0 : i32, i32, i32
  }
  func.func @transform_2(%arg0: i32, %arg1: i32) -> (i32, i32, i32) {
    %c0_i32 = arith.constant 0 : i32
    %c0_i32_0 = arith.constant 0 : i32
    %c0_i32_1 = arith.constant 0 : i32
    %c0_i32_2 = arith.constant 0 : i32
    return %c0_i32, %c0_i32_0, %c0_i32_1 : i32, i32, i32
  }
  func.func @transform_3(%arg0: i32, %arg1: i32) -> (i32, i32, i32) {
    %c0_i32 = arith.constant 0 : i32
    %c0_i32_0 = arith.constant 0 : i32
    %c0_i32_1 = arith.constant 0 : i32
    %c0_i32_2 = arith.constant 0 : i32
    return %c0_i32, %c0_i32_0, %c0_i32_1 : i32, i32, i32
  }
  func.func @transform_4(%arg0: i32, %arg1: i32) -> (i32, i32, i32) {
    %c0_i32 = arith.constant 0 : i32
    %c0_i32_0 = arith.constant 0 : i32
    %c0_i32_1 = arith.constant 0 : i32
    %c0_i32_2 = arith.constant 0 : i32
    return %c0_i32, %c0_i32_0, %c0_i32_1 : i32, i32, i32
  }
  func.func @transform_5(%arg0: i32, %arg1: i32) -> (i32, i32, i32) {
    %c0_i32 = arith.constant 0 : i32
    %c0_i32_0 = arith.constant 0 : i32
    %c0_i32_1 = arith.constant 0 : i32
    %c0_i32_2 = arith.constant 0 : i32
    return %c0_i32, %c0_i32_0, %c0_i32_1 : i32, i32, i32
  }
  func.func @transform_6(%arg0: i32, %arg1: i32) -> (i32, i32) {
    %c0_i32 = arith.constant 0 : i32
    %c0_i32_0 = arith.constant 0 : i32
    %c0_i32_1 = arith.constant 0 : i32
    return %c0_i32, %c0_i32_0 : i32, i32
  }
  func.func @transform_7(%arg0: i32, %arg1: i32) -> (i32, i32) {
    %c0_i32 = arith.constant 0 : i32
    %c0_i32_0 = arith.constant 0 : i32
    %c0_i32_1 = arith.constant 0 : i32
    return %c0_i32, %c0_i32_0 : i32, i32
  }
  func.func @transform_8(%arg0: i32, %arg1: i32) -> (i32, i32) {
    %c0_i32 = arith.constant 0 : i32
    %c0_i32_0 = arith.constant 0 : i32
    return %arg0, %c0_i32 : i32, i32
  }
  func.func @transform_9(%arg0: i32, %arg1: i32) -> (i32, i32, i32) {
    %c0_i32 = arith.constant 0 : i32
    %c0_i32_0 = arith.constant 0 : i32
    %c0_i32_1 = arith.constant 0 : i32
    return %c0_i32, %arg0, %c0_i32_0 : i32, i32, i32
  }
}

</mosaic_0001>

<bundles_post_ra>
// kernel: recovery_forward.1
= control target key start
LH: loop header
LB: loop body
LE: loop exit
PB: predicated region body
PF: predicated region fallthrough
CT: control target
= control target key end

     0   :  { %s10673_s2 = inlined_call_operand.vmem [shape: bf16[2,128,384], index: 2, kind: input, shape index: {}]   ;;  %s10674_s3 = inlined_call_operand.vmem [shape: bf16[2,128,384], index: 3, kind: input, shape index: {}]   ;;  %s10675_s0 = inlined_call_operand.vmem [shape: f32[8,8,128], index: 0, kind: input, shape index: {}]   ;;  %s10676_s1 = inlined_call_operand.vmem [shape: f32[2,8,128], index: 1, kind: input, shape index: {}]   ;;  %s10677_s5 = inlined_call_operand.vmem [shape: f32[2,1,128], index: 5, kind: input, shape index: {}]   ;;  %s10678_s4 = inlined_call_operand.vmem [shape: f32[2,1,384], index: 4, kind: input, shape index: {}]   ;;  %s10679_s9 = inlined_call_operand.vmem [shape: f32[2,8,128], index: 9, kind: output, shape index: {1}]   ;;  %s10680_s7 = inlined_call_operand.vmem [shape: f32[1,128], index: 7, kind: input, shape index: {}]   ;;  %s10681_s6 = inlined_call_operand.vmem [shape: bf16[128,128], index: 6, kind: input, shape index: {}]   ;;  %s10682_s8 = inlined_call_operand.vmem [shape: f32[8,128], index: 8, kind: output, shape index: {0}]  }
   0x1   :  { %v4892_v0 = vld [vmem:[%s10673_s2 + $0xa8] sm:$0xf]  ;;  %v6911_v1 = vld [vmem:[%s10673_s2 + $0xb0] sm:$0xf0]  ;;  %v4880_v5 = vld [vmem:[%s10673_s2 + $0x90] sm:$0xf] }
   0x2   :  { %v4988_v2 = vld [vmem:[%s10674_s3 + $0xa8] sm:$0xf]  ;;  %v4893_v3 = vor.u32 %v6911_v1, %v4892_v0  ;;  %v6935_v4 = vld [vmem:[%s10674_s3 + $0xb0] sm:$0xf0]  ;;  %v6908_v6 = vld [vmem:[%s10673_s2 + $0x98] sm:$0xf0] }
   0x3   :  { %v4989_v7 = vor.u32 %v6935_v4, %v4988_v2  ;;  %v4976_v8 = vld [vmem:[%s10674_s3 + $0x90] sm:$0xf]  ;;  %v6932_v9 = vld [vmem:[%s10674_s3 + $0x98] sm:$0xf0]  ;;  %v4881_v10 = vor.u32 %v6908_v6, %v4880_v5  ;;  %v4868_v12 = vld [vmem:[%s10673_s2 + $0x78] sm:$0xf] }
   0x4   :  { %219 = vmatpush.bf16.msra.mxu0 %v4893_v3  ;;  %v4977_v11 = vor.u32 %v6932_v9, %v4976_v8  ;;  %v6905_v13 = vld [vmem:[%s10673_s2 + $0x80] sm:$0xf0]  ;;  %v4964_v14 = vld [vmem:[%s10674_s3 + $0x78] sm:$0xf]  ;;  %v4856_v18 = vld [vmem:[%s10673_s2 + $0x60] sm:$0xf] }
   0x5   :  { %493 = vmatpush.bf16.msra.mxu3 %v4989_v7  ;;  %v6929_v15 = vld [vmem:[%s10674_s3 + $0x80] sm:$0xf0]  ;;  %v4869_v16 = vor.u32 %v6905_v13, %v4868_v12  ;;  %v6902_v19 = vld [vmem:[%s10673_s2 + $0x68] sm:$0xf0]  ;;  %v4952_v20 = vld [vmem:[%s10674_s3 + $0x60] sm:$0xf] }
   0x6   :  { %v4965_v17 = vor.u32 %v6929_v15, %v4964_v14  ;;  %v6926_v21 = vld [vmem:[%s10674_s3 + $0x68] sm:$0xf0]  ;;  %v4857_v22 = vor.u32 %v6902_v19, %v4856_v18  ;;  %v4844_v24 = vld [vmem:[%s10673_s2 + $0x48] sm:$0xf]  ;;  %v6899_v25 = vld [vmem:[%s10673_s2 + $0x50] sm:$0xf0] }
   0x7   :  { %v4953_v23 = vor.u32 %v6926_v21, %v4952_v20  ;;  %v4940_v26 = vld [vmem:[%s10674_s3 + $0x48] sm:$0xf]  ;;  %v6923_v27 = vld [vmem:[%s10674_s3 + $0x50] sm:$0xf0]  ;;  %v6910_v28 = vld [vmem:[%s10673_s2 + $0xac] sm:$0xf]  ;;  %v4845_v32 = vor.u32 %v6899_v25, %v4844_v24 }
   0x8   :  { %220 = vmatpush.bf16.msra.mxu0 %v4881_v10  ;;  %v4894_v29 = vld [vmem:[%s10673_s2 + $0xb4] sm:$0xf0]  ;;  %v6907_v31 = vld [vmem:[%s10673_s2 + $0x94] sm:$0xf]  ;;  %v4882_v33 = vld [vmem:[%s10673_s2 + $0x9c] sm:$0xf0]  ;;  %v4941_v34 = vor.u32 %v6923_v27, %v4940_v26 }
   0x9   :  { %494 = vmatpush.bf16.msra.mxu3 %v4977_v11  ;;  %v4897_v30 = vor.u32 %v6910_v28, %v4894_v29  ;;  %v4832_v35 = vld [vmem:[%s10673_s2 + $0x30] sm:$0xf]  ;;  %v6896_v36 = vld [vmem:[%s10673_s2 + $0x38] sm:$0xf0]  ;;  %v4885_v38 = vor.u32 %v6907_v31, %v4882_v33  ;;  %v4870_v41 = vld [vmem:[%s10673_s2 + $0x84] sm:$0xf0] }
   0xa   :  { %v4928_v37 = vld [vmem:[%s10674_s3 + $0x30] sm:$0xf]  ;;  %v6920_v39 = vld [vmem:[%s10674_s3 + $0x38] sm:$0xf0]  ;;  %v4833_v42 = vor.u32 %v6896_v36, %v4832_v35  ;;  %v4820_v44 = vld [vmem:[%s10673_s2 + $0x18] sm:$0xf] }
   0xb   :  { %248 = vmatpush.bf16.msra.mxu1 %v4897_v30  ;;  %v6904_v40 = vld [vmem:[%s10673_s2 + $0x7c] sm:$0xf]  ;;  %v4929_v43 = vor.u32 %v6920_v39, %v4928_v37  ;;  %v6893_v45 = vld [vmem:[%s10673_s2 + $0x20] sm:$0xf0]  ;;  %v4916_v46 = vld [vmem:[%s10674_s3 + $0x18] sm:$0xf] }
   0xc   :  { %221 = vmatpush.bf16.msra.mxu0 %v4869_v16  ;;  %v4873_v47 = vor.u32 %v6904_v40, %v4870_v41  ;;  %v6917_v48 = vld [vmem:[%s10674_s3 + $0x20] sm:$0xf0]  ;;  %v4858_v50 = vld [vmem:[%s10673_s2 + $0x6c] sm:$0xf0]  ;;  %v6912_v52 = vld [vmem:[%s10673_s2 + $0xb8] sm:$0xf0]  ;;  %v4821_v53 = vor.u32 %v6893_v45, %v4820_v44 }
   0xd   :  { %495 = vmatpush.bf16.msra.mxu3 %v4965_v17  ;;  %v6901_v49 = vld [vmem:[%s10673_s2 + $0x64] sm:$0xf]  ;;  %v4900_v51 = vld [vmem:[%s10673_s2 + $0xb0] sm:$0xf]  ;;  %v4808_v54 = vld [vmem:[%s10673_s2] sm:$0xf]  ;;  %v4917_v58 = vor.u32 %v6917_v48, %v4916_v46 }
   0xe   :  { %v6890_v55 = vld [vmem:[%s10673_s2 + $0x8] sm:$0xf0]  ;;  %v4904_v56 = vld [vmem:[%s10674_s3] sm:$0xf]  ;;  %v4901_v57 = vor.u32 %v6912_v52, %v4900_v51  ;;  %v4990_v61 = vld [vmem:[%s10674_s3 + $0xb4] sm:$0xf0]  ;;  %v4861_v62 = vor.u32 %v6901_v49, %v4858_v50 }
   0xf   :  { %249 = vmatpush.bf16.msra.mxu1 %v4885_v38  ;;  %v6914_v59 = vld [vmem:[%s10674_s3 + $0x8] sm:$0xf0]  ;;  %v4996_v63 = vld [vmem:[%s10674_s3 + $0xb0] sm:$0xf]  ;;  %v6936_v0 = vld [vmem:[%s10674_s3 + $0xb8] sm:$0xf0]  ;;  %v4809_v5 = vor.u32 %v6890_v55, %v4808_v54 }
  0x10   :  { %222 = vmatpush.bf16.msra.mxu0 %v4857_v22  ;;  %v6934_v60 = vld [vmem:[%s10674_s3 + $0xac] sm:$0xf]  ;;  %277 = vmatpush.bf16.msra.mxu2 %v4901_v57  ;;  %v4888_v1 = vld [vmem:[%s10673_s2 + $0x98] sm:$0xf]  ;;  %v6909_v4 = vld [vmem:[%s10673_s2 + $0xa0] sm:$0xf0]  ;;  %v4905_v9 = vor.u32 %v6914_v59, %v4904_v56  ;;  %v4997_v11 = vor.u32 %v6936_v0, %v4996_v63 }
  0x11   :  { %496 = vmatpush.bf16.msra.mxu3 %v4953_v23  ;;  %v6898_v2 = vld [vmem:[%s10673_s2 + $0x4c] sm:$0xf]  ;;  %v4846_v3 = vld [vmem:[%s10673_s2 + $0x54] sm:$0xf0]  ;;  %v39_v6 = vld [vmem:[%s10675_s0] sm:$0xff]  ;;  %v4889_v8 = vor.u32 %v6909_v4, %v4888_v1  ;;  %v4993_v14 = vor.u32 %v6934_v60, %v4990_v61 }
  0x12   :  { %v40_v7 = vld [vmem:[%s10675_s0 + $0x8] sm:$0xff]  ;;  %v7708_v10 = vld [vmem:[%s10676_s1] sm:$0xff]  ;;  %v6931_v12 = vld [vmem:[%s10674_s3 + $0x94] sm:$0xf]  ;;  %v4849_v16 = vor.u32 %v6898_v2, %v4846_v3 }
  0x13   :  { %250 = vmatpush.bf16.msra.mxu1 %v4873_v47  ;;  %v4984_v13 = vld [vmem:[%s10674_s3 + $0x98] sm:$0xf]  ;;  %v6933_v15 = vld [vmem:[%s10674_s3 + $0xa0] sm:$0xf0]  ;;  %v4876_v17 = vld [vmem:[%s10673_s2 + $0x80] sm:$0xf]  ;;  %v7725_v19 = vpack.c.bf16 %v40_v7, %v39_v6  ;;  %v7738_v24 = vpack.c.bf16 %v7708_v10, %v7708_v10 }
  0x14   :  { %223 = vmatpush.bf16.msra.mxu0 %v4845_v32  ;;  %278 = vmatpush.bf16.msra.mxu2 %v4889_v8  ;;  %v6906_v18 = vld [vmem:[%s10673_s2 + $0x88] sm:$0xf0]  ;;  %v4978_v20 = vld [vmem:[%s10674_s3 + $0x9c] sm:$0xf0]  ;;  %v6895_v21 = vld [vmem:[%s10673_s2 + $0x34] sm:$0xf]  ;;  %v4985_v26 = vor.u32 %v6933_v15, %v4984_v13 }
  0x15   :  { %497 = vmatpush.bf16.msra.mxu3 %v4941_v34  ;;  %v4834_v22 = vld [vmem:[%s10673_s2 + $0x3c] sm:$0xf0]  ;;  %v4877_v23 = vor.u32 %v6906_v18, %v4876_v17  ;;  %v6928_v25 = vld [vmem:[%s10674_s3 + $0x7c] sm:$0xf]  ;;  %v4981_v28 = vor.u32 %v6931_v12, %v4978_v20  ;;  %v6930_v29 = vld [vmem:[%s10674_s3 + $0x88] sm:$0xf0] }
  0x16   :  { %v4972_v27 = vld [vmem:[%s10674_s3 + $0x80] sm:$0xf]  ;;  %v4837_v30 = vor.u32 %v6895_v21, %v4834_v22  ;;  %v4864_v31 = vld [vmem:[%s10673_s2 + $0x68] sm:$0xf]  ;;  %v6903_v32 = vld [vmem:[%s10673_s2 + $0x70] sm:$0xf0] }
  0x17   :  { %251 = vmatpush.bf16.msra.mxu1 %v4861_v62  ;;  %v4966_v33 = vld [vmem:[%s10674_s3 + $0x84] sm:$0xf0]  ;;  %v6892_v34 = vld [vmem:[%s10673_s2 + $0x1c] sm:$0xf]  ;;  %v4865_v36 = vor.u32 %v6903_v32, %v4864_v31  ;;  %v4852_v37 = vld [vmem:[%s10673_s2 + $0x50] sm:$0xf]  ;;  %v4973_v39 = vor.u32 %v6930_v29, %v4972_v27 }
  0x18   :  { %224 = vmatpush.bf16.msra.mxu0 %v4833_v42  ;;  %v4822_v35 = vld [vmem:[%s10673_s2 + $0x24] sm:$0xf0]  ;;  %279 = vmatpush.bf16.msra.mxu2 %v4877_v23  ;;  %v6900_v38 = vld [vmem:[%s10673_s2 + $0x58] sm:$0xf0]  ;;  %v4969_v40 = vor.u32 %v6928_v25, %v4966_v33  ;;  %v6925_v41 = vld [vmem:[%s10674_s3 + $0x64] sm:$0xf] }
  0x19   :  { %498 = vmatpush.bf16.msra.mxu3 %v4929_v43  ;;  %v4960_v42 = vld [vmem:[%s10674_s3 + $0x68] sm:$0xf]  ;;  %v6927_v43 = vld [vmem:[%s10674_s3 + $0x70] sm:$0xf0]  ;;  %v4825_v44 = vor.u32 %v6892_v34, %v4822_v35  ;;  %v4954_v45 = vld [vmem:[%s10674_s3 + $0x6c] sm:$0xf0]  ;;  %v4853_v48 = vor.u32 %v6900_v38, %v4852_v37 }
  0x1a   :  { %v6889_v46 = vld [vmem:[%s10673_s2 + $0x4] sm:$0xf]  ;;  %v4810_v47 = vld [vmem:[%s10673_s2 + $0xc] sm:$0xf0]  ;;  %v4840_v49 = vld [vmem:[%s10673_s2 + $0x38] sm:$0xf]  ;;  %v4961_v51 = vor.u32 %v6927_v43, %v4960_v42  ;;  %v4957_v52 = vor.u32 %v6925_v41, %v4954_v45 }
  0x1b   :  { %252 = vmatpush.bf16.msra.mxu1 %v4849_v16  ;;  %v6897_v50 = vld [vmem:[%s10673_s2 + $0x40] sm:$0xf0]  ;;  %v4948_v54 = vld [vmem:[%s10674_s3 + $0x50] sm:$0xf]  ;;  %v6924_v55 = vld [vmem:[%s10674_s3 + $0x58] sm:$0xf0] }
  0x1c   :  { %225 = vmatpush.bf16.msra.mxu0 %v4821_v53  ;;  %280 = vmatpush.bf16.msra.mxu2 %v4865_v36  ;;  %v4813_v53 = vor.u32 %v6889_v46, %v4810_v47  ;;  %v6922_v56 = vld [vmem:[%s10674_s3 + $0x4c] sm:$0xf]  ;;  %v4942_v57 = vld [vmem:[%s10674_s3 + $0x54] sm:$0xf0]  ;;  %v4841_v59 = vor.u32 %v6897_v50, %v4840_v49  ;;  %v4828_v61 = vld [vmem:[%s10673_s2 + $0x20] sm:$0xf]  ;;  %v4949_v63 = vor.u32 %v6924_v55, %v4948_v54 }
  0x1d   :  { %499 = vmatpush.bf16.msra.mxu3 %v4917_v58  ;;  %v41_v58 = vld [vmem:[%s10675_s0 + $0x10] sm:$0xff]  ;;  %v42_v60 = vld [vmem:[%s10675_s0 + $0x18] sm:$0xff]  ;;  %v6894_v62 = vld [vmem:[%s10673_s2 + $0x28] sm:$0xf0]  ;;  %v4945_v0 = vor.u32 %v6922_v56, %v4942_v57 }
  0x1e   :  { %v4936_v1 = vld [vmem:[%s10674_s3 + $0x38] sm:$0xf]  ;;  %v6921_v2 = vld [vmem:[%s10674_s3 + $0x40] sm:$0xf0]  ;;  %v80_v3 = vpack.c.bf16 %v42_v60, %v41_v58  ;;  %v6919_v4 = vld [vmem:[%s10674_s3 + $0x34] sm:$0xf]  ;;  %v4829_v6 = vor.u32 %v6894_v62, %v4828_v61 }
  0x1f   :  { %253 = vmatpush.bf16.msra.mxu1 %v4837_v30  ;;  %v4937_v7 = vor.u32 %v6921_v2, %v4936_v1  ;;  %v6891_v12 = vld [vmem:[%s10673_s2 + $0x10] sm:$0xf0]  ;;  %v4918_v13 = vld [vmem:[%s10674_s3 + $0x24] sm:$0xf0]  ;;  %v6918_v15 = vld [vmem:[%s10674_s3 + $0x28] sm:$0xf0] }
  0x20   :  { %226 = vmatpush.bf16.msra.mxu0 %v4809_v5  ;;  %281 = vmatpush.bf16.msra.mxu2 %v4853_v48  ;;  %v4930_v5 = vld [vmem:[%s10674_s3 + $0x3c] sm:$0xf0]  ;;  %v4912_v20 = vld [vmem:[%s10674_s3 + $0x8] sm:$0xf]  ;;  %v6915_v21 = vld [vmem:[%s10674_s3 + $0x10] sm:$0xf0] }
  0x21   :  { %500 = vmatpush.bf16.msra.mxu3 %v4905_v9  ;;  %v4933_v8 = vor.u32 %v6919_v4, %v4930_v5  ;;  %v6916_v9 = vld [vmem:[%s10674_s3 + $0x1c] sm:$0xf]  ;;  %v6913_v22 = vld [vmem:[%s10674_s3 + $0x4] sm:$0xf]  ;;  %v4906_v23 = vld [vmem:[%s10674_s3 + $0xc] sm:$0xf0]  ;;  %v4913_v25 = vor.u32 %v6915_v21, %v4912_v20 }
  0x22   :  { %v4921_v18 = vor.u32 %v6916_v9, %v4918_v13  ;;  %v43_v27 = vld [vmem:[%s10675_s0 + $0x20] sm:$0xff]  ;;  %v46_v30 = vld [vmem:[%s10675_s0 + $0x38] sm:$0xff]  ;;  %v5086_v32 = vld [vmem:[%s10674_s3 + $0xa8] sm:$0xf] }
  0x23   :  { %227 = vmatmul.bf16.vlgmr.msra.gmra.mxu0 %v7725_v19  ;;  %254 = vmatpush.bf16.msra.mxu1 %v4825_v44  ;;  %v6959_v33 = vld [vmem:[%s10674_s3 + $0xb0] sm:$0xf0]  ;;  %v6958_v35 = vld [vmem:[%s10674_s3 + $0xac] sm:$0xf]  ;;  %v5088_v36 = vld [vmem:[%s10674_s3 + $0xb4] sm:$0xf0] }
  0x24   :  { %519 = vmatpush.bf16.msrb.mxu0 %v4997_v11  ;;  %501 = vmatmul.bf16.vlgmr.msra.gmra.mxu3 %v7738_v24  ;;  %v4816_v11 = vld [vmem:[%s10673_s2 + $0x8] sm:$0xf]  ;;  %v5087_v34 = vor.u32 %v6959_v33, %v5086_v32  ;;  %v5091_v37 = vor.u32 %v6958_v35, %v5088_v36  ;;  %v6956_v38 = vld [vmem:[%s10674_s3 + $0x98] sm:$0xf0]  ;;  %v7899_v41 = vld [vmem:[%s10678_s4] sm:$0x7] }
  0x25   :  { %506 = vmatpush.bf16.msrb.mxu3 %v4993_v14  ;;  %282 = vmatpush.bf16.msra.mxu2 %v4841_v59  ;;  %v4924_v14 = vld [vmem:[%s10674_s3 + $0x20] sm:$0xf]  ;;  %v4817_v16 = vor.u32 %v6891_v12, %v4816_v11  ;;  %v7904_v44 = vperm.slane %v7899_v41, 0  ;;  %v6955_v55 = vld [vmem:[%s10674_s3 + $0x94] sm:$0xf]  ;;  %v7931_v61 = vperm.slane %v7899_v41, 1 }
  0x26   :  { %v4925_v17 = vor.u32 %v6918_v15, %v4924_v14  ;;  %v5076_v56 = vld [vmem:[%s10674_s3 + $0x9c] sm:$0xf0]  ;;  %v5082_v57 = vld [vmem:[%s10674_s3 + $0x98] sm:$0xf]  ;;  %v6957_v59 = vld [vmem:[%s10674_s3 + $0xa0] sm:$0xf0] }
  0x27   :  { %255 = vmatpush.bf16.msra.mxu1 %v4813_v53  ;;  %v5079_v58 = vor.u32 %v6955_v55, %v5076_v56  ;;  %v5083_v60 = vor.u32 %v6957_v59, %v5082_v57  ;;  %v6952_v1 = vld [vmem:[%s10674_s3 + $0x7c] sm:$0xf]  ;;  %v5064_v4 = vld [vmem:[%s10674_s3 + $0x84] sm:$0xf0]  ;;  %v5050_v5 = vld [vmem:[%s10674_s3 + $0x60] sm:$0xf] }
  0x28   :  { %520 = vmatpush.bf16.msrb.mxu0 %v4985_v26  ;;  %v4909_v26 = vor.u32 %v6913_v22, %v4906_v23  ;;  %v5052_v9 = vld [vmem:[%s10674_s3 + $0x6c] sm:$0xf0]  ;;  %v6946_v20 = vld [vmem:[%s10674_s3 + $0x4c] sm:$0xf]  ;;  %v5040_v21 = vld [vmem:[%s10674_s3 + $0x54] sm:$0xf0] }
  0x29   :  { %507 = vmatpush.bf16.msrb.mxu3 %v4981_v28  ;;  %283 = vmatpush.bf16.msra.mxu2 %v4829_v6  ;;  %v44_v28 = vld [vmem:[%s10675_s0 + $0x28] sm:$0xff]  ;;  %v5070_v22 = vld [vmem:[%s10674_s3 + $0x80] sm:$0xf]  ;;  %v5026_v32 = vld [vmem:[%s10674_s3 + $0x30] sm:$0xf] }
  0x2a   :  { %256 = vmatmul.bf16.vlgmr.msra.gmra.mxu1 %v7725_v19  ;;  %v81_v29 = vpack.c.bf16 %v44_v28, %v43_v27  ;;  %v6950_v6 = vld [vmem:[%s10674_s3 + $0x68] sm:$0xf0]  ;;  %v5058_v28 = vld [vmem:[%s10674_s3 + $0x68] sm:$0xf]  ;;  %v6944_v33 = vld [vmem:[%s10674_s3 + $0x38] sm:$0xf0] }
  0x2b   :  { %749 = vmatpush.bf16.msrb.mxu1 %v5087_v34  ;;  %v5051_v13 = vor.u32 %v6950_v6, %v5050_v5  ;;  %v6954_v23 = vld [vmem:[%s10674_s3 + $0x88] sm:$0xf0]  ;;  %v6940_v55 = vld [vmem:[%s10674_s3 + $0x1c] sm:$0xf] }
  0x2c   :  { %521 = vmatpush.bf16.msrb.mxu0 %v4973_v39 }
  0x2d   :  { %508 = vmatpush.bf16.msrb.mxu3 %v4969_v40  ;;  %284 = vmatpush.bf16.msra.mxu2 %v4817_v16 }
  0x30   :  { %522 = vmatpush.bf16.msrb.mxu0 %v4961_v51  ;;  %285 = vmatmul.bf16.vlgmr.msra.gmra.mxu2 %v7725_v19  ;;  %v45_v19 = vld [vmem:[%s10675_s0 + $0x30] sm:$0xff] }
  0x31   :  { %509 = vmatpush.bf16.msrb.mxu3 %v4957_v52  ;;  %v82_v31 = vpack.c.bf16 %v46_v30, %v45_v19  ;;  %762 = vmatpush.bf16.msrb.mxu2 %v5091_v37  ;;  %v5094_v51 = vld [vmem:[%s10674_s3 + $0xb0] sm:$0xf]  ;;  %v6960_v52 = vld [vmem:[%s10674_s3 + $0xb8] sm:$0xf0] }
  0x32   :  { %v5095_v53 = vor.u32 %v6960_v52, %v5094_v51  ;;  %v5046_v37 = vld [vmem:[%s10674_s3 + $0x50] sm:$0xf]  ;;  %v5014_v51 = vld [vmem:[%s10674_s3 + $0x18] sm:$0xf]  ;;  %v6941_v52 = vld [vmem:[%s10674_s3 + $0x20] sm:$0xf0] }
  0x33   :  { %232 = vmatmul.bf16.gmra.mxu0 %v80_v3  ;;  %v5015_v59 = vor.u32 %v6941_v52, %v5014_v51 }
  0x34   :  { %523 = vmatpush.bf16.msrb.mxu0 %v4949_v63  ;;  %v5062_v63 = vld [vmem:[%s10674_s3 + $0x78] sm:$0xf] }
  0x35   :  { %510 = vmatpush.bf16.msrb.mxu3 %v4945_v0  ;;  %763 = vmatpush.bf16.msrb.mxu2 %v5079_v58  ;;  %v6953_v0 = vld [vmem:[%s10674_s3 + $0x80] sm:$0xf0] }
  0x38   :  { %524 = vmatpush.bf16.msrb.mxu0 %v4937_v7  ;;  %v5067_v7 = vor.u32 %v6952_v1, %v5064_v4  ;;  %v6942_v4 = vld [vmem:[%s10674_s3 + $0x28] sm:$0xf0] }
  0x39   :  { %511 = vmatpush.bf16.msrb.mxu3 %v4933_v8  ;;  %v6949_v8 = vld [vmem:[%s10674_s3 + $0x64] sm:$0xf] }
  0x3a   :  { %261 = vmatmul.bf16.gmra.mxu1 %v80_v3  ;;  %764 = vmatpush.bf16.msrb.mxu2 %v5067_v7  ;;  %v5055_v16 = vor.u32 %v6949_v8, %v5052_v9  ;;  %v6937_v8 = vld [vmem:[%s10674_s3 + $0x4] sm:$0xf]  ;;  %v5004_v9 = vld [vmem:[%s10674_s3 + $0xc] sm:$0xf0] }
  0x3c   :  { %525 = vmatpush.bf16.msrb.mxu0 %v4925_v17  ;;  %v5038_v17 = vld [vmem:[%s10674_s3 + $0x48] sm:$0xf] }
  0x3d   :  { %512 = vmatpush.bf16.msrb.mxu3 %v4921_v18  ;;  %v6947_v18 = vld [vmem:[%s10674_s3 + $0x50] sm:$0xf0] }
  0x3e   :  { %v5039_v27 = vor.u32 %v6947_v18, %v5038_v17  ;;  %765 = vmatpush.bf16.msrb.mxu2 %v5055_v16  ;;  %v5007_v16 = vor.u32 %v6937_v8, %v5004_v9  ;;  %v8062_v18 = vperm.slane %v7899_v41, 2  ;;  %v5186_v9 = vld [vmem:[%s10674_s3 + $0xb4] sm:$0xf0] }
  0x40   :  { %526 = vmatpush.bf16.msrb.mxu0 %v4913_v25  ;;  %290 = vmatmul.bf16.gmra.mxu2 %v80_v3  ;;  %v5063_v3 = vor.u32 %v6953_v0, %v5062_v63  ;;  %v5071_v25 = vor.u32 %v6954_v23, %v5070_v22  ;;  %v6938_v63 = vld [vmem:[%s10674_s3 + $0x8] sm:$0xf0] }
  0x41   :  { %513 = vmatpush.bf16.msrb.mxu3 %v4909_v26 }
  0x43   :  { %237 = vmatmul.bf16.gmra.mxu0 %v81_v29 }
  0x44   :  { %514 = vmatmul.bf16.vlgmr.msrb.gmra.mxu3 %v7738_v24 }
  0x45   :  { %775 = vmatpush.bf16.msra.mxu3 %v5095_v53 }
  0x49   :  { %776 = vmatpush.bf16.msra.mxu3 %v5083_v60  ;;  %v5016_v60 = vld [vmem:[%s10674_s3 + $0x24] sm:$0xf0] }
  0x4a   :  { %266 = vmatmul.bf16.gmra.mxu1 %v81_v29 }
  0x4d   :  { %777 = vmatpush.bf16.msra.mxu3 %v5071_v25 }
  0x50   :  { %295 = vmatmul.bf16.gmra.mxu2 %v81_v29  ;;  %v6951_v29 = vld [vmem:[%s10674_s3 + $0x70] sm:$0xf0] }
  0x51   :  { %v5059_v34 = vor.u32 %v6951_v29, %v5058_v28  ;;  %v8078_v29 = vld [vmem:[%s10677_s5] ss:$0 sm:$0xff] }
  0x53   :  { %242 = vmatmul.bf16.gmra.mxu0 %v82_v31  ;;  %778 = vmatpush.bf16.msra.mxu3 %v5059_v34 }
  0x5a   :  { %271 = vmatmul.bf16.gmra.mxu1 %v82_v31 }
  0x60   :  { %300 = vmatmul.bf16.gmra.mxu2 %v82_v31  ;;  %v5043_v31 = vor.u32 %v6946_v20, %v5040_v21 }
  0x62   :  { %766 = vmatpush.bf16.msrb.mxu2 %v5043_v31 }
  0x63   :  { %527 = vmatmul.bf16.vlgmr.msrb.gmra.mxu0 %v7738_v24  ;;  %v5074_v24 = vld [vmem:[%s10674_s3 + $0x90] sm:$0xf] }
  0x64   :  { %v5075_v39 = vor.u32 %v6956_v38, %v5074_v24  ;;  %v5027_v24 = vor.u32 %v6944_v33, %v5026_v32  ;;  %v6948_v38 = vld [vmem:[%s10674_s3 + $0x58] sm:$0xf0] }
  0x66   :  { %750 = vmatpush.bf16.msrb.mxu1 %v5075_v39  ;;  %v5047_v39 = vor.u32 %v6948_v38, %v5046_v37 }
  0x68   :  { %779 = vmatpush.bf16.msra.mxu3 %v5047_v39 }
  0x6a   :  { %751 = vmatpush.bf16.msrb.mxu1 %v5063_v3  ;;  %v5022_v3 = vld [vmem:[%s10674_s3 + $0x20] sm:$0xf] }
  0x6b   :  { %v5023_v7 = vor.u32 %v6942_v4, %v5022_v3  ;;  %v5184_v4 = vld [vmem:[%s10674_s3 + $0xa8] sm:$0xf] }
  0x6e   :  { %752 = vmatpush.bf16.msrb.mxu1 %v5051_v13  ;;  %v6939_v13 = vld [vmem:[%s10674_s3 + $0x10] sm:$0xf0] }
  0x72   :  { %753 = vmatpush.bf16.msrb.mxu1 %v5039_v27 }
  0x76   :  { %754 = vmatpush.bf16.msrb.mxu1 %v5027_v24 }
  0x7a   :  { %755 = vmatpush.bf16.msrb.mxu1 %v5015_v59 }
  0xa0   :  { %v228_v40 = vpop.f32.mrf.mxu0 }
  0xa1   :  { %v229_v45 = vadd.f32 %v228_v40, %v7904_v44 }
  0xa7   :  { %v502_v42 = vpop.f32.mrf.mxu3  ;;  %v257_v2 = vpop.f32.mrf.mxu1 }
  0xa8   :  { %v7901_v43 = vpop.f32.mrf.mxu0  ;;  %v535_v46 = vadd.f32 %v502_v42, %v229_v45  ;;  %v258_v15 = vadd.f32 %v257_v2, %v7931_v61  ;;  %v6943_v45 = vld [vmem:[%s10674_s3 + $0x34] sm:$0xf]  ;;  %v5019_v2 = vor.u32 %v6940_v55, %v5016_v60 }
  0xaa   :  { %v4998_v50 = vmul.f32 -1.442695, %v535_v46  ;;  %v5028_v46 = vld [vmem:[%s10674_s3 + $0x3c] sm:$0xf0] }
  0xac   :  { %7332 = vpow2.f32 %v4998_v50  ;;  %v6945_v50 = vld [vmem:[%s10674_s3 + $0x40] sm:$0xf0] }
  0xaf   :  { %v504_v47 = vpop.f32.mrf.mxu3 }
  0xb0   :  { %v233_v48 = vpop.f32.mrf.mxu0  ;;  %v5034_v47 = vld [vmem:[%s10674_s3 + $0x38] sm:$0xf] }
  0xb1   :  { %v7908_v49 = vadd.f32 %v233_v48, %v7904_v44  ;;  %v5031_v48 = vor.u32 %v6943_v45, %v5028_v46  ;;  %v5035_v53 = vor.u32 %v6945_v50, %v5034_v47 }
  0xb2   :  { %v7333_v62 = vpop.eup %7332 }
  0xb3   :  { %v7957_v11 = vadd.f32 1.0, %v7333_v62  ;;  %v7987_v30 = vpop.f32.mrf.mxu2  ;;  %767 = vmatpush.bf16.msrb.mxu2 %v5031_v48  ;;  %v5002_v62 = vld [vmem:[%s10674_s3] sm:$0xf]  ;;  %780 = vmatpush.bf16.msra.mxu3 %v5035_v53 }
  0xb4   :  { %v5003_v6 = vor.u32 %v6938_v63, %v5002_v62  ;;  %v8099_v63 = vpop.f32.mrf.mxu1 }
  0xb5   :  { %7334 = vrcp.f32 %v7957_v11  ;;  %v556_v28 = vand.u32 2147483648, %v7957_v11  ;;  %vm550_vm1 = vweird.f32 %v7957_v11  ;;  %v554_v41 = vand.u32 2147483647, %v7957_v11 }
  0xb6   :  { %756 = vmatpush.bf16.msrb.mxu1 %v5003_v6  ;;  %v6983_v6 = vld [vmem:[%s10674_s3 + $0xb0] sm:$0xf0] }
  0xb7   :  { %768 = vmatpush.bf16.msrb.mxu2 %v5019_v2  ;;  %781 = vmatpush.bf16.msra.mxu3 %v5023_v7  ;;  %v557_v34 = vor.u32 1.1754944e-38, %v556_v28  ;;  %vm555_vm3 = vcmp.eq.f32.partialorder %v554_v41, 8.507059e+37  ;;  %v6982_v7 = vld [vmem:[%s10674_s3 + $0xac] sm:$0xf]  ;;  %v5185_v8 = vor.u32 %v6983_v6, %v5184_v4  ;;  %v5180_v28 = vld [vmem:[%s10674_s3 + $0x98] sm:$0xf] }
  0xb8   :  { %v7916_v54 = vpop.f32.mrf.mxu0  ;;  %v6981_v41 = vld [vmem:[%s10674_s3 + $0xa0] sm:$0xf0]  ;;  %v5136_v6 = vld [vmem:[%s10674_s3 + $0x48] sm:$0xf] }
  0xb9   :  { %1004 = vmatpush.bf16.msra.mxu0 %v5185_v8  ;;  %v6970_v8 = vld [vmem:[%s10674_s3 + $0x4c] sm:$0xf] }
  0xbb   :  { %v8004_v40 = vpop.eup %7334  ;;  %v8029_v58 = vpop.f32.mrf.mxu2  ;;  %769 = vmatpush.bf16.msrb.mxu2 %v5007_v16 }
  0xbc   :  { %v546_v57 = vmul.f32 %v8004_v40, %v7957_v11  ;;  %vm551_vm0 = vweird.f32 %v8004_v40 }
  0xbd   :  { %vm552_vm2 = vmor %vm550_vm1, %vm551_vm0 }
  0xc0   :  { %v238_v12 = vpop.f32.mrf.mxu0 }
  0xc1   :  { %v7960_v14 = vadd.f32 %v238_v12, %v7904_v44  ;;  %v5010_v12 = vld [vmem:[%s10674_s3 + $0x8] sm:$0xf] }
  0xc2   :  { %v5011_v17 = vor.u32 %v6939_v13, %v5010_v12  ;;  %v5192_v12 = vld [vmem:[%s10674_s3 + $0xb0] sm:$0xf]  ;;  %v6984_v13 = vld [vmem:[%s10674_s3 + $0xb8] sm:$0xf0] }
  0xc3   :  { %v291_v21 = vpop.f32.mrf.mxu2  ;;  %v5193_v16 = vor.u32 %v6984_v13, %v5192_v12  ;;  %v5138_v13 = vld [vmem:[%s10674_s3 + $0x54] sm:$0xf0] }
  0xc4   :  { %v8068_v23 = vadd.f32 %v291_v21, %v8062_v18  ;;  %782 = vmatpush.bf16.msra.mxu3 %v5011_v17  ;;  %v6980_v21 = vld [vmem:[%s10674_s3 + $0x98] sm:$0xf0] }
  0xc5   :  { %1030 = vmatpush.bf16.msra.mxu2 %v5193_v16  ;;  %v6972_v16 = vld [vmem:[%s10674_s3 + $0x58] sm:$0xf0] }
  0xc7   :  { %v515_v26 = vpop.f32.mrf.mxu3 }
  0xc8   :  { %v536_v19 = vadd.f32 %v515_v26, %v258_v15  ;;  %v7996_v36 = vpop.f32.mrf.mxu0  ;;  %v547_v15 = vsub.f32 1.0, %v546_v57 }
  0xca   :  { %v4999_v35 = vmul.f32 -1.442695, %v536_v19  ;;  %v548_v20 = vmul.f32 %v8004_v40, %v547_v15  ;;  %v5189_v15 = vor.u32 %v6982_v7, %v5186_v9  ;;  %v6971_v7 = vld [vmem:[%s10674_s3 + $0x50] sm:$0xf0]  ;;  %v260_v9 = vadd.f32 %v8099_v63, %v7931_v61 }
  0xcb   :  { %v8081_v31 = vpop.f32.mrf.mxu2  ;;  %v5137_v12 = vor.u32 %v6971_v7, %v5136_v6  ;;  %v5108_v6 = vld [vmem:[%s10674_s3 + $0x8] sm:$0xf] }
  0xcc   :  { %7336 = vpow2.f32 %v4999_v35  ;;  %v549_v26 = vadd.f32 %v8004_v40, %v548_v20  ;;  %v287_v35 = vadd.f32 %v7987_v30, %v8062_v18  ;;  %1017 = vmatpush.bf16.msra.mxu1 %v5189_v15  ;;  %v5172_v20 = vld [vmem:[%s10674_s3 + $0x90] sm:$0xf] }
  0xcd   :  { %v5144_v15 = vld [vmem:[%s10674_s3 + $0x50] sm:$0xf] }
  0xce   :  { %v553_v19 = vsel %vm552_vm2, %v8004_v40, %v549_v26  ;;  %v5173_v26 = vor.u32 %v6980_v21, %v5172_v20  ;;  %v5141_v21 = vor.u32 %v6970_v8, %v5138_v13 }
  0xcf   :  { %v517_v42 = vpop.f32.mrf.mxu3  ;;  %v558_v11 = vsel %vm555_vm3, %v557_v34, %v553_v19  ;;  %v5160_v34 = vld [vmem:[%s10674_s3 + $0x78] sm:$0xf] }
  0xd0   :  { %v243_v1 = vpop.f32.mrf.mxu0  ;;  %1005 = vmatpush.bf16.msra.mxu0 %v5173_v26 }
  0xd1   :  { %v8047_v5 = vadd.f32 %v243_v1, %v7904_v44 }
  0xd2   :  { %v7337_v56 = vpop.eup %7336 }
  0xd3   :  { %v544_v0 = vadd.f32 1.0, %v7337_v56  ;;  %v296_v40 = vpop.f32.mrf.mxu2 }
  0xd4   :  { %v8087_v48 = vadd.f32 %v296_v40, %v8062_v18 }
  0xd5   :  { %7338 = vrcp.f32 %v544_v0  ;;  %vm565_vm4 = vweird.f32 %v544_v0  ;;  %v571_v42 = vand.u32 2147483648, %v544_v0  ;;  %v569_v47 = vand.u32 2147483647, %v544_v0 }
  0xd7   :  { %v572_v30 = vor.u32 1.1754944e-38, %v571_v42  ;;  %vm570_vm7 = vcmp.eq.f32.partialorder %v569_v47, 8.507059e+37  ;;  %v5148_v47 = vld [vmem:[%s10674_s3 + $0x60] sm:$0xf] }
  0xd8   :  { %v8065_v22 = vpop.f32.mrf.mxu0 }
  0xdb   :  { %v7339_v25 = vpop.eup %7338  ;;  %v8090_v55 = vpop.f32.mrf.mxu2 }
  0xdc   :  { %v561_v27 = vmul.f32 %v7339_v25, %v544_v0  ;;  %vm566_vm5 = vweird.f32 %v7339_v25  ;;  %v8101_v0 = vpop.f32.mrf.mxu1 }
  0xdd   :  { %vm567_vm6 = vmor %vm565_vm4, %vm566_vm5 }
  0xde   :  { %v562_v32 = vsub.f32 1.0, %v561_v27  ;;  %v5174_v27 = vld [vmem:[%s10674_s3 + $0x9c] sm:$0xf0] }
  0xe0   :  { %v528_v33 = vpop.f32.mrf.mxu0  ;;  %v563_v38 = vmul.f32 %v7339_v25, %v562_v32  ;;  %v5181_v32 = vor.u32 %v6981_v41, %v5180_v28  ;;  %v5124_v28 = vld [vmem:[%s10674_s3 + $0x30] sm:$0xf]  ;;  %v6968_v41 = vld [vmem:[%s10674_s3 + $0x38] sm:$0xf0] }
  0xe1   :  { %v578_v24 = vadd.f32 %v8078_v29, %v528_v33 }
  0xe2   :  { %v564_v46 = vadd.f32 %v7339_v25, %v563_v38  ;;  %1031 = vmatpush.bf16.msra.mxu2 %v5181_v32  ;;  %v5168_v38 = vld [vmem:[%s10674_s3 + $0x80] sm:$0xf] }
  0xe3   :  { %v579_v37 = vmul.f32 %v578_v24, %v558_v11  ;;  %v301_v60 = vpop.f32.mrf.mxu2  ;;  %v6976_v24 = vld [vmem:[%s10674_s3 + $0x7c] sm:$0xf] }
  0xe4   :  { %v568_v50 = vsel %vm567_vm6, %v7339_v25, %v564_v46  ;;  %v8097_v62 = vadd.f32 %v301_v60, %v8062_v18  ;;  %v6979_v25 = vld [vmem:[%s10674_s3 + $0x94] sm:$0xf] }
  0xe5   :  { %v580_v39 = vadd.f32 %v579_v37, %v287_v35  ;;  %v573_v53 = vsel %vm570_vm7, %v572_v30, %v568_v50  ;;  %v5177_v19 = vor.u32 %v6979_v25, %v5174_v27  ;;  %v6977_v35 = vld [vmem:[%s10674_s3 + $0x80] sm:$0xf0]  ;;  %v5162_v37 = vld [vmem:[%s10674_s3 + $0x84] sm:$0xf0]  ;;  %v6974_v30 = vld [vmem:[%s10674_s3 + $0x68] sm:$0xf0]  ;;  %v5145_v25 = vor.u32 %v6972_v16, %v5144_v15 }
  0xe6   :  { %v5161_v11 = vor.u32 %v6977_v35, %v5160_v34  ;;  %v5165_v42 = vor.u32 %v6976_v24, %v5162_v37  ;;  %v6973_v50 = vld [vmem:[%s10674_s3 + $0x64] sm:$0xf]  ;;  %v5125_v34 = vor.u32 %v6968_v41, %v5124_v28  ;;  %v5126_v35 = vld [vmem:[%s10674_s3 + $0x3c] sm:$0xf0]  ;;  %v5132_v24 = vld [vmem:[%s10674_s3 + $0x38] sm:$0xf] }
  0xe7   :  { %7340 = vtanh.f32 %v580_v39  ;;  %1018 = vmatpush.bf16.msra.mxu1 %v5177_v19  ;;  %v6978_v39 = vld [vmem:[%s10674_s3 + $0x88] sm:$0xf0]  ;;  %v6967_v19 = vld [vmem:[%s10674_s3 + $0x34] sm:$0xf]  ;;  %v6969_v37 = vld [vmem:[%s10674_s3 + $0x40] sm:$0xf0] }
  0xe8   :  { %v530_v45 = vpop.f32.mrf.mxu0  ;;  %v5169_v40 = vor.u32 %v6978_v39, %v5168_v38  ;;  %1006 = vmatpush.bf16.msra.mxu0 %v5161_v11  ;;  %v5129_v11 = vor.u32 %v6967_v19, %v5126_v35  ;;  %v5112_v38 = vld [vmem:[%s10674_s3 + $0x18] sm:$0xf]  ;;  %v6965_v39 = vld [vmem:[%s10674_s3 + $0x20] sm:$0xf0] }
  0xe9   :  { %v231_v45 = vadd.f32 %v7901_v43, %v7904_v44  ;;  %v5150_v43 = vld [vmem:[%s10674_s3 + $0x6c] sm:$0xf0] }
  0xea   :  { %1032 = vmatpush.bf16.msra.mxu2 %v5169_v40  ;;  %v5133_v40 = vor.u32 %v6969_v37, %v5132_v24 }
  0xeb   :  { %v8149_v33 = vpop.f32.mrf.mxu2  ;;  %1019 = vmatpush.bf16.msra.mxu1 %v5165_v42 }
  0xed   :  { %v7341_v51 = vpop.eup %7340 }
  0xee   :  { %v582_v52 = vsub.f32 %v7708_v10, %v7341_v51  ;;  %v8103_v10 = vpop.f32.mrf.mxu1 }
  0xf0   :  { %v583_v56 = vmul.f32 %v582_v52, %v573_v53  ;;  %v5149_v52 = vor.u32 %v6974_v30, %v5148_v47  ;;  %v5156_v53 = vld [vmem:[%s10674_s3 + $0x68] sm:$0xf]  ;;  %v5120_v30 = vld [vmem:[%s10674_s3 + $0x20] sm:$0xf] }
  0xf1   :  { %v5114_v47 = vld [vmem:[%s10674_s3 + $0x24] sm:$0xf0] }
  0xf2   :  { %v8092_v57 = vadd.f32 %v7341_v51, %v583_v56  ;;  %v6975_v56 = vld [vmem:[%s10674_s3 + $0x70] sm:$0xf0]  ;;  %1007 = vmatpush.bf16.msra.mxu0 %v5149_v52  ;;  %v6966_v52 = vld [vmem:[%s10674_s3 + $0x28] sm:$0xf0] }
  0xf3   :  { %v5157_v60 = vor.u32 %v6975_v56, %v5156_v53  ;;  %v5121_v53 = vor.u32 %v6966_v52, %v5120_v30  ;;  %v6962_v56 = vld [vmem:[%s10674_s3 + $0x8] sm:$0xf0] }
  0xf4   :  { %v588_v59 = vpack.c.bf16 %v8092_v57, %v8092_v57 }
  0xf5   :  { %1033 = vmatpush.bf16.msra.mxu2 %v5157_v60  ;;  %v5102_v60 = vld [vmem:[%s10674_s3 + $0xc] sm:$0xf0] }
  0xf6   :  { %757 = vmatmul.bf16.vlgmr.msrb.gmra.mxu1 %v588_v59  ;;  %770 = vmatmul.bf16.vlgmr.msrb.gmra.mxu2 %v588_v59  ;;  %v8105_v1 = vpop.f32.mrf.mxu1 }
  0xf7   :  { %783 = vmatmul.bf16.vlgmr.msra.gmra.mxu3 %v588_v59  ;;  %v5153_v59 = vor.u32 %v6973_v50, %v5150_v43  ;;  %1008 = vmatpush.bf16.msra.mxu0 %v5137_v12  ;;  %v5100_v43 = vld [vmem:[%s10674_s3] sm:$0xf] }
  0xf8   :  { %v5101_v8 = vor.u32 %v6962_v56, %v5100_v43  ;;  %v5282_v56 = vld [vmem:[%s10674_s3 + $0xa8] sm:$0xf] }
  0xf9   :  { %1020 = vmatpush.bf16.msra.mxu1 %v5153_v59  ;;  %1034 = vmatpush.bf16.msra.mxu2 %v5145_v25  ;;  %v6961_v59 = vld [vmem:[%s10674_s3 + $0x4] sm:$0xf] }
  0xfa   :  { %v5105_v12 = vor.u32 %v6961_v59, %v5102_v60  ;;  %v7007_v59 = vld [vmem:[%s10674_s3 + $0xb0] sm:$0xf0]  ;;  %v7006_v60 = vld [vmem:[%s10674_s3 + $0xac] sm:$0xf] }
  0xfb   :  { %1009 = vmatpush.bf16.msra.mxu0 %v5125_v34 }
  0xfd   :  { %1021 = vmatpush.bf16.msra.mxu1 %v5141_v21  ;;  %1035 = vmatpush.bf16.msra.mxu2 %v5133_v40 }
  0xfe   :  { %v8107_v2 = vpop.f32.mrf.mxu1 }
 0x101   :  { %1022 = vmatpush.bf16.msra.mxu1 %v5129_v11  ;;  %1036 = vmatpush.bf16.msra.mxu2 %v5121_v53 }
 0x106   :  { %v8109_v3 = vpop.f32.mrf.mxu1 }
 0x10e   :  { %v8129_v17 = vpop.f32.mrf.mxu1 }
 0x173   :  { %v758_v46 = vpop.f32.mrf.mxu1 }
 0x174   :  { %v792_v51 = vadd.f32 %v758_v46, %v231_v45  ;;  %v5113_v45 = vor.u32 %v6965_v39, %v5112_v38  ;;  %v6964_v46 = vld [vmem:[%s10674_s3 + $0x1c] sm:$0xf]  ;;  %v289_v38 = vadd.f32 %v8029_v58, %v8062_v18 }
 0x176   :  { %v5096_v4 = vmul.f32 -1.442695, %v792_v51  ;;  %v5117_v51 = vor.u32 %v6964_v46, %v5114_v47  ;;  %1010 = vmatpush.bf16.msra.mxu0 %v5113_v45 }
 0x178   :  { %7342 = vpow2.f32 %v5096_v4  ;;  %1023 = vmatpush.bf16.msra.mxu1 %v5117_v51 }
 0x179   :  { %v771_v20 = vpop.f32.mrf.mxu2 }
 0x17a   :  { %v793_v26 = vadd.f32 %v771_v20, %v260_v9  ;;  %v8209_v27 = vpop.f32.mrf.mxu3  ;;  %v6963_v9 = vld [vmem:[%s10674_s3 + $0x10] sm:$0xf0]  ;;  %1011 = vmatpush.bf16.msra.mxu0 %v5101_v8  ;;  %v7008_v8 = vld [vmem:[%s10674_s3 + $0xb8] sm:$0xf0] }
 0x17b   :  { %v760_v63 = vpop.f32.mrf.mxu1  ;;  %v5109_v15 = vor.u32 %v6963_v9, %v5108_v6  ;;  %v832_v11 = vadd.f32 %v8078_v29, %v8209_v27  ;;  %v5284_v6 = vld [vmem:[%s10674_s3 + $0xb4] sm:$0xf0] }
 0x17c   :  { %v5097_v32 = vmul.f32 -1.442695, %v793_v26  ;;  %1024 = vmatpush.bf16.msra.mxu1 %v5105_v12  ;;  %v5287_v9 = vor.u32 %v7006_v60, %v5284_v6  ;;  %v6995_v60 = vld [vmem:[%s10674_s3 + $0x50] sm:$0xf0] }
 0x17d   :  { %1037 = vmatpush.bf16.msra.mxu2 %v5109_v15  ;;  %v7004_v15 = vld [vmem:[%s10674_s3 + $0x98] sm:$0xf0] }
 0x17e   :  { %v7343_v42 = vpop.eup %7342  ;;  %7344 = vpow2.f32 %v5097_v32  ;;  %1272 = vmatpush.bf16.msrb.mxu0 %v5287_v9  ;;  %v6996_v9 = vld [vmem:[%s10674_s3 + $0x58] sm:$0xf0] }
 0x17f   :  { %v800_v50 = vadd.f32 1.0, %v7343_v42 }
 0x181   :  { %7346 = vrcp.f32 %v800_v50  ;;  %v773_v4 = vpop.f32.mrf.mxu2  ;;  %v813_v26 = vand.u32 2147483648, %v800_v50  ;;  %v811_v28 = vand.u32 2147483647, %v800_v50  ;;  %vm807_vm9 = vweird.f32 %v800_v50 }
 0x182   :  { %v786_v7 = vpop.f32.mrf.mxu3  ;;  %v5283_v4 = vor.u32 %v7007_v59, %v5282_v56 }
 0x183   :  { %v814_v34 = vor.u32 1.1754944e-38, %v813_v26  ;;  %vm812_vm11 = vcmp.eq.f32.partialorder %v811_v28, 8.507059e+37  ;;  %v5290_v7 = vld [vmem:[%s10674_s3 + $0xb0] sm:$0xf]  ;;  %v7005_v26 = vld [vmem:[%s10674_s3 + $0xa0] sm:$0xf0] }
 0x184   :  { %v7345_v13 = vpop.eup %7344  ;;  %v5291_v12 = vor.u32 %v7008_v8, %v5290_v7  ;;  %1259 = vmatpush.bf16.msrb.mxu3 %v5283_v4  ;;  %v6994_v4 = vld [vmem:[%s10674_s3 + $0x4c] sm:$0xf]  ;;  %v5236_v7 = vld [vmem:[%s10674_s3 + $0x54] sm:$0xf0]  ;;  %v5242_v8 = vld [vmem:[%s10674_s3 + $0x50] sm:$0xf] }
 0x185   :  { %v801_v16 = vadd.f32 1.0, %v7345_v13  ;;  %v5270_v13 = vld [vmem:[%s10674_s3 + $0x90] sm:$0xf] }
 0x186   :  { %1285 = vmatpush.bf16.msrb.mxu1 %v5291_v12  ;;  %v5239_v12 = vor.u32 %v6994_v4, %v5236_v7 }
 0x187   :  { %v7347_v20 = vpop.eup %7346  ;;  %7348 = vrcp.f32 %v801_v16  ;;  %v828_v46 = vand.u32 2147483648, %v801_v16  ;;  %vm822_vm13 = vweird.f32 %v801_v16  ;;  %v826_v47 = vand.u32 2147483647, %v801_v16 }
 0x188   :  { %v803_v21 = vmul.f32 %v7347_v20, %v800_v50  ;;  %vm808_vm8 = vweird.f32 %v7347_v20 }
 0x189   :  { %vm809_vm10 = vmor %vm807_vm9, %vm808_vm8  ;;  %v829_v51 = vor.u32 1.1754944e-38, %v828_v46  ;;  %vm827_vm15 = vcmp.eq.f32.partialorder %v826_v47, 8.507059e+37  ;;  %v6998_v46 = vld [vmem:[%s10674_s3 + $0x68] sm:$0xf0]  ;;  %v6997_v47 = vld [vmem:[%s10674_s3 + $0x64] sm:$0xf] }
 0x18a   :  { %v804_v25 = vsub.f32 1.0, %v803_v21  ;;  %v5272_v21 = vld [vmem:[%s10674_s3 + $0x9c] sm:$0xf0] }
 0x18c   :  { %v805_v63 = vmul.f32 %v7347_v20, %v804_v25  ;;  %v5278_v25 = vld [vmem:[%s10674_s3 + $0x98] sm:$0xf] }
 0x18d   :  { %v7349_v41 = vpop.eup %7348  ;;  %v5279_v28 = vor.u32 %v7005_v26, %v5278_v25  ;;  %v6992_v25 = vld [vmem:[%s10674_s3 + $0x38] sm:$0xf0]  ;;  %v6991_v26 = vld [vmem:[%s10674_s3 + $0x34] sm:$0xf] }
 0x18e   :  { %v818_v19 = vmul.f32 %v7349_v41, %v801_v16  ;;  %v806_v32 = vadd.f32 %v7347_v20, %v805_v63  ;;  %vm823_vm12 = vweird.f32 %v7349_v41  ;;  %v7003_v16 = vld [vmem:[%s10674_s3 + $0x94] sm:$0xf] }
 0x18f   :  { %vm824_vm14 = vmor %vm822_vm13, %vm823_vm12  ;;  %v5275_v63 = vor.u32 %v7003_v16, %v5272_v21  ;;  %1286 = vmatpush.bf16.msrb.mxu1 %v5279_v28  ;;  %v5222_v21 = vld [vmem:[%s10674_s3 + $0x30] sm:$0xf]  ;;  %v5224_v28 = vld [vmem:[%s10674_s3 + $0x3c] sm:$0xf0] }
 0x190   :  { %v819_v35 = vsub.f32 1.0, %v818_v19  ;;  %v810_v24 = vsel %vm809_vm10, %v7347_v20, %v806_v32  ;;  %v5271_v20 = vor.u32 %v7004_v15, %v5270_v13  ;;  %v7001_v19 = vld [vmem:[%s10674_s3 + $0x80] sm:$0xf0]  ;;  %v7000_v32 = vld [vmem:[%s10674_s3 + $0x7c] sm:$0xf]  ;;  %v5243_v13 = vor.u32 %v6996_v9, %v5242_v8 }
 0x191   :  { %v815_v37 = vsel %vm812_vm11, %v814_v34, %v810_v24  ;;  %1273 = vmatpush.bf16.msrb.mxu0 %v5275_v63  ;;  %v5266_v24 = vld [vmem:[%s10674_s3 + $0x80] sm:$0xf]  ;;  %v5223_v63 = vor.u32 %v6992_v25, %v5222_v21 }
 0x192   :  { %v833_v39 = vmul.f32 %v832_v11, %v815_v37  ;;  %v820_v42 = vmul.f32 %v7349_v41, %v819_v35  ;;  %1260 = vmatpush.bf16.msrb.mxu3 %v5271_v20  ;;  %v5260_v35 = vld [vmem:[%s10674_s3 + $0x84] sm:$0xf0]  ;;  %v7002_v11 = vld [vmem:[%s10674_s3 + $0x88] sm:$0xf0] }
 0x193   :  { %v5263_v37 = vor.u32 %v7000_v32, %v5260_v35  ;;  %v5227_v32 = vor.u32 %v6991_v26, %v5224_v28  ;;  %v5210_v35 = vld [vmem:[%s10674_s3 + $0x18] sm:$0xf] }
 0x194   :  { %v834_v40 = vadd.f32 %v833_v39, %v289_v38  ;;  %v821_v45 = vadd.f32 %v7349_v41, %v820_v42  ;;  %v5267_v38 = vor.u32 %v7002_v11, %v5266_v24  ;;  %v263_v39 = vadd.f32 %v8101_v0, %v7931_v61  ;;  %v6989_v24 = vld [vmem:[%s10674_s3 + $0x20] sm:$0xf0]  ;;  %v6988_v11 = vld [vmem:[%s10674_s3 + $0x1c] sm:$0xf] }
 0x195   :  { %1274 = vmatpush.bf16.msrb.mxu0 %v5263_v37 }
 0x196   :  { %7350 = vtanh.f32 %v834_v40  ;;  %v825_v30 = vsel %vm824_vm14, %v7349_v41, %v821_v45  ;;  %v5258_v41 = vld [vmem:[%s10674_s3 + $0x78] sm:$0xf]  ;;  %1287 = vmatpush.bf16.msrb.mxu1 %v5267_v38  ;;  %v5246_v45 = vld [vmem:[%s10674_s3 + $0x60] sm:$0xf]  ;;  %v5211_v38 = vor.u32 %v6989_v24, %v5210_v35 }
 0x197   :  { %v830_v52 = vsel %vm827_vm15, %v829_v51, %v825_v30  ;;  %v5259_v34 = vor.u32 %v7001_v19, %v5258_v41  ;;  %v5248_v51 = vld [vmem:[%s10674_s3 + $0x6c] sm:$0xf0]  ;;  %v5230_v41 = vld [vmem:[%s10674_s3 + $0x38] sm:$0xf]  ;;  %v6993_v19 = vld [vmem:[%s10674_s3 + $0x40] sm:$0xf0] }
 0x199   :  { %1261 = vmatpush.bf16.msrb.mxu3 %v5259_v34  ;;  %v5231_v34 = vor.u32 %v6993_v19, %v5230_v41 }
 0x19c   :  { %v7351_v50 = vpop.eup %7350 }
 0x19d   :  { %v836_v27 = vsub.f32 %v8092_v57, %v7351_v50 }
 0x19f   :  { %v837_v43 = vmul.f32 %v836_v27, %v830_v52  ;;  %v5254_v27 = vld [vmem:[%s10674_s3 + $0x68] sm:$0xf]  ;;  %v6999_v52 = vld [vmem:[%s10674_s3 + $0x70] sm:$0xf0] }
 0x1a1   :  { %v8270_v53 = vadd.f32 %v7351_v50, %v837_v43  ;;  %v5247_v50 = vor.u32 %v6998_v46, %v5246_v45  ;;  %v5251_v43 = vor.u32 %v6997_v47, %v5248_v51 }
 0x1a3   :  { %v843_v58 = vpack.c.bf16 %v8270_v53, %v8270_v53  ;;  %1262 = vmatpush.bf16.msrb.mxu3 %v5247_v50  ;;  %1275 = vmatpush.bf16.msrb.mxu0 %v5251_v43  ;;  %v6986_v50 = vld [vmem:[%s10674_s3 + $0x8] sm:$0xf0]  ;;  %v5206_v43 = vld [vmem:[%s10674_s3 + $0x8] sm:$0xf] }
 0x1a5   :  { %1012 = vmatmul.bf16.vlgmr.msra.gmra.mxu0 %v843_v58  ;;  %1025 = vmatmul.bf16.vlgmr.msra.gmra.mxu1 %v843_v58 }
 0x1a6   :  { %1038 = vmatmul.bf16.vlgmr.msra.gmra.mxu2 %v843_v58  ;;  %v5255_v58 = vor.u32 %v6999_v52, %v5254_v27  ;;  %v6985_v27 = vld [vmem:[%s10674_s3 + $0x4] sm:$0xf]  ;;  %v5200_v52 = vld [vmem:[%s10674_s3 + $0xc] sm:$0xf0] }
 0x1a7   :  { %1276 = vmatpush.bf16.msrb.mxu0 %v5239_v12 }
 0x1a8   :  { %1288 = vmatpush.bf16.msrb.mxu1 %v5255_v58 }
 0x1ab   :  { %1277 = vmatpush.bf16.msrb.mxu0 %v5227_v32 }
 0x1ac   :  { %1289 = vmatpush.bf16.msrb.mxu1 %v5243_v13 }
 0x1b0   :  { %1290 = vmatpush.bf16.msrb.mxu1 %v5231_v34 }
 0x222   :  { %v1013_v42 = vpop.f32.mrf.mxu0  ;;  %v1026_v40 = vpop.f32.mrf.mxu1 }
 0x223   :  { %v1047_v30 = vadd.f32 %v1013_v42, %v7908_v49  ;;  %v1048_v0 = vadd.f32 %v1026_v40, %v263_v39  ;;  %v5234_v49 = vld [vmem:[%s10674_s3 + $0x48] sm:$0xf]  ;;  %v5218_v42 = vld [vmem:[%s10674_s3 + $0x20] sm:$0xf]  ;;  %v6990_v40 = vld [vmem:[%s10674_s3 + $0x28] sm:$0xf0] }
 0x224   :  { %v5235_v6 = vor.u32 %v6995_v60, %v5234_v49  ;;  %v5212_v39 = vld [vmem:[%s10674_s3 + $0x24] sm:$0xf0]  ;;  %v5203_v49 = vor.u32 %v6985_v27, %v5200_v52 }
 0x225   :  { %v5194_v56 = vmul.f32 -1.442695, %v1047_v30  ;;  %v5195_v59 = vmul.f32 -1.442695, %v1048_v0  ;;  %v5215_v47 = vor.u32 %v6988_v11, %v5212_v39  ;;  %v5219_v30 = vor.u32 %v6990_v40, %v5218_v42  ;;  %v5198_v0 = vld [vmem:[%s10674_s3] sm:$0xf] }
 0x226   :  { %1263 = vmatpush.bf16.msrb.mxu3 %v5235_v6 }
 0x227   :  { %7352 = vpow2.f32 %v5194_v56  ;;  %v5199_v56 = vor.u32 %v6986_v50, %v5198_v0  ;;  %1278 = vmatpush.bf16.msrb.mxu0 %v5215_v47  ;;  %1291 = vmatpush.bf16.msrb.mxu1 %v5219_v30  ;;  %v7030_v47 = vld [vmem:[%s10674_s3 + $0xac] sm:$0xf]  ;;  %v5382_v0 = vld [vmem:[%s10674_s3 + $0xb4] sm:$0xf0]  ;;  %v5388_v50 = vld [vmem:[%s10674_s3 + $0xb0] sm:$0xf] }
 0x228   :  { %7354 = vpow2.f32 %v5195_v59  ;;  %v6987_v59 = vld [vmem:[%s10674_s3 + $0x10] sm:$0xf0]  ;;  %v5385_v27 = vor.u32 %v7030_v47, %v5382_v0  ;;  %v7018_v47 = vld [vmem:[%s10674_s3 + $0x4c] sm:$0xf]  ;;  %v5334_v0 = vld [vmem:[%s10674_s3 + $0x54] sm:$0xf0] }
 0x229   :  { %v8367_v15 = vpop.f32.mrf.mxu2  ;;  %v5207_v60 = vor.u32 %v6987_v59, %v5206_v43  ;;  %v5368_v43 = vld [vmem:[%s10674_s3 + $0x90] sm:$0xf]  ;;  %v265_v59 = vadd.f32 %v8103_v10, %v7931_v61  ;;  %v5356_v10 = vld [vmem:[%s10674_s3 + $0x78] sm:$0xf] }
 0x22a   :  { %v1015_v16 = vpop.f32.mrf.mxu0  ;;  %v1028_v20 = vpop.f32.mrf.mxu1  ;;  %1264 = vmatpush.bf16.msrb.mxu3 %v5223_v63  ;;  %v1087_v63 = vadd.f32 %v8078_v29, %v8367_v15 }
 0x22b   :  { %1279 = vmatpush.bf16.msrb.mxu0 %v5203_v49  ;;  %1292 = vmatpush.bf16.msrb.mxu1 %v5207_v60  ;;  %v5370_v60 = vld [vmem:[%s10674_s3 + $0x9c] sm:$0xf0] }
 0x22d   :  { %v7353_v37 = vpop.eup %7352 }
 0x22e   :  { %v7355_v45 = vpop.eup %7354  ;;  %v1055_v46 = vadd.f32 1.0, %v7353_v37  ;;  %1265 = vmatpush.bf16.msrb.mxu3 %v5211_v38 }
 0x22f   :  { %v1056_v51 = vadd.f32 1.0, %v7355_v45  ;;  %v5380_v45 = vld [vmem:[%s10674_s3 + $0xa8] sm:$0xf] }
 0x230   :  { %7356 = vrcp.f32 %v1055_v46  ;;  %v1068_v12 = vand.u32 2147483648, %v1055_v46  ;;  %v1066_v16 = vand.u32 2147483647, %v1055_v46  ;;  %vm1062_vm1 = vweird.f32 %v1055_v46 }
 0x231   :  { %7358 = vrcp.f32 %v1056_v51  ;;  %v1041_v58 = vpop.f32.mrf.mxu2  ;;  %v1083_v35 = vand.u32 2147483648, %v1056_v51  ;;  %vm1077_vm5 = vweird.f32 %v1056_v51  ;;  %v1081_v24 = vand.u32 2147483647, %v1056_v51 }
 0x232   :  { %1266 = vmatpush.bf16.msrb.mxu3 %v5199_v56  ;;  %v1069_v25 = vor.u32 1.1754944e-38, %v1068_v12  ;;  %vm1067_vm3 = vcmp.eq.f32.partialorder %v1066_v16, 8.507059e+37  ;;  %v7028_v58 = vld [vmem:[%s10674_s3 + $0x98] sm:$0xf0]  ;;  %v7027_v56 = vld [vmem:[%s10674_s3 + $0x94] sm:$0xf] }
 0x233   :  { %v1084_v38 = vor.u32 1.1754944e-38, %v1083_v35  ;;  %vm1082_vm7 = vcmp.eq.f32.partialorder %v1081_v24, 8.507059e+37  ;;  %v5369_v49 = vor.u32 %v7028_v58, %v5368_v43  ;;  %v7025_v16 = vld [vmem:[%s10674_s3 + $0x80] sm:$0xf0]  ;;  %v7022_v35 = vld [vmem:[%s10674_s3 + $0x68] sm:$0xf0]  ;;  %v5337_v58 = vor.u32 %v7018_v47, %v5334_v0 }
 0x234   :  { %v7021_v24 = vld [vmem:[%s10674_s3 + $0x64] sm:$0xf] }
 0x236   :  { %v7357_v4 = vpop.eup %7356  ;;  %1527 = vmatpush.bf16.msra.mxu3 %v5385_v27 }
 0x237   :  { %v7359_v6 = vpop.eup %7358  ;;  %v1058_v7 = vmul.f32 %v7357_v4, %v1055_v46  ;;  %vm1063_vm0 = vweird.f32 %v7357_v4  ;;  %v7031_v46 = vld [vmem:[%s10674_s3 + $0xb0] sm:$0xf0] }
 0x238   :  { %v1073_v9 = vmul.f32 %v7359_v6, %v1056_v51  ;;  %vm1064_vm2 = vmor %vm1062_vm1, %vm1063_vm0  ;;  %vm1078_vm4 = vweird.f32 %v7359_v6  ;;  %v5381_v30 = vor.u32 %v7031_v46, %v5380_v45  ;;  %v7032_v51 = vld [vmem:[%s10674_s3 + $0xb8] sm:$0xf0]  ;;  %v5332_v45 = vld [vmem:[%s10674_s3 + $0x48] sm:$0xf] }
 0x239   :  { %v1059_v8 = vsub.f32 1.0, %v1058_v7  ;;  %vm1079_vm6 = vmor %vm1077_vm5, %vm1078_vm4  ;;  %v5389_v52 = vor.u32 %v7032_v51, %v5388_v50  ;;  %v7019_v46 = vld [vmem:[%s10674_s3 + $0x50] sm:$0xf0]  ;;  %v5340_v50 = vld [vmem:[%s10674_s3 + $0x50] sm:$0xf] }
 0x23a   :  { %v1074_v21 = vsub.f32 1.0, %v1073_v9  ;;  %1514 = vmatpush.bf16.msrb.mxu2 %v5381_v30  ;;  %v7020_v51 = vld [vmem:[%s10674_s3 + $0x58] sm:$0xf0]  ;;  %v5333_v43 = vor.u32 %v7019_v46, %v5332_v45 }
 0x23b   :  { %v1060_v13 = vmul.f32 %v7357_v4, %v1059_v8  ;;  %1540 = vmatpush.bf16.msra.mxu0 %v5389_v52  ;;  %v5373_v8 = vor.u32 %v7027_v56, %v5370_v60  ;;  %v5320_v56 = vld [vmem:[%s10674_s3 + $0x30] sm:$0xf]  ;;  %v7015_v60 = vld [vmem:[%s10674_s3 + $0x34] sm:$0xf] }
 0x23c   :  { %v1075_v19 = vmul.f32 %v7359_v6, %v1074_v21  ;;  %v5357_v21 = vor.u32 %v7025_v16, %v5356_v10  ;;  %v5308_v16 = vld [vmem:[%s10674_s3 + $0x18] sm:$0xf] }
 0x23d   :  { %v1061_v20 = vadd.f32 %v7357_v4, %v1060_v13  ;;  %1528 = vmatpush.bf16.msra.mxu3 %v5373_v8 }
 0x23e   :  { %v1076_v34 = vadd.f32 %v7359_v6, %v1075_v19  ;;  %1515 = vmatpush.bf16.msrb.mxu2 %v5369_v49  ;;  %v236_v19 = vadd.f32 %v7916_v54, %v7904_v44  ;;  %v5346_v54 = vld [vmem:[%s10674_s3 + $0x6c] sm:$0xf0]  ;;  %v5341_v49 = vor.u32 %v7020_v51, %v5340_v50 }
 0x23f   :  { %v1065_v26 = vsel %vm1064_vm2, %v7357_v4, %v1061_v20  ;;  %v5376_v4 = vld [vmem:[%s10674_s3 + $0x98] sm:$0xf]  ;;  %v7024_v20 = vld [vmem:[%s10674_s3 + $0x7c] sm:$0xf] }
 0x240   :  { %v1070_v28 = vsel %vm1067_vm3, %v1069_v25, %v1065_v26  ;;  %v1080_v11 = vsel %vm1079_vm6, %v7359_v6, %v1076_v34  ;;  %v7029_v6 = vld [vmem:[%s10674_s3 + $0xa0] sm:$0xf0]  ;;  %v5358_v25 = vld [vmem:[%s10674_s3 + $0x84] sm:$0xf0]  ;;  %v5364_v26 = vld [vmem:[%s10674_s3 + $0x80] sm:$0xf] }
 0x241   :  { %v1088_v41 = vmul.f32 %v1087_v63, %v1070_v28  ;;  %v1085_v42 = vsel %vm1082_vm7, %v1084_v38, %v1080_v11  ;;  %v5377_v9 = vor.u32 %v7029_v6, %v5376_v4  ;;  %v5361_v28 = vor.u32 %v7024_v20, %v5358_v25  ;;  %v5344_v34 = vld [vmem:[%s10674_s3 + $0x60] sm:$0xf]  ;;  %v5352_v38 = vld [vmem:[%s10674_s3 + $0x68] sm:$0xf]  ;;  %v5328_v6 = vld [vmem:[%s10674_s3 + $0x38] sm:$0xf] }
 0x242   :  { %1516 = vmatpush.bf16.msrb.mxu2 %v5357_v21  ;;  %v5322_v4 = vld [vmem:[%s10674_s3 + $0x3c] sm:$0xf0]  ;;  %v7013_v20 = vld [vmem:[%s10674_s3 + $0x20] sm:$0xf0]  ;;  %v7012_v25 = vld [vmem:[%s10674_s3 + $0x1c] sm:$0xf] }
 0x243   :  { %v1089_v32 = vadd.f32 %v1088_v41, %v8068_v23  ;;  %1541 = vmatpush.bf16.msra.mxu0 %v5377_v9  ;;  %v7026_v41 = vld [vmem:[%s10674_s3 + $0x88] sm:$0xf0]  ;;  %1529 = vmatpush.bf16.msra.mxu3 %v5361_v28  ;;  %v5325_v10 = vor.u32 %v7015_v60, %v5322_v4  ;;  %v294_v4 = vadd.f32 %v8081_v31, %v8062_v18 }
 0x244   :  { %v7014_v28 = vld [vmem:[%s10674_s3 + $0x28] sm:$0xf0] }
 0x245   :  { %7360 = vtanh.f32 %v1089_v32  ;;  %v5365_v32 = vor.u32 %v7026_v41, %v5364_v26  ;;  %v5310_v26 = vld [vmem:[%s10674_s3 + $0x24] sm:$0xf0] }
 0x247   :  { %1542 = vmatpush.bf16.msra.mxu0 %v5365_v32  ;;  %v5309_v32 = vor.u32 %v7013_v20, %v5308_v16 }
 0x24b   :  { %v7361_v37 = vpop.eup %7360 }
 0x24c   :  { %v1091_v39 = vsub.f32 %v8270_v53, %v7361_v37 }
 0x24e   :  { %v1092_v15 = vmul.f32 %v1091_v39, %v1085_v42  ;;  %v7023_v39 = vld [vmem:[%s10674_s3 + $0x70] sm:$0xf0] }
 0x250   :  { %v8427_v40 = vadd.f32 %v7361_v37, %v1092_v15  ;;  %v5345_v37 = vor.u32 %v7022_v35, %v5344_v34  ;;  %v5349_v15 = vor.u32 %v7021_v24, %v5346_v54  ;;  %v5313_v35 = vor.u32 %v7012_v25, %v5310_v26  ;;  %v5296_v24 = vld [vmem:[%s10674_s3] sm:$0xf]  ;;  %v7009_v54 = vld [vmem:[%s10674_s3 + $0x4] sm:$0xf] }
 0x252   :  { %v1098_v23 = vpack.c.bf16 %v8427_v40, %v8427_v40  ;;  %1517 = vmatpush.bf16.msrb.mxu2 %v5345_v37  ;;  %1530 = vmatpush.bf16.msra.mxu3 %v5349_v15 }
 0x254   :  { %1267 = vmatmul.bf16.vlgmr.msrb.gmra.mxu3 %v1098_v23  ;;  %1280 = vmatmul.bf16.vlgmr.msrb.gmra.mxu0 %v1098_v23 }
 0x255   :  { %1293 = vmatmul.bf16.vlgmr.msrb.gmra.mxu1 %v1098_v23  ;;  %v5353_v23 = vor.u32 %v7023_v39, %v5352_v38  ;;  %v5298_v38 = vld [vmem:[%s10674_s3 + $0xc] sm:$0xf0]  ;;  %v5304_v39 = vld [vmem:[%s10674_s3 + $0x8] sm:$0xf] }
 0x256   :  { %1518 = vmatpush.bf16.msrb.mxu2 %v5333_v43  ;;  %1531 = vmatpush.bf16.msra.mxu3 %v5337_v58 }
 0x257   :  { %1543 = vmatpush.bf16.msra.mxu0 %v5353_v23  ;;  %v5301_v23 = vor.u32 %v7009_v54, %v5298_v38  ;;  %v7052_v54 = vld [vmem:[%s10674_s3 + $0x98] sm:$0xf0]  ;;  %v7051_v38 = vld [vmem:[%s10674_s3 + $0x94] sm:$0xf] }
 0x25a   :  { %1532 = vmatpush.bf16.msra.mxu3 %v5325_v10 }
 0x25b   :  { %1544 = vmatpush.bf16.msra.mxu0 %v5341_v49 }
 0x25e   :  { %1533 = vmatpush.bf16.msra.mxu3 %v5313_v35  ;;  %v7056_v35 = vld [vmem:[%s10674_s3 + $0xb8] sm:$0xf0] }
 0x262   :  { %1534 = vmatpush.bf16.msra.mxu3 %v5301_v23  ;;  %v7053_v23 = vld [vmem:[%s10674_s3 + $0xa0] sm:$0xf0] }
 0x2d1   :  { %v1281_v7 = vpop.f32.mrf.mxu0 }
 0x2d2   :  { %v1303_v12 = vadd.f32 %v1281_v7, %v265_v59  ;;  %v8469_v13 = vpop.f32.mrf.mxu1  ;;  %v7016_v59 = vld [vmem:[%s10674_s3 + $0x38] sm:$0xf0]  ;;  %v7017_v7 = vld [vmem:[%s10674_s3 + $0x40] sm:$0xf0] }
 0x2d3   :  { %v5321_v8 = vor.u32 %v7016_v59, %v5320_v56  ;;  %v5329_v21 = vor.u32 %v7017_v7, %v5328_v6  ;;  %v1342_v59 = vadd.f32 %v8078_v29, %v8469_v13 }
 0x2d4   :  { %v5293_v63 = vmul.f32 -1.442695, %v1303_v12 }
 0x2d5   :  { %1519 = vmatpush.bf16.msrb.mxu2 %v5321_v8  ;;  %1545 = vmatpush.bf16.msra.mxu0 %v5329_v21 }
 0x2d6   :  { %7362 = vpow2.f32 %v5293_v63  ;;  %v5316_v63 = vld [vmem:[%s10674_s3 + $0x20] sm:$0xf] }
 0x2d7   :  { %v1268_v11 = vpop.f32.mrf.mxu3  ;;  %v5317_v37 = vor.u32 %v7014_v28, %v5316_v63  ;;  %v5478_v63 = vld [vmem:[%s10674_s3 + $0xa8] sm:$0xf]  ;;  %v7055_v28 = vld [vmem:[%s10674_s3 + $0xb0] sm:$0xf0] }
 0x2d8   :  { %v1302_v42 = vadd.f32 %v1268_v11, %v236_v19  ;;  %v7010_v11 = vld [vmem:[%s10674_s3 + $0x8] sm:$0xf0] }
 0x2d9   :  { %v1283_v30 = vpop.f32.mrf.mxu0  ;;  %1520 = vmatpush.bf16.msrb.mxu2 %v5309_v32  ;;  %v5297_v15 = vor.u32 %v7010_v11, %v5296_v24  ;;  %1546 = vmatpush.bf16.msra.mxu0 %v5317_v37  ;;  %v5480_v32 = vld [vmem:[%s10674_s3 + $0xb4] sm:$0xf0]  ;;  %v5466_v37 = vld [vmem:[%s10674_s3 + $0x90] sm:$0xf] }
 0x2da   :  { %v5292_v27 = vmul.f32 -1.442695, %v1302_v42  ;;  %v1296_v52 = vpop.f32.mrf.mxu1  ;;  %v7011_v42 = vld [vmem:[%s10674_s3 + $0x10] sm:$0xf0] }
 0x2db   :  { %v5305_v45 = vor.u32 %v7011_v42, %v5304_v39  ;;  %v5467_v39 = vor.u32 %v7052_v54, %v5466_v37  ;;  %v5468_v42 = vld [vmem:[%s10674_s3 + $0x9c] sm:$0xf0]  ;;  %v7039_v37 = vld [vmem:[%s10674_s3 + $0x34] sm:$0xf] }
 0x2dc   :  { %7364 = vpow2.f32 %v5292_v27  ;;  %v7363_v9 = vpop.eup %7362  ;;  %v5420_v54 = vld [vmem:[%s10674_s3 + $0x3c] sm:$0xf0] }
 0x2dd   :  { %v1311_v19 = vadd.f32 1.0, %v7363_v9  ;;  %1521 = vmatpush.bf16.msrb.mxu2 %v5297_v15  ;;  %1547 = vmatpush.bf16.msra.mxu0 %v5305_v45  ;;  %v5474_v15 = vld [vmem:[%s10674_s3 + $0x98] sm:$0xf]  ;;  %v5471_v45 = vor.u32 %v7051_v38, %v5468_v42 }
 0x2de   :  { %v5426_v38 = vld [vmem:[%s10674_s3 + $0x38] sm:$0xf] }
 0x2df   :  { %v1270_v12 = vpop.f32.mrf.mxu3  ;;  %vm1332_vm13 = vweird.f32 %v1311_v19  ;;  %v1336_v10 = vand.u32 2147483647, %v1311_v19 }
 0x2e0   :  { %v1338_v12 = vand.u32 2147483648, %v1311_v19 }
 0x2e1   :  { %vm1337_vm15 = vcmp.eq.f32.partialorder %v1336_v10, 8.507059e+37 }
 0x2e2   :  { %v7365_v41 = vpop.eup %7364  ;;  %v1339_v21 = vor.u32 1.1754944e-38, %v1338_v12  ;;  %v7047_v12 = vld [vmem:[%s10674_s3 + $0x70] sm:$0xf0] }
 0x2e3   :  { %v1310_v34 = vadd.f32 1.0, %v7365_v41  ;;  %v7054_v41 = vld [vmem:[%s10674_s3 + $0xac] sm:$0xf] }
 0x2e4   :  { %v5483_v24 = vor.u32 %v7054_v41, %v5480_v32 }
 0x2e5   :  { %7366 = vrcp.f32 %v1310_v34  ;;  %v1323_v51 = vand.u32 2147483648, %v1310_v34  ;;  %v1321_v52 = vand.u32 2147483647, %v1310_v34  ;;  %vm1317_vm9 = vweird.f32 %v1310_v34 }
 0x2e6   :  { %7368 = vrcp.f32 %v1311_v19  ;;  %1782 = vmatpush.bf16.msra.mxu2 %v5483_v24  ;;  %v5418_v24 = vld [vmem:[%s10674_s3 + $0x30] sm:$0xf] }
 0x2e7   :  { %v1324_v56 = vor.u32 1.1754944e-38, %v1323_v51  ;;  %vm1322_vm11 = vcmp.eq.f32.partialorder %v1321_v52, 8.507059e+37  ;;  %v5462_v52 = vld [vmem:[%s10674_s3 + $0x80] sm:$0xf] }
 0x2ea   :  { %1783 = vmatpush.bf16.msra.mxu2 %v5471_v45  ;;  %v5423_v45 = vor.u32 %v7039_v37, %v5420_v54 }
 0x2eb   :  { %v7367_v46 = vpop.eup %7366 }
 0x2ec   :  { %v7369_v47 = vpop.eup %7368  ;;  %v1313_v30 = vmul.f32 %v7367_v46, %v1310_v34  ;;  %vm1318_vm8 = vweird.f32 %v7367_v46  ;;  %v5486_v34 = vld [vmem:[%s10674_s3 + $0xb0] sm:$0xf] }
 0x2ed   :  { %v1328_v50 = vmul.f32 %v7369_v47, %v1311_v19  ;;  %vm1319_vm10 = vmor %vm1317_vm9, %vm1318_vm8  ;;  %vm1333_vm12 = vweird.f32 %v7369_v47  ;;  %v5479_v19 = vor.u32 %v7055_v28, %v5478_v63  ;;  %v5487_v11 = vor.u32 %v7056_v35, %v5486_v34  ;;  %v7044_v63 = vld [vmem:[%s10674_s3 + $0x58] sm:$0xf0] }
 0x2ee   :  { %v1314_v0 = vsub.f32 1.0, %v1313_v30  ;;  %vm1334_vm14 = vmor %vm1332_vm13, %vm1333_vm12  ;;  %v5454_v30 = vld [vmem:[%s10674_s3 + $0x78] sm:$0xf] }
 0x2ef   :  { %v1329_v58 = vsub.f32 1.0, %v1328_v50  ;;  %1769 = vmatpush.bf16.msra.mxu1 %v5479_v19  ;;  %1795 = vmatpush.bf16.msrb.mxu3 %v5487_v11  ;;  %v7048_v50 = vld [vmem:[%s10674_s3 + $0x7c] sm:$0xf] }
 0x2f0   :  { %v1315_v27 = vmul.f32 %v7367_v46, %v1314_v0  ;;  %v7049_v0 = vld [vmem:[%s10674_s3 + $0x80] sm:$0xf0]  ;;  %v7040_v11 = vld [vmem:[%s10674_s3 + $0x38] sm:$0xf0] }
 0x2f1   :  { %v1330_v7 = vmul.f32 %v7369_v47, %v1329_v58  ;;  %v5455_v51 = vor.u32 %v7049_v0, %v5454_v30  ;;  %v5419_v42 = vor.u32 %v7040_v11, %v5418_v24  ;;  %v5406_v30 = vld [vmem:[%s10674_s3 + $0x18] sm:$0xf]  ;;  %v7037_v0 = vld [vmem:[%s10674_s3 + $0x20] sm:$0xf0] }
 0x2f2   :  { %v1316_v43 = vadd.f32 %v7367_v46, %v1315_v27  ;;  %v5456_v27 = vld [vmem:[%s10674_s3 + $0x84] sm:$0xf0] }
 0x2f3   :  { %v1331_v9 = vadd.f32 %v7369_v47, %v1330_v7  ;;  %1770 = vmatpush.bf16.msra.mxu1 %v5467_v39  ;;  %v5459_v58 = vor.u32 %v7048_v50, %v5456_v27  ;;  %v7041_v39 = vld [vmem:[%s10674_s3 + $0x40] sm:$0xf0]  ;;  %v7036_v50 = vld [vmem:[%s10674_s3 + $0x1c] sm:$0xf]  ;;  %v5414_v27 = vld [vmem:[%s10674_s3 + $0x20] sm:$0xf] }
 0x2f4   :  { %v1320_v49 = vsel %vm1319_vm10, %v7367_v46, %v1316_v43  ;;  %v5475_v46 = vor.u32 %v7053_v23, %v5474_v15  ;;  %v7050_v43 = vld [vmem:[%s10674_s3 + $0x88] sm:$0xf0] }
 0x2f5   :  { %v1325_v60 = vsel %vm1322_vm11, %v1324_v56, %v1320_v49  ;;  %v1335_v16 = vsel %vm1334_vm14, %v7369_v47, %v1331_v9  ;;  %v5463_v56 = vor.u32 %v7050_v43, %v5462_v52  ;;  %v5442_v49 = vld [vmem:[%s10674_s3 + $0x60] sm:$0xf]  ;;  %1784 = vmatpush.bf16.msra.mxu2 %v5459_v58  ;;  %v5450_v9 = vld [vmem:[%s10674_s3 + $0x68] sm:$0xf]  ;;  %v7038_v52 = vld [vmem:[%s10674_s3 + $0x28] sm:$0xf0]  ;;  %v5407_v58 = vor.u32 %v7037_v0, %v5406_v30 }
 0x2f6   :  { %v1343_v6 = vmul.f32 %v1342_v59, %v1325_v60  ;;  %v1340_v13 = vsel %vm1337_vm15, %v1339_v21, %v1335_v16  ;;  %1796 = vmatpush.bf16.msrb.mxu3 %v5475_v46  ;;  %v268_v59 = vadd.f32 %v8105_v1, %v7931_v61  ;;  %v7046_v60 = vld [vmem:[%s10674_s3 + $0x68] sm:$0xf0]  ;;  %v5444_v1 = vld [vmem:[%s10674_s3 + $0x6c] sm:$0xf0]  ;;  %v5451_v21 = vor.u32 %v7047_v12, %v5450_v9  ;;  %v5402_v9 = vld [vmem:[%s10674_s3 + $0x8] sm:$0xf] }
 0x2f7   :  { %1771 = vmatpush.bf16.msra.mxu1 %v5455_v51  ;;  %v5427_v46 = vor.u32 %v7041_v39, %v5426_v38  ;;  %v5408_v51 = vld [vmem:[%s10674_s3 + $0x24] sm:$0xf0]  ;;  %v7035_v12 = vld [vmem:[%s10674_s3 + $0x10] sm:$0xf0] }
 0x2f8   :  { %v1344_v8 = vadd.f32 %v1343_v6, %v294_v4  ;;  %v7045_v4 = vld [vmem:[%s10674_s3 + $0x64] sm:$0xf] }
 0x2fa   :  { %7370 = vtanh.f32 %v1344_v8  ;;  %1797 = vmatpush.bf16.msrb.mxu3 %v5463_v56  ;;  %v5443_v8 = vor.u32 %v7046_v60, %v5442_v49  ;;  %v5394_v56 = vld [vmem:[%s10674_s3] sm:$0xf] }
 0x2fc   :  { %1772 = vmatpush.bf16.msra.mxu1 %v5443_v8  ;;  %v5396_v8 = vld [vmem:[%s10674_s3 + $0xc] sm:$0xf0] }
 0x2fe   :  { %1798 = vmatpush.bf16.msrb.mxu3 %v5451_v21 }
 0x300   :  { %v7371_v20 = vpop.eup %7370 }
 0x301   :  { %v1346_v29 = vsub.f32 %v8427_v40, %v7371_v20 }
 0x303   :  { %v1347_v25 = vmul.f32 %v1346_v29, %v1340_v13  ;;  %v5430_v29 = vld [vmem:[%s10674_s3 + $0x48] sm:$0xf]  ;;  %v7043_v13 = vld [vmem:[%s10674_s3 + $0x50] sm:$0xf0] }
 0x304   :  { %v5431_v32 = vor.u32 %v7043_v13, %v5430_v29 }
 0x305   :  { %v8586_v26 = vadd.f32 %v7371_v20, %v1347_v25  ;;  %v5447_v20 = vor.u32 %v7045_v4, %v5444_v1  ;;  %v7042_v25 = vld [vmem:[%s10674_s3 + $0x4c] sm:$0xf]  ;;  %v5411_v4 = vor.u32 %v7036_v50, %v5408_v51  ;;  %v5584_v51 = vld [vmem:[%s10674_s3 + $0xb0] sm:$0xf] }
 0x306   :  { %1773 = vmatpush.bf16.msra.mxu1 %v5431_v32 }
 0x307   :  { %v1353_v31 = vpack.c.bf16 %v8586_v26, %v8586_v26  ;;  %1785 = vmatpush.bf16.msra.mxu2 %v5447_v20  ;;  %v5403_v20 = vor.u32 %v7035_v12, %v5402_v9  ;;  %v7078_v9 = vld [vmem:[%s10674_s3 + $0xac] sm:$0xf] }
 0x309   :  { %1522 = vmatmul.bf16.vlgmr.msrb.gmra.mxu2 %v1353_v31  ;;  %1535 = vmatmul.bf16.vlgmr.msra.gmra.mxu3 %v1353_v31 }
 0x30a   :  { %1548 = vmatmul.bf16.vlgmr.msra.gmra.mxu0 %v1353_v31  ;;  %v5432_v31 = vld [vmem:[%s10674_s3 + $0x54] sm:$0xf0]  ;;  %1774 = vmatpush.bf16.msra.mxu1 %v5419_v42 }
 0x30b   :  { %v5435_v34 = vor.u32 %v7042_v25, %v5432_v31 }
 0x30d   :  { %1786 = vmatpush.bf16.msra.mxu2 %v5435_v34  ;;  %v8742_v34 = vld [vmem:[%s10677_s5] ss:$0 sm:$0xff] }
 0x30e   :  { %1775 = vmatpush.bf16.msra.mxu1 %v5407_v58  ;;  %v7077_v58 = vld [vmem:[%s10674_s3 + $0xa0] sm:$0xf0] }
 0x311   :  { %1787 = vmatpush.bf16.msra.mxu2 %v5423_v45 }
 0x315   :  { %1788 = vmatpush.bf16.msra.mxu2 %v5411_v4  ;;  %v5548_v4 = vld [vmem:[%s10674_s3 + $0x68] sm:$0xf] }
 0x387   :  { %v8626_v47 = vpop.f32.mrf.mxu0 }
 0x38c   :  { %v1523_v6 = vpop.f32.mrf.mxu2  ;;  %v1536_v7 = vpop.f32.mrf.mxu3 }
 0x38d   :  { %v1557_v10 = vadd.f32 %v1523_v6, %v7960_v14  ;;  %v1558_v16 = vadd.f32 %v1536_v7, %v268_v59  ;;  %v5438_v14 = vld [vmem:[%s10674_s3 + $0x50] sm:$0xf]  ;;  %v7034_v59 = vld [vmem:[%s10674_s3 + $0x8] sm:$0xf0]  ;;  %v5415_v6 = vor.u32 %v7038_v52, %v5414_v27  ;;  %v7033_v7 = vld [vmem:[%s10674_s3 + $0x4] sm:$0xf] }
 0x38e   :  { %v5439_v35 = vor.u32 %v7044_v63, %v5438_v14  ;;  %v7080_v27 = vld [vmem:[%s10674_s3 + $0xb8] sm:$0xf0] }
 0x38f   :  { %v5390_v28 = vmul.f32 -1.442695, %v1557_v10  ;;  %v5391_v41 = vmul.f32 -1.442695, %v1558_v16  ;;  %v1551_v19 = vpop.f32.mrf.mxu0  ;;  %v5395_v10 = vor.u32 %v7034_v59, %v5394_v56  ;;  %v5399_v16 = vor.u32 %v7033_v7, %v5396_v8  ;;  %v5560_v59 = vld [vmem:[%s10674_s3 + $0x80] sm:$0xf] }
 0x390   :  { %1799 = vmatpush.bf16.msrb.mxu3 %v5439_v35  ;;  %v1597_v35 = vadd.f32 %v8742_v34, %v8626_v47  ;;  %v5585_v52 = vor.u32 %v7080_v27, %v5584_v51  ;;  %v5576_v8 = vld [vmem:[%s10674_s3 + $0xa8] sm:$0xf] }
 0x391   :  { %7372 = vpow2.f32 %v5390_v28  ;;  %1776 = vmatpush.bf16.msra.mxu1 %v5395_v10  ;;  %1789 = vmatpush.bf16.msra.mxu2 %v5399_v16  ;;  %v5578_v10 = vld [vmem:[%s10674_s3 + $0xb4] sm:$0xf0] }
 0x392   :  { %7374 = vpow2.f32 %v5391_v41  ;;  %v5581_v16 = vor.u32 %v7078_v9, %v5578_v10 }
 0x394   :  { %v1525_v15 = vpop.f32.mrf.mxu2  ;;  %v1538_v23 = vpop.f32.mrf.mxu3  ;;  %1800 = vmatpush.bf16.msrb.mxu3 %v5427_v46 }
 0x395   :  { %2050 = vmatpush.bf16.msrb.mxu2 %v5585_v52  ;;  %2037 = vmatpush.bf16.msrb.mxu1 %v5581_v16  ;;  %v5500_v52 = vld [vmem:[%s10674_s3 + $0x8] sm:$0xf] }
 0x397   :  { %v7373_v43 = vpop.eup %7372 }
 0x398   :  { %v7375_v49 = vpop.eup %7374  ;;  %v1565_v60 = vadd.f32 1.0, %v7373_v43  ;;  %1801 = vmatpush.bf16.msrb.mxu3 %v5415_v6  ;;  %v5572_v43 = vld [vmem:[%s10674_s3 + $0x98] sm:$0xf]  ;;  %v7071_v6 = vld [vmem:[%s10674_s3 + $0x70] sm:$0xf0] }
 0x399   :  { %v1566_v1 = vadd.f32 1.0, %v7375_v49  ;;  %v5573_v56 = vor.u32 %v7077_v58, %v5572_v43  ;;  %v7074_v49 = vld [vmem:[%s10674_s3 + $0x88] sm:$0xf0]  ;;  %v5549_v7 = vor.u32 %v7071_v6, %v5548_v4  ;;  %v7059_v43 = vld [vmem:[%s10674_s3 + $0x10] sm:$0xf0] }
 0x39a   :  { %7376 = vrcp.f32 %v1565_v60  ;;  %v1578_v31 = vand.u32 2147483648, %v1565_v60  ;;  %v1576_v28 = vand.u32 2147483647, %v1565_v60  ;;  %vm1572_vm1 = vweird.f32 %v1565_v60  ;;  %v5530_v6 = vld [vmem:[%s10674_s3 + $0x54] sm:$0xf0] }
 0x39b   :  { %7378 = vrcp.f32 %v1566_v1  ;;  %v1593_v42 = vand.u32 2147483648, %v1566_v1  ;;  %vm1587_vm5 = vweird.f32 %v1566_v1  ;;  %v1591_v15 = vand.u32 2147483647, %v1566_v1  ;;  %2051 = vmatpush.bf16.msrb.mxu2 %v5573_v56  ;;  %v5528_v56 = vld [vmem:[%s10674_s3 + $0x48] sm:$0xf] }
 0x39c   :  { %1802 = vmatpush.bf16.msrb.mxu3 %v5403_v20  ;;  %v1579_v19 = vor.u32 1.1754944e-38, %v1578_v31  ;;  %vm1577_vm3 = vcmp.eq.f32.partialorder %v1576_v28, 8.507059e+37  ;;  %v5536_v20 = vld [vmem:[%s10674_s3 + $0x50] sm:$0xf]  ;;  %v7075_v31 = vld [vmem:[%s10674_s3 + $0x94] sm:$0xf]  ;;  %v5501_v58 = vor.u32 %v7059_v43, %v5500_v52 }
 0x39d   :  { %v1594_v46 = vor.u32 1.1754944e-38, %v1593_v42  ;;  %vm1592_vm7 = vcmp.eq.f32.partialorder %v1591_v15, 8.507059e+37  ;;  %v5512_v42 = vld [vmem:[%s10674_s3 + $0x20] sm:$0xf]  ;;  %v7062_v15 = vld [vmem:[%s10674_s3 + $0x28] sm:$0xf0] }
 0x3a0   :  { %v7377_v21 = vpop.eup %7376 }
 0x3a1   :  { %v7379_v29 = vpop.eup %7378  ;;  %v1568_v13 = vmul.f32 %v7377_v21, %v1565_v60  ;;  %vm1573_vm0 = vweird.f32 %v7377_v21  ;;  %v5561_v60 = vor.u32 %v7074_v49, %v5560_v59  ;;  %v7067_v59 = vld [vmem:[%s10674_s3 + $0x50] sm:$0xf0]  ;;  %v7066_v49 = vld [vmem:[%s10674_s3 + $0x4c] sm:$0xf] }
 0x3a2   :  { %v1583_v14 = vmul.f32 %v7379_v29, %v1566_v1  ;;  %vm1574_vm2 = vmor %vm1572_vm1, %vm1573_vm0  ;;  %vm1588_vm4 = vweird.f32 %v7379_v29  ;;  %v7079_v1 = vld [vmem:[%s10674_s3 + $0xb0] sm:$0xf0]  ;;  %v5529_v4 = vor.u32 %v7067_v59, %v5528_v56  ;;  %v5533_v9 = vor.u32 %v7066_v49, %v5530_v6  ;;  %v5757_v56 = vld [vmem:[%s10673_s2 + $0x108] sm:$0xf] }
 0x3a3   :  { %v1569_v25 = vsub.f32 1.0, %v1568_v13  ;;  %vm1589_vm6 = vmor %vm1587_vm5, %vm1588_vm4  ;;  %2052 = vmatpush.bf16.msrb.mxu2 %v5561_v60  ;;  %v5577_v12 = vor.u32 %v7079_v1, %v5576_v8  ;;  %v5564_v13 = vld [vmem:[%s10674_s3 + $0x90] sm:$0xf]  ;;  %v270_v60 = vadd.f32 %v8107_v2, %v7931_v61  ;;  %v7127_v8 = vld [vmem:[%s10673_s2 + $0x170] sm:$0xf0] }
 0x3a4   :  { %v1584_v32 = vsub.f32 1.0, %v1583_v14  ;;  %v7115_v59 = vld [vmem:[%s10673_s2 + $0x110] sm:$0xf0]  ;;  %v5745_v6 = vld [vmem:[%s10673_s2 + $0xf0] sm:$0xf] }
 0x3a5   :  { %v1570_v63 = vmul.f32 %v7377_v21, %v1569_v25  ;;  %2024 = vmatpush.bf16.msrb.mxu0 %v5577_v12  ;;  %v7076_v25 = vld [vmem:[%s10674_s3 + $0x98] sm:$0xf0] }
 0x3a6   :  { %v1585_v54 = vmul.f32 %v7379_v29, %v1584_v32  ;;  %v5565_v14 = vor.u32 %v7076_v25, %v5564_v13 }
 0x3a7   :  { %v1571_v41 = vadd.f32 %v7377_v21, %v1570_v63  ;;  %2053 = vmatpush.bf16.msrb.mxu2 %v5549_v7  ;;  %v5566_v63 = vld [vmem:[%s10674_s3 + $0x9c] sm:$0xf0]  ;;  %v5805_v7 = vld [vmem:[%s10673_s2 + $0x168] sm:$0xf] }
 0x3a8   :  { %v1586_v39 = vadd.f32 %v7379_v29, %v1585_v54  ;;  %v5569_v28 = vor.u32 %v7075_v31, %v5566_v63  ;;  %v5554_v54 = vld [vmem:[%s10674_s3 + $0x84] sm:$0xf0]  ;;  %v5806_v12 = vor.u32 %v7127_v8, %v5805_v7  ;;  %v5518_v31 = vld [vmem:[%s10674_s3 + $0x3c] sm:$0xf0]  ;;  %v7112_v7 = vld [vmem:[%s10673_s2 + $0xf8] sm:$0xf0] }
 0x3a9   :  { %v1575_v24 = vsel %vm1574_vm2, %v7377_v21, %v1571_v41  ;;  %v7068_v21 = vld [vmem:[%s10674_s3 + $0x58] sm:$0xf0]  ;;  %2025 = vmatpush.bf16.msrb.mxu0 %v5565_v14  ;;  %v5524_v41 = vld [vmem:[%s10674_s3 + $0x38] sm:$0xf]  ;;  %v5793_v14 = vld [vmem:[%s10673_s2 + $0x150] sm:$0xf] }
 0x3aa   :  { %v1580_v11 = vsel %vm1577_vm3, %v1579_v19, %v1575_v24  ;;  %v1590_v23 = vsel %vm1589_vm6, %v7379_v29, %v1586_v39  ;;  %v5537_v29 = vor.u32 %v7068_v21, %v5536_v20  ;;  %v7065_v19 = vld [vmem:[%s10674_s3 + $0x40] sm:$0xf0]  ;;  %2038 = vmatpush.bf16.msrb.mxu1 %v5569_v28  ;;  %v241_v39 = vadd.f32 %v7996_v36, %v7904_v44  ;;  %v7070_v36 = vld [vmem:[%s10674_s3 + $0x68] sm:$0xf0]  ;;  %v5516_v20 = vld [vmem:[%s10674_s3 + $0x30] sm:$0xf] }
 0x3ab   :  { %v1598_v37 = vmul.f32 %v1597_v35, %v1580_v11  ;;  %v1595_v30 = vsel %vm1592_vm7, %v1594_v46, %v1590_v23  ;;  %v5525_v32 = vor.u32 %v7065_v19, %v5524_v41  ;;  %v5552_v35 = vld [vmem:[%s10674_s3 + $0x78] sm:$0xf]  ;;  %v7073_v24 = vld [vmem:[%s10674_s3 + $0x80] sm:$0xf0]  ;;  %v7072_v11 = vld [vmem:[%s10674_s3 + $0x7c] sm:$0xf] }
 0x3ac   :  { %2054 = vmatpush.bf16.msrb.mxu2 %v5537_v29  ;;  %v5540_v46 = vld [vmem:[%s10674_s3 + $0x60] sm:$0xf]  ;;  %v7064_v21 = vld [vmem:[%s10674_s3 + $0x38] sm:$0xf0]  ;;  %v7063_v29 = vld [vmem:[%s10674_s3 + $0x34] sm:$0xf] }
 0x3ad   :  { %v1599_v38 = vadd.f32 %v1598_v37, %v8087_v48  ;;  %v5553_v37 = vor.u32 %v7073_v24, %v5552_v35  ;;  %v5517_v25 = vor.u32 %v7064_v21, %v5516_v20  ;;  %v5521_v63 = vor.u32 %v7063_v29, %v5518_v31  ;;  %v7124_v28 = vld [vmem:[%s10673_s2 + $0x158] sm:$0xf0]  ;;  %v5504_v41 = vld [vmem:[%s10674_s3 + $0x18] sm:$0xf]  ;;  %v7061_v19 = vld [vmem:[%s10674_s3 + $0x20] sm:$0xf0] }
 0x3ae   :  { %v5794_v35 = vor.u32 %v7124_v28, %v5793_v14  ;;  %v5505_v24 = vor.u32 %v7061_v19, %v5504_v41  ;;  %v5733_v20 = vld [vmem:[%s10673_s2 + $0xd8] sm:$0xf]  ;;  %v7109_v21 = vld [vmem:[%s10673_s2 + $0xe0] sm:$0xf0]  ;;  %v5721_v19 = vld [vmem:[%s10673_s2 + $0xc0] sm:$0xf] }
 0x3af   :  { %7380 = vtanh.f32 %v1599_v38  ;;  %v5557_v38 = vor.u32 %v7072_v11, %v5554_v54  ;;  %2026 = vmatpush.bf16.msrb.mxu0 %v5553_v37  ;;  %v7060_v11 = vld [vmem:[%s10674_s3 + $0x1c] sm:$0xf]  ;;  %v5506_v37 = vld [vmem:[%s10674_s3 + $0x24] sm:$0xf0]  ;;  %v5781_v54 = vld [vmem:[%s10673_s2 + $0x138] sm:$0xf]  ;;  %v5734_v28 = vor.u32 %v7109_v21, %v5733_v20 }
 0x3b0   :  { %2055 = vmatpush.bf16.msrb.mxu2 %v5525_v32  ;;  %v7099_v20 = vld [vmem:[%s10674_s3 + $0x94] sm:$0xf] }
 0x3b1   :  { %2039 = vmatpush.bf16.msrb.mxu1 %v5557_v38 }
 0x3b5   :  { %v7381_v45 = vpop.eup %7380 }
 0x3b6   :  { %v1601_v47 = vsub.f32 %v8586_v26, %v7381_v45 }
 0x3b8   :  { %v1602_v0 = vmul.f32 %v1601_v47, %v1595_v30  ;;  %v7069_v47 = vld [vmem:[%s10674_s3 + $0x64] sm:$0xf] }
 0x3ba   :  { %v8748_v50 = vadd.f32 %v7381_v45, %v1602_v0  ;;  %v5513_v45 = vor.u32 %v7062_v15, %v5512_v42  ;;  %v5541_v0 = vor.u32 %v7070_v36, %v5540_v46  ;;  %v7121_v42 = vld [vmem:[%s10673_s2 + $0x140] sm:$0xf0]  ;;  %v5492_v15 = vld [vmem:[%s10674_s3] sm:$0xf]  ;;  %v5494_v36 = vld [vmem:[%s10674_s3 + $0xc] sm:$0xf0] }
 0x3bb   :  { %v7057_v46 = vld [vmem:[%s10674_s3 + $0x4] sm:$0xf] }
 0x3bc   :  { %v1608_v48 = vpack.c.bf16 %v8748_v50, %v8748_v50  ;;  %2056 = vmatpush.bf16.msrb.mxu2 %v5513_v45  ;;  %2027 = vmatpush.bf16.msrb.mxu0 %v5541_v0  ;;  %v7058_v45 = vld [vmem:[%s10674_s3 + $0x8] sm:$0xf0] }
 0x3be   :  { %1777 = vmatmul.bf16.vlgmr.msra.gmra.mxu1 %v1608_v48  ;;  %1790 = vmatmul.bf16.vlgmr.msra.gmra.mxu2 %v1608_v48 }
 0x3bf   :  { %1803 = vmatmul.bf16.vlgmr.msrb.gmra.mxu3 %v1608_v48  ;;  %v5542_v48 = vld [vmem:[%s10674_s3 + $0x6c] sm:$0xf0] }
 0x3c0   :  { %v5545_v51 = vor.u32 %v7069_v47, %v5542_v48  ;;  %2057 = vmatpush.bf16.msrb.mxu2 %v5501_v58  ;;  %2028 = vmatpush.bf16.msrb.mxu0 %v5529_v4  ;;  %v5493_v48 = vor.u32 %v7058_v45, %v5492_v15  ;;  %v5758_v4 = vor.u32 %v7115_v59, %v5757_v56  ;;  %v7098_v56 = vld [vmem:[%s10674_s3 + $0x88] sm:$0xf0] }
 0x3c2   :  { %2040 = vmatpush.bf16.msrb.mxu1 %v5545_v51  ;;  %v7118_v51 = vld [vmem:[%s10673_s2 + $0x128] sm:$0xf0] }
 0x3c4   :  { %2554 = vmatpush.bf16.msra.mxu2 %v5806_v12  ;;  %2029 = vmatpush.bf16.msrb.mxu0 %v5517_v25 }
 0x3c6   :  { %2041 = vmatpush.bf16.msrb.mxu1 %v5533_v9 }
 0x3c8   :  { %2555 = vmatpush.bf16.msra.mxu2 %v5794_v35  ;;  %2030 = vmatpush.bf16.msrb.mxu0 %v5505_v24  ;;  %v299_v35 = vadd.f32 %v8090_v55, %v8062_v18 }
 0x3ca   :  { %2042 = vmatpush.bf16.msrb.mxu1 %v5521_v63 }
 0x3cc   :  { %2031 = vmatpush.bf16.msrb.mxu0 %v5493_v48  ;;  %v7104_v48 = vld [vmem:[%s10674_s3 + $0xb8] sm:$0xf0] }
 0x43b   :  { %v1778_v23 = vpop.f32.mrf.mxu1 }
 0x43c   :  { %v1812_v30 = vadd.f32 %v1778_v23, %v241_v39  ;;  %v5509_v39 = vor.u32 %v7060_v11, %v5506_v37  ;;  %v5782_v23 = vor.u32 %v7121_v42, %v5781_v54 }
 0x43e   :  { %v5488_v27 = vmul.f32 -1.442695, %v1812_v30  ;;  %v5769_v30 = vld [vmem:[%s10673_s2 + $0x120] sm:$0xf]  ;;  %2043 = vmatpush.bf16.msrb.mxu1 %v5509_v39  ;;  %2556 = vmatpush.bf16.msra.mxu2 %v5782_v23 }
 0x43f   :  { %v5770_v43 = vor.u32 %v7118_v51, %v5769_v30  ;;  %v8961_v30 = vpack.c.bf16 %v8270_v53, %v8092_v57  ;;  %v5670_v51 = vld [vmem:[%s10674_s3 + $0x98] sm:$0xf]  ;;  %v7101_v57 = vld [vmem:[%s10674_s3 + $0xa0] sm:$0xf0] }
 0x440   :  { %7382 = vpow2.f32 %v5488_v27  ;;  %v5497_v27 = vor.u32 %v7057_v46, %v5494_v36  ;;  %v5671_v53 = vor.u32 %v7101_v57, %v5670_v51  ;;  %v5628_v51 = vld [vmem:[%s10674_s3 + $0x54] sm:$0xf0] }
 0x441   :  { %v1791_v1 = vpop.f32.mrf.mxu2 }
 0x442   :  { %v1813_v10 = vadd.f32 %v1791_v1, %v270_v60  ;;  %v8870_v2 = vpop.f32.mrf.mxu3  ;;  %2044 = vmatpush.bf16.msrb.mxu1 %v5497_v27  ;;  %2557 = vmatpush.bf16.msra.mxu2 %v5770_v43 }
 0x443   :  { %v1780_v16 = vpop.f32.mrf.mxu1  ;;  %v1852_v31 = vadd.f32 %v8742_v34, %v8870_v2 }
 0x444   :  { %v5489_v13 = vmul.f32 -1.442695, %v1813_v10  ;;  %v5746_v10 = vor.u32 %v7112_v7, %v5745_v6  ;;  %v5676_v7 = vld [vmem:[%s10674_s3 + $0xb4] sm:$0xf0] }
 0x446   :  { %v7383_v32 = vpop.eup %7382  ;;  %7384 = vpow2.f32 %v5489_v13  ;;  %2558 = vmatpush.bf16.msra.mxu2 %v5758_v4  ;;  %v7102_v4 = vld [vmem:[%s10674_s3 + $0xac] sm:$0xf] }
 0x447   :  { %v1820_v38 = vadd.f32 1.0, %v7383_v32  ;;  %v7106_v32 = vld [vmem:[%s10673_s2 + $0xc8] sm:$0xf0] }
 0x448   :  { %v5722_v37 = vor.u32 %v7106_v32, %v5721_v19  ;;  %v5652_v32 = vld [vmem:[%s10674_s3 + $0x84] sm:$0xf0] }
 0x449   :  { %7386 = vrcp.f32 %v1820_v38  ;;  %v1793_v47 = vpop.f32.mrf.mxu2  ;;  %v1833_v1 = vand.u32 2147483648, %v1820_v38  ;;  %v1831_v12 = vand.u32 2147483647, %v1820_v38  ;;  %vm1827_vm9 = vweird.f32 %v1820_v38 }
 0x44a   :  { %v1806_v0 = vpop.f32.mrf.mxu3  ;;  %2559 = vmatpush.bf16.msra.mxu2 %v5746_v10  ;;  %v5662_v10 = vld [vmem:[%s10674_s3 + $0x90] sm:$0xf] }
 0x44b   :  { %v1834_v25 = vor.u32 1.1754944e-38, %v1833_v1  ;;  %vm1832_vm11 = vcmp.eq.f32.partialorder %v1831_v12, 8.507059e+37  ;;  %v5682_v0 = vld [vmem:[%s10674_s3 + $0xb0] sm:$0xf] }
 0x44c   :  { %v7385_v52 = vpop.eup %7384  ;;  %v5683_v27 = vor.u32 %v7104_v48, %v5682_v0  ;;  %v5634_v1 = vld [vmem:[%s10674_s3 + $0x50] sm:$0xf]  ;;  %v7090_v0 = vld [vmem:[%s10674_s3 + $0x4c] sm:$0xf] }
 0x44d   :  { %v1821_v58 = vadd.f32 1.0, %v7385_v52  ;;  %v8978_v52 = vpack.c.bf16 %v8586_v26, %v8427_v40  ;;  %v5646_v40 = vld [vmem:[%s10674_s3 + $0x68] sm:$0xf]  ;;  %v7095_v26 = vld [vmem:[%s10674_s3 + $0x70] sm:$0xf0]  ;;  %v5631_v57 = vor.u32 %v7090_v0, %v5628_v51 }
 0x44e   :  { %2560 = vmatpush.bf16.msra.mxu2 %v5734_v28  ;;  %2305 = vmatpush.bf16.msra.mxu1 %v5683_v27  ;;  %v7097_v28 = vld [vmem:[%s10674_s3 + $0x80] sm:$0xf0]  ;;  %v5934_v27 = vld [vmem:[%s10674_s3 + $0x168] sm:$0xf]  ;;  %v5795_v51 = vld [vmem:[%s10673_s2 + $0x15c] sm:$0xf0] }
 0x44f   :  { %v7387_v49 = vpop.eup %7386  ;;  %7388 = vrcp.f32 %v1821_v58  ;;  %vm1842_vm13 = vweird.f32 %v1821_v58  ;;  %v1846_v39 = vand.u32 2147483647, %v1821_v58 }
 0x450   :  { %v1823_v60 = vmul.f32 %v7387_v49, %v1820_v38  ;;  %vm1828_vm8 = vweird.f32 %v7387_v49  ;;  %v1848_v38 = vand.u32 2147483648, %v1821_v58 }
 0x451   :  { %vm1829_vm10 = vmor %vm1827_vm9, %vm1828_vm8  ;;  %vm1847_vm15 = vcmp.eq.f32.partialorder %v1846_v39, 8.507059e+37 }
 0x452   :  { %v1824_v8 = vsub.f32 1.0, %v1823_v60  ;;  %2561 = vmatpush.bf16.msra.mxu2 %v5722_v37  ;;  %v1849_v23 = vor.u32 1.1754944e-38, %v1848_v38  ;;  %2306 = vmatpush.bf16.msra.mxu1 %v5671_v53  ;;  %v7103_v60 = vld [vmem:[%s10674_s3 + $0xb0] sm:$0xf0]  ;;  %v5638_v37 = vld [vmem:[%s10674_s3 + $0x60] sm:$0xf] }
 0x453   :  { %v7093_v38 = vld [vmem:[%s10674_s3 + $0x64] sm:$0xf]  ;;  %v7151_v53 = vld [vmem:[%s10674_s3 + $0x170] sm:$0xf0] }
 0x454   :  { %v1825_v9 = vmul.f32 %v7387_v49, %v1824_v8  ;;  %v5679_v8 = vor.u32 %v7102_v4, %v5676_v7  ;;  %v273_v7 = vadd.f32 %v8109_v3, %v7931_v61  ;;  %v5604_v3 = vld [vmem:[%s10674_s3 + $0x24] sm:$0xf0] }
 0x455   :  { %v7389_v16 = vpop.eup %7388 }
 0x456   :  { %v1838_v29 = vmul.f32 %v7389_v16, %v1821_v58  ;;  %v1826_v13 = vadd.f32 %v7387_v49, %v1825_v9  ;;  %vm1843_vm12 = vweird.f32 %v7389_v16  ;;  %v5658_v58 = vld [vmem:[%s10674_s3 + $0x80] sm:$0xf]  ;;  %v7092_v9 = vld [vmem:[%s10674_s3 + $0x58] sm:$0xf0]  ;;  %2292 = vmatpush.bf16.msra.mxu0 %v5679_v8  ;;  %v5602_v8 = vld [vmem:[%s10674_s3 + $0x18] sm:$0xf] }
 0x457   :  { %vm1844_vm14 = vmor %vm1842_vm13, %vm1843_vm12  ;;  %v5659_v59 = vor.u32 %v7098_v56, %v5658_v58  ;;  %v5635_v12 = vor.u32 %v7092_v9, %v5634_v1  ;;  %v5935_v58 = vor.u32 %v7151_v53, %v5934_v27  ;;  %v5614_v56 = vld [vmem:[%s10674_s3 + $0x30] sm:$0xf]  ;;  %v7085_v1 = vld [vmem:[%s10674_s3 + $0x20] sm:$0xf0] }
 0x458   :  { %v1839_v14 = vsub.f32 1.0, %v1838_v29  ;;  %v1830_v63 = vsel %vm1829_vm10, %v7387_v49, %v1826_v13  ;;  %v5674_v49 = vld [vmem:[%s10674_s3 + $0xa8] sm:$0xf]  ;;  %v5664_v29 = vld [vmem:[%s10674_s3 + $0x9c] sm:$0xf0] }
 0x459   :  { %v1835_v41 = vsel %vm1832_vm11, %v1834_v25, %v1830_v63  ;;  %2307 = vmatpush.bf16.msra.mxu1 %v5659_v59  ;;  %v5675_v6 = vor.u32 %v7103_v60, %v5674_v49  ;;  %v5667_v13 = vor.u32 %v7099_v20, %v5664_v29  ;;  %v5622_v25 = vld [vmem:[%s10674_s3 + $0x38] sm:$0xf]  ;;  %v7088_v59 = vld [vmem:[%s10674_s3 + $0x38] sm:$0xf0]  ;;  %v5922_v49 = vld [vmem:[%s10674_s3 + $0x150] sm:$0xf] }
 0x45a   :  { %v1853_v24 = vmul.f32 %v1852_v31, %v1835_v41  ;;  %v1840_v11 = vmul.f32 %v7389_v16, %v1839_v14  ;;  %v7089_v31 = vld [vmem:[%s10674_s3 + $0x40] sm:$0xf0]  ;;  %v5650_v63 = vld [vmem:[%s10674_s3 + $0x78] sm:$0xf]  ;;  %v7096_v41 = vld [vmem:[%s10674_s3 + $0x7c] sm:$0xf] }
 0x45b   :  { %2279 = vmatpush.bf16.msra.mxu3 %v5675_v6  ;;  %2293 = vmatpush.bf16.msra.mxu0 %v5667_v13  ;;  %v5623_v14 = vor.u32 %v7089_v31, %v5622_v25  ;;  %v5651_v19 = vor.u32 %v7097_v28, %v5650_v63  ;;  %v7148_v60 = vld [vmem:[%s10674_s3 + $0x158] sm:$0xf0]  ;;  %v5910_v20 = vld [vmem:[%s10674_s3 + $0x138] sm:$0xf]  ;;  %v5590_v28 = vld [vmem:[%s10674_s3] sm:$0xf] }
 0x45c   :  { %v1854_v2 = vadd.f32 %v1853_v24, %v299_v35  ;;  %v1841_v54 = vadd.f32 %v7389_v16, %v1840_v11  ;;  %v5655_v35 = vor.u32 %v7096_v41, %v5652_v32  ;;  %v5610_v24 = vld [vmem:[%s10674_s3 + $0x20] sm:$0xf]  ;;  %v7086_v11 = vld [vmem:[%s10674_s3 + $0x28] sm:$0xf0]  ;;  %v5923_v6 = vor.u32 %v7148_v60, %v5922_v49  ;;  %v7084_v9 = vld [vmem:[%s10674_s3 + $0x1c] sm:$0xf] }
 0x45d   :  { %v5607_v25 = vor.u32 %v7084_v9, %v5604_v3  ;;  %v7082_v41 = vld [vmem:[%s10674_s3 + $0x8] sm:$0xf0]  ;;  %v5801_v27 = vld [vmem:[%s10673_s2 + $0x158] sm:$0xf]  ;;  %v7125_v53 = vld [vmem:[%s10673_s2 + $0x160] sm:$0xf0] }
 0x45e   :  { %7390 = vtanh.f32 %v1854_v2  ;;  %v1845_v42 = vsel %vm1844_vm14, %v7389_v16, %v1841_v54  ;;  %v7100_v16 = vld [vmem:[%s10674_s3 + $0x98] sm:$0xf0]  ;;  %v5611_v2 = vor.u32 %v7086_v11, %v5610_v24  ;;  %v7094_v54 = vld [vmem:[%s10674_s3 + $0x68] sm:$0xf0]  ;;  %v5591_v32 = vor.u32 %v7082_v41, %v5590_v28  ;;  %v5898_v24 = vld [vmem:[%s10674_s3 + $0x120] sm:$0xf] }
 0x45f   :  { %v1850_v55 = vsel %vm1847_vm15, %v1849_v23, %v1845_v42  ;;  %v5663_v21 = vor.u32 %v7100_v16, %v5662_v10  ;;  %2294 = vmatpush.bf16.msra.mxu0 %v5655_v35  ;;  %v5639_v39 = vor.u32 %v7094_v54, %v5638_v37  ;;  %v5640_v42 = vld [vmem:[%s10674_s3 + $0x6c] sm:$0xf0]  ;;  %v5598_v23 = vld [vmem:[%s10674_s3 + $0x8] sm:$0xf]  ;;  %v5603_v16 = vor.u32 %v7085_v1, %v5602_v8  ;;  %v7142_v11 = vld [vmem:[%s10674_s3 + $0x128] sm:$0xf0] }
 0x460   :  { %v5899_v37 = vor.u32 %v7142_v11, %v5898_v24  ;;  %v5807_v54 = vld [vmem:[%s10673_s2 + $0x174] sm:$0xf0]  ;;  %v5789_v49 = vld [vmem:[%s10673_s2 + $0x140] sm:$0xf]  ;;  %v7122_v60 = vld [vmem:[%s10673_s2 + $0x148] sm:$0xf0] }
 0x461   :  { %2280 = vmatpush.bf16.msra.mxu3 %v5663_v21  ;;  %v7145_v21 = vld [vmem:[%s10674_s3 + $0x140] sm:$0xf0]  ;;  %v5790_v9 = vor.u32 %v7122_v60, %v5789_v49  ;;  %v7114_v28 = vld [vmem:[%s10673_s2 + $0x10c] sm:$0xf] }
 0x462   :  { %v5911_v31 = vor.u32 %v7145_v21, %v5910_v20  ;;  %v7117_v3 = vld [vmem:[%s10673_s2 + $0x124] sm:$0xf]  ;;  %v5771_v21 = vld [vmem:[%s10673_s2 + $0x12c] sm:$0xf0] }
 0x464   :  { %v7391_v15 = vpop.eup %7390 }
 0x465   :  { %v1856_v45 = vsub.f32 %v8748_v50, %v7391_v15  ;;  %2281 = vmatpush.bf16.msra.mxu3 %v5651_v19  ;;  %v5592_v19 = vld [vmem:[%s10674_s3 + $0xc] sm:$0xf0] }
 0x467   :  { %v1857_v46 = vmul.f32 %v1856_v45, %v1850_v55  ;;  %v7083_v45 = vld [vmem:[%s10674_s3 + $0x10] sm:$0xf0] }
 0x468   :  { %v5599_v55 = vor.u32 %v7083_v45, %v5598_v23  ;;  %v5886_v45 = vld [vmem:[%s10674_s3 + $0x108] sm:$0xf] }
 0x469   :  { %v8955_v36 = vadd.f32 %v7391_v15, %v1857_v46  ;;  %v5643_v15 = vor.u32 %v7093_v38, %v5640_v42  ;;  %2282 = vmatpush.bf16.msra.mxu3 %v5639_v39  ;;  %v5626_v46 = vld [vmem:[%s10674_s3 + $0x48] sm:$0xf]  ;;  %v5813_v38 = vld [vmem:[%s10673_s2 + $0x170] sm:$0xf]  ;;  %v7128_v39 = vld [vmem:[%s10673_s2 + $0x178] sm:$0xf0] }
 0x46a   :  { %v5814_v23 = vor.u32 %v7128_v39, %v5813_v38 }
 0x46b   :  { %v1863_v47 = vpack.c.bf16 %v8955_v36, %v8955_v36  ;;  %v8983_v43 = vpack.c.bf16 %v8955_v36, %v8748_v50  ;;  %v5647_v50 = vor.u32 %v7095_v26, %v5646_v40  ;;  %2295 = vmatpush.bf16.msra.mxu0 %v5643_v15  ;;  %v7087_v40 = vld [vmem:[%s10674_s3 + $0x34] sm:$0xf]  ;;  %v5615_v26 = vor.u32 %v7088_v59, %v5614_v56  ;;  %v5874_v56 = vld [vmem:[%s10674_s3 + $0xf0] sm:$0xf]  ;;  %v7136_v59 = vld [vmem:[%s10674_s3 + $0xf8] sm:$0xf0] }
 0x46d   :  { %2032 = vmatmul.bf16.vlgmr.msrb.gmra.mxu0 %v1863_v47  ;;  %2045 = vmatmul.bf16.vlgmr.msrb.gmra.mxu1 %v1863_v47 }
 0x46e   :  { %2058 = vmatmul.bf16.vlgmr.msrb.gmra.mxu2 %v1863_v47  ;;  %2308 = vmatpush.bf16.msra.mxu1 %v5647_v50  ;;  %v7091_v47 = vld [vmem:[%s10674_s3 + $0x50] sm:$0xf0]  ;;  %v5616_v50 = vld [vmem:[%s10674_s3 + $0x3c] sm:$0xf0] }
 0x46f   :  { %v5627_v48 = vor.u32 %v7091_v47, %v5626_v46  ;;  %2296 = vmatpush.bf16.msra.mxu0 %v5631_v57  ;;  %v5619_v4 = vor.u32 %v7087_v40, %v5616_v50  ;;  %v7120_v40 = vld [vmem:[%s10673_s2 + $0x13c] sm:$0xf]  ;;  %v5783_v50 = vld [vmem:[%s10673_s2 + $0x144] sm:$0xf0] }
 0x470   :  { %v5786_v1 = vor.u32 %v7120_v40, %v5783_v50 }
 0x471   :  { %2283 = vmatpush.bf16.msra.mxu3 %v5627_v48  ;;  %v7123_v48 = vld [vmem:[%s10673_s2 + $0x154] sm:$0xf] }
 0x472   :  { %2309 = vmatpush.bf16.msra.mxu1 %v5635_v12  ;;  %v5798_v57 = vor.u32 %v7123_v48, %v5795_v51  ;;  %v7108_v51 = vld [vmem:[%s10673_s2 + $0xdc] sm:$0xf] }
 0x473   :  { %2297 = vmatpush.bf16.msra.mxu0 %v5619_v4 }
 0x475   :  { %2284 = vmatpush.bf16.msra.mxu3 %v5615_v26 }
 0x476   :  { %2310 = vmatpush.bf16.msra.mxu1 %v5623_v14 }
 0x477   :  { %2298 = vmatpush.bf16.msra.mxu0 %v5607_v25  ;;  %v7119_v25 = vld [vmem:[%s10673_s2 + $0x130] sm:$0xf0] }
 0x479   :  { %2285 = vmatpush.bf16.msra.mxu3 %v5603_v16  ;;  %v7133_v16 = vld [vmem:[%s10674_s3 + $0xe0] sm:$0xf0] }
 0x47a   :  { %2311 = vmatpush.bf16.msra.mxu1 %v5611_v2  ;;  %v7126_v2 = vld [vmem:[%s10673_s2 + $0x16c] sm:$0xf] }
 0x47b   :  { %v5810_v15 = vor.u32 %v7126_v2, %v5807_v54 }
 0x47d   :  { %2286 = vmatpush.bf16.msra.mxu3 %v5591_v32  ;;  %v5765_v32 = vld [vmem:[%s10673_s2 + $0x110] sm:$0xf] }
 0x47e   :  { %2562 = vmatmul.bf16.vlgmr.msra.gmra.mxu2 %v8961_v30  ;;  %2312 = vmatpush.bf16.msra.mxu1 %v5599_v55  ;;  %v7139_v55 = vld [vmem:[%s10674_s3 + $0x110] sm:$0xf0] }
 0x47f   :  { %v5887_v0 = vor.u32 %v7139_v55, %v5886_v45 }
 0x481   :  { %2583 = vmatpush.bf16.msrb.mxu3 %v5810_v15  ;;  %v7111_v15 = vld [vmem:[%s10673_s2 + $0xf4] sm:$0xf] }
 0x482   :  { %2831 = vmatpush.bf16.msrb.mxu1 %v5935_v58  ;;  %v5802_v58 = vor.u32 %v7125_v53, %v5801_v27  ;;  %v5735_v27 = vld [vmem:[%s10673_s2 + $0xe4] sm:$0xf0]  ;;  %v5741_v53 = vld [vmem:[%s10673_s2 + $0xe0] sm:$0xf] }
 0x483   :  { %v5738_v50 = vor.u32 %v7108_v51, %v5735_v27  ;;  %v7129_v51 = vld [vmem:[%s10674_s3 + $0xc4] sm:$0xf] }
 0x485   :  { %2584 = vmatpush.bf16.msrb.mxu3 %v5798_v57 }
 0x486   :  { %2832 = vmatpush.bf16.msrb.mxu1 %v5923_v6 }
 0x489   :  { %2585 = vmatpush.bf16.msrb.mxu3 %v5786_v1  ;;  %v5723_v1 = vld [vmem:[%s10673_s2 + $0xcc] sm:$0xf0] }
 0x48a   :  { %2833 = vmatpush.bf16.msrb.mxu1 %v5911_v31 }
 0x48e   :  { %2567 = vmatmul.bf16.gmra.mxu2 %v8978_v52  ;;  %2834 = vmatpush.bf16.msrb.mxu1 %v5899_v37 }
 0x492   :  { %2835 = vmatpush.bf16.msrb.mxu1 %v5887_v0  ;;  %v7113_v0 = vld [vmem:[%s10673_s2 + $0x100] sm:$0xf0] }
 0x49e   :  { %2572 = vmatmul.bf16.gmra.mxu2 %v8983_v43 }
 0x4ea   :  { %v2033_v12 = vpop.f32.mrf.mxu0  ;;  %v2046_v10 = vpop.f32.mrf.mxu1 }
 0x4eb   :  { %v2067_v29 = vadd.f32 %v2033_v12, %v8047_v5  ;;  %v2068_v13 = vadd.f32 %v2046_v10, %v273_v7  ;;  %v7081_v5 = vld [vmem:[%s10674_s3 + $0x4] sm:$0xf]  ;;  %v5875_v7 = vor.u32 %v7136_v59, %v5874_v56  ;;  %v5862_v10 = vld [vmem:[%s10674_s3 + $0xd8] sm:$0xf] }
 0x4ec   :  { %v5595_v35 = vor.u32 %v7081_v5, %v5592_v19  ;;  %v5863_v20 = vor.u32 %v7133_v16, %v5862_v10  ;;  %v5759_v19 = vld [vmem:[%s10673_s2 + $0x114] sm:$0xf0] }
 0x4ed   :  { %v5586_v14 = vmul.f32 -1.442695, %v2067_v29  ;;  %v5587_v63 = vmul.f32 -1.442695, %v2068_v13  ;;  %2836 = vmatpush.bf16.msrb.mxu1 %v5875_v7  ;;  %v5777_v29 = vld [vmem:[%s10673_s2 + $0x128] sm:$0xf]  ;;  %v5774_v13 = vor.u32 %v7117_v3, %v5771_v21  ;;  %v5762_v2 = vor.u32 %v7114_v28, %v5759_v19 }
 0x4ee   :  { %2299 = vmatpush.bf16.msra.mxu0 %v5595_v35  ;;  %v5778_v31 = vor.u32 %v7119_v25, %v5777_v29  ;;  %v7116_v35 = vld [vmem:[%s10673_s2 + $0x118] sm:$0xf0]  ;;  %v7105_v7 = vld [vmem:[%s10673_s2 + $0xc4] sm:$0xf] }
 0x4ef   :  { %7392 = vpow2.f32 %v5586_v14  ;;  %v5850_v14 = vld [vmem:[%s10674_s3 + $0xc0] sm:$0xf]  ;;  %2586 = vmatpush.bf16.msrb.mxu3 %v5774_v13  ;;  %v5766_v37 = vor.u32 %v7116_v35, %v5765_v32  ;;  %v7144_v32 = vld [vmem:[%s10674_s3 + $0x13c] sm:$0xf]  ;;  %v5912_v35 = vld [vmem:[%s10674_s3 + $0x144] sm:$0xf0] }
 0x4f0   :  { %7394 = vpow2.f32 %v5587_v63  ;;  %v7130_v63 = vld [vmem:[%s10674_s3 + $0xc8] sm:$0xf0] }
 0x4f1   :  { %v9157_v42 = vpop.f32.mrf.mxu2  ;;  %2837 = vmatpush.bf16.msrb.mxu1 %v5863_v20  ;;  %v5851_v5 = vor.u32 %v7130_v63, %v5850_v14  ;;  %v7150_v14 = vld [vmem:[%s10674_s3 + $0x16c] sm:$0xf]  ;;  %v5936_v63 = vld [vmem:[%s10674_s3 + $0x174] sm:$0xf0] }
 0x4f2   :  { %v2035_v46 = vpop.f32.mrf.mxu0  ;;  %v2048_v47 = vpop.f32.mrf.mxu1  ;;  %2612 = vmatpush.bf16.msrb.mxu0 %v5814_v23  ;;  %v5747_v23 = vld [vmem:[%s10673_s2 + $0xfc] sm:$0xf0]  ;;  %v2107_v40 = vadd.f32 %v8742_v34, %v9157_v42  ;;  %v5729_v34 = vld [vmem:[%s10673_s2 + $0xc8] sm:$0xf] }
 0x4f3   :  { %2587 = vmatpush.bf16.msrb.mxu3 %v5762_v2  ;;  %v5750_v46 = vor.u32 %v7111_v15, %v5747_v23  ;;  %v5753_v47 = vld [vmem:[%s10673_s2 + $0xf8] sm:$0xf]  ;;  %v5900_v2 = vld [vmem:[%s10674_s3 + $0x12c] sm:$0xf0] }
 0x4f4   :  { %v5754_v48 = vor.u32 %v7113_v0, %v5753_v47  ;;  %v7132_v47 = vld [vmem:[%s10674_s3 + $0xdc] sm:$0xf]  ;;  %v5864_v0 = vld [vmem:[%s10674_s3 + $0xe4] sm:$0xf0] }
 0x4f5   :  { %v7393_v26 = vpop.eup %7392  ;;  %2838 = vmatpush.bf16.msrb.mxu1 %v5851_v5  ;;  %v5924_v5 = vld [vmem:[%s10674_s3 + $0x15c] sm:$0xf0] }
 0x4f6   :  { %v7395_v4 = vpop.eup %7394  ;;  %v9195_v6 = vadd.f32 1.0, %v7393_v26  ;;  %2613 = vmatpush.bf16.msrb.mxu0 %v5802_v58  ;;  %v7110_v58 = vld [vmem:[%s10673_s2 + $0xe8] sm:$0xf0] }
 0x4f7   :  { %v9197_v8 = vadd.f32 1.0, %v7395_v4  ;;  %2588 = vmatpush.bf16.msrb.mxu3 %v5750_v46  ;;  %v5742_v49 = vor.u32 %v7110_v58, %v5741_v53 }
 0x4f8   :  { %7396 = vrcp.f32 %v9195_v6  ;;  %v2088_v39 = vand.u32 2147483648, %v9195_v6  ;;  %v2086_v55 = vand.u32 2147483647, %v9195_v6  ;;  %vm2082_vm1 = vweird.f32 %v9195_v6 }
 0x4f9   :  { %7398 = vrcp.f32 %v9197_v8  ;;  %v2061_v12 = vpop.f32.mrf.mxu2  ;;  %v2103_v3 = vand.u32 2147483648, %v9197_v8  ;;  %vm2097_vm5 = vweird.f32 %v9197_v8 }
 0x4fa   :  { %2614 = vmatpush.bf16.msrb.mxu0 %v5790_v9  ;;  %v2089_v59 = vor.u32 1.1754944e-38, %v2088_v39  ;;  %vm2087_vm3 = vcmp.eq.f32.partialorder %v2086_v55, 8.507059e+37  ;;  %v5726_v9 = vor.u32 %v7105_v7, %v5723_v1  ;;  %v7107_v12 = vld [vmem:[%s10673_s2 + $0xd0] sm:$0xf0]  ;;  %v5888_v39 = vld [vmem:[%s10674_s3 + $0x114] sm:$0xf0] }
 0x4fb   :  { %2589 = vmatpush.bf16.msrb.mxu3 %v5738_v50  ;;  %v5730_v10 = vor.u32 %v7107_v12, %v5729_v34  ;;  %v2104_v29 = vor.u32 1.1754944e-38, %v2103_v3  ;;  %v5876_v55 = vld [vmem:[%s10674_s3 + $0xfc] sm:$0xf0]  ;;  %v246_v50 = vadd.f32 %v8065_v22, %v7904_v44  ;;  %v5906_v3 = vld [vmem:[%s10674_s3 + $0x128] sm:$0xf] }
 0x4fe   :  { %v7397_v41 = vpop.eup %7396  ;;  %2615 = vmatpush.bf16.msrb.mxu0 %v5778_v31 }
 0x4ff   :  { %v9237_v24 = vpop.eup %7398  ;;  %v2078_v11 = vmul.f32 %v7397_v41, %v9195_v6  ;;  %vm2083_vm0 = vweird.f32 %v7397_v41  ;;  %2590 = vmatpush.bf16.msrb.mxu3 %v5726_v9 }
 0x500   :  { %v2093_v38 = vmul.f32 %v9237_v24, %v9197_v8  ;;  %vm2084_vm2 = vmor %vm2082_vm1, %vm2083_vm0  ;;  %vm2098_vm4 = vweird.f32 %v9237_v24 }
 0x501   :  { %v2079_v54 = vsub.f32 1.0, %v2078_v11  ;;  %vm2099_vm6 = vmor %vm2097_vm5, %vm2098_vm4  ;;  %v7141_v11 = vld [vmem:[%s10674_s3 + $0x124] sm:$0xf] }
 0x502   :  { %2616 = vmatpush.bf16.msrb.mxu0 %v5766_v37  ;;  %v2094_v56 = vsub.f32 1.0, %v2093_v38  ;;  %v9324_v37 = vld [vmem:[%s10676_s1 + $0x8] sm:$0xff] }
 0x503   :  { %v2080_v45 = vmul.f32 %v7397_v41, %v2079_v54  ;;  %v5903_v54 = vor.u32 %v7141_v11, %v5900_v2  ;;  %v7138_v38 = vld [vmem:[%s10674_s3 + $0x10c] sm:$0xf]  ;;  %v9334_v15 = vpack.c.bf16 %v9324_v37, %v9324_v37 }
 0x504   :  { %v2095_v6 = vmul.f32 %v9237_v24, %v2094_v56  ;;  %v5891_v23 = vor.u32 %v7138_v38, %v5888_v39 }
 0x505   :  { %v2081_v57 = vadd.f32 %v7397_v41, %v2080_v45  ;;  %v7135_v45 = vld [vmem:[%s10674_s3 + $0xf4] sm:$0xf] }
 0x506   :  { %2617 = vmatpush.bf16.msrb.mxu0 %v5754_v48  ;;  %v2096_v16 = vadd.f32 %v9237_v24, %v2095_v6  ;;  %v5879_v46 = vor.u32 %v7135_v45, %v5876_v55  ;;  %v5867_v48 = vor.u32 %v7132_v47, %v5864_v0  ;;  %v5858_v55 = vld [vmem:[%s10674_s3 + $0xc8] sm:$0xf]  ;;  %v7497_v47 = vld [vmem:[%s10677_s5] ss:$0 sm:$0xff] }
 0x507   :  { %v2085_v26 = vsel %vm2084_vm2, %v7397_v41, %v2081_v57  ;;  %v5939_v41 = vor.u32 %v7150_v14, %v5936_v63  ;;  %v275_v57 = vadd.f32 %v8129_v17, %v7931_v61  ;;  %v7149_v61 = vld [vmem:[%s10674_s3 + $0x160] sm:$0xf0] }
 0x508   :  { %v2090_v60 = vsel %vm2087_vm3, %v2089_v59, %v2085_v26  ;;  %v2100_v20 = vsel %vm2099_vm6, %v9237_v24, %v2096_v16  ;;  %v5915_v24 = vor.u32 %v7144_v32, %v5912_v35  ;;  %v5942_v59 = vld [vmem:[%s10674_s3 + $0x170] sm:$0xf]  ;;  %v5870_v35 = vld [vmem:[%s10674_s3 + $0xe0] sm:$0xf] }
 0x509   :  { %v2108_v4 = vmul.f32 %v2107_v40, %v2090_v60  ;;  %v5930_v40 = vld [vmem:[%s10674_s3 + $0x158] sm:$0xf]  ;;  %v7146_v60 = vld [vmem:[%s10674_s3 + $0x148] sm:$0xf0] }
 0x50a   :  { %2618 = vmatpush.bf16.msrb.mxu0 %v5742_v49  ;;  %v5931_v26 = vor.u32 %v7149_v61, %v5930_v40  ;;  %v5918_v49 = vld [vmem:[%s10674_s3 + $0x140] sm:$0xf]  ;;  %v7174_v61 = vld [vmem:[%s10674_s3 + $0x16c] sm:$0xf] }
 0x50b   :  { %v2109_v42 = vadd.f32 %v2108_v4, %v8097_v62  ;;  %v2101_v62 = vand.u32 2147483647, %v9197_v8  ;;  %v5919_v1 = vor.u32 %v7146_v60, %v5918_v49 }
 0x50d   :  { %7400 = vtanh.f32 %v2109_v42  ;;  %vm2102_vm7 = vcmp.eq.f32.partialorder %v2101_v62, 8.507059e+37  ;;  %v7143_v62 = vld [vmem:[%s10674_s3 + $0x130] sm:$0xf0] }
 0x50e   :  { %2619 = vmatpush.bf16.msrb.mxu0 %v5730_v10  ;;  %v2105_v25 = vsel %vm2102_vm7, %v2104_v29, %v2100_v20  ;;  %v5907_v20 = vor.u32 %v7143_v62, %v5906_v3  ;;  %v2563_v3 = vpop.f32.mrf.mxu2 }
 0x513   :  { %v7401_v21 = vpop.eup %7400 }
 0x514   :  { %v2111_v13 = vsub.f32 %v8955_v36, %v7401_v21  ;;  %v7147_v36 = vld [vmem:[%s10674_s3 + $0x154] sm:$0xf] }
 0x515   :  { %v5927_v19 = vor.u32 %v7147_v36, %v5924_v5 }
 0x516   :  { %v2112_v31 = vmul.f32 %v2111_v13, %v2105_v25  ;;  %v5894_v13 = vld [vmem:[%s10674_s3 + $0x110] sm:$0xf]  ;;  %v7140_v25 = vld [vmem:[%s10674_s3 + $0x118] sm:$0xf0]  ;;  %v9470_v62 = vpop.f32.mrf.mxu2 }
 0x518   :  { %v9299_v28 = vadd.f32 %v7401_v21, %v2112_v31  ;;  %v5882_v31 = vld [vmem:[%s10674_s3 + $0xf8] sm:$0xf] }
 0x51a   :  { %v2118_v8 = vpack.c.bf16 %v9299_v28, %v9299_v28 }
 0x51c   :  { %2287 = vmatmul.bf16.vlgmr.msra.gmra.mxu3 %v2118_v8  ;;  %2300 = vmatmul.bf16.vlgmr.msra.gmra.mxu0 %v2118_v8 }
 0x51d   :  { %2313 = vmatmul.bf16.vlgmr.msra.gmra.mxu1 %v2118_v8  ;;  %v5895_v8 = vor.u32 %v7140_v25, %v5894_v13 }
 0x51e   :  { %2844 = vmatpush.bf16.msra.mxu1 %v5939_v41  ;;  %v7137_v41 = vld [vmem:[%s10674_s3 + $0x100] sm:$0xf0] }
 0x51f   :  { %v5883_v5 = vor.u32 %v7137_v41, %v5882_v31 }
 0x522   :  { %2845 = vmatpush.bf16.msra.mxu1 %v5927_v19 }
 0x526   :  { %2846 = vmatpush.bf16.msra.mxu1 %v5915_v24  ;;  %v7134_v24 = vld [vmem:[%s10674_s3 + $0xe8] sm:$0xf0] }
 0x527   :  { %v5871_v39 = vor.u32 %v7134_v24, %v5870_v35  ;;  %v7176_v35 = vld [vmem:[%s10674_s3 + $0x178] sm:$0xf0] }
 0x52a   :  { %2847 = vmatpush.bf16.msra.mxu1 %v5903_v54 }
 0x52c   :  { %2591 = vmatmul.bf16.vlgmr.msrb.gmra.mxu3 %v8961_v30  ;;  %2620 = vmatmul.bf16.vlgmr.msrb.gmra.mxu0 %v8961_v30  ;;  %v5852_v30 = vld [vmem:[%s10674_s3 + $0xcc] sm:$0xf0] }
 0x52d   :  { %2839 = vmatmul.bf16.vlgmr.msrb.gmra.mxu1 %v9334_v15  ;;  %v5855_v27 = vor.u32 %v7129_v51, %v5852_v30  ;;  %v304_v30 = vadd.f32 %v8149_v33, %v8062_v18  ;;  %v7172_v33 = vld [vmem:[%s10674_s3 + $0x158] sm:$0xf0] }
 0x52e   :  { %2848 = vmatpush.bf16.msra.mxu1 %v5891_v23 }
 0x532   :  { %2849 = vmatpush.bf16.msra.mxu1 %v5879_v46  ;;  %v7131_v46 = vld [vmem:[%s10674_s3 + $0xd0] sm:$0xf0] }
 0x536   :  { %2850 = vmatpush.bf16.msra.mxu1 %v5867_v48 }
 0x53a   :  { %2851 = vmatpush.bf16.msra.mxu1 %v5855_v27 }
 0x53c   :  { %2596 = vmatmul.bf16.gmra.mxu3 %v8978_v52  ;;  %2625 = vmatmul.bf16.gmra.mxu0 %v8978_v52  ;;  %v7152_v52 = vld [vmem:[%s10674_s3 + $0x178] sm:$0xf0] }
 0x53d   :  { %2852 = vmatmul.bf16.vlgmr.msra.gmra.mxu1 %v9334_v15 }
 0x54c   :  { %2601 = vmatmul.bf16.gmra.mxu3 %v8983_v43  ;;  %2630 = vmatmul.bf16.gmra.mxu0 %v8983_v43  ;;  %v5943_v43 = vor.u32 %v7152_v52, %v5942_v59  ;;  %v6064_v59 = vld [vmem:[%s10674_s3 + $0x168] sm:$0xf]  ;;  %v6052_v52 = vld [vmem:[%s10674_s3 + $0x150] sm:$0xf] }
 0x54e   :  { %2857 = vmatpush.bf16.msrb.mxu2 %v5943_v43 }
 0x552   :  { %2858 = vmatpush.bf16.msrb.mxu2 %v5931_v26 }
 0x556   :  { %2859 = vmatpush.bf16.msrb.mxu2 %v5919_v1 }
 0x55a   :  { %2860 = vmatpush.bf16.msrb.mxu2 %v5907_v20  ;;  %v9475_v20 = vld [vmem:[%s10678_s4 + $0x3] sm:$0x7] }
 0x55b   :  { %v9511_v24 = vperm.slane %v9475_v20, 1 }
 0x55e   :  { %2861 = vmatpush.bf16.msrb.mxu2 %v5895_v8 }
 0x562   :  { %2862 = vmatpush.bf16.msrb.mxu2 %v5883_v5  ;;  %v6072_v5 = vld [vmem:[%s10674_s3 + $0x170] sm:$0xf] }
 0x566   :  { %2863 = vmatpush.bf16.msrb.mxu2 %v5871_v39  ;;  %v6042_v39 = vld [vmem:[%s10674_s3 + $0x144] sm:$0xf0] }
 0x599   :  { %v2301_v53 = vpop.f32.mrf.mxu0 }
 0x59a   :  { %v2323_v58 = vadd.f32 %v2301_v53, %v275_v57  ;;  %v9364_v56 = vpop.f32.mrf.mxu1  ;;  %v5859_v57 = vor.u32 %v7131_v46, %v5858_v55  ;;  %v7173_v46 = vld [vmem:[%s10674_s3 + $0x160] sm:$0xf0] }
 0x59b   :  { %v2362_v0 = vadd.f32 %v7497_v47, %v9364_v56  ;;  %v7175_v56 = vld [vmem:[%s10674_s3 + $0x170] sm:$0xf0]  ;;  %v6004_v47 = vld [vmem:[%s10674_s3 + $0xf0] sm:$0xf] }
 0x59c   :  { %v5685_v17 = vmul.f32 -1.442695, %v2323_v58  ;;  %2864 = vmatpush.bf16.msrb.mxu2 %v5859_v57  ;;  %v6065_v18 = vor.u32 %v7175_v56, %v6064_v59 }
 0x59e   :  { %7402 = vpow2.f32 %v5685_v17  ;;  %v6066_v17 = vld [vmem:[%s10674_s3 + $0x174] sm:$0xf0]  ;;  %3086 = vmatpush.bf16.msra.mxu3 %v6065_v18  ;;  %v7165_v18 = vld [vmem:[%s10674_s3 + $0x124] sm:$0xf] }
 0x59f   :  { %v2288_v4 = vpop.f32.mrf.mxu3  ;;  %v6069_v49 = vor.u32 %v7174_v61, %v6066_v17 }
 0x5a0   :  { %v2322_v6 = vadd.f32 %v2288_v4, %v246_v50  ;;  %v6053_v50 = vor.u32 %v7172_v33, %v6052_v52  ;;  %v6040_v4 = vld [vmem:[%s10674_s3 + $0x138] sm:$0xf]  ;;  %v6036_v33 = vld [vmem:[%s10674_s3 + $0x128] sm:$0xf] }
 0x5a1   :  { %v2303_v7 = vpop.f32.mrf.mxu0  ;;  %3099 = vmatpush.bf16.msra.mxu0 %v6069_v49  ;;  %v6024_v49 = vld [vmem:[%s10674_s3 + $0x110] sm:$0xf] }
 0x5a2   :  { %v5684_v34 = vmul.f32 -1.442695, %v2322_v6  ;;  %v2316_v42 = vpop.f32.mrf.mxu1  ;;  %v7169_v6 = vld [vmem:[%s10674_s3 + $0x140] sm:$0xf0]  ;;  %3087 = vmatpush.bf16.msra.mxu3 %v6053_v50  ;;  %v6018_v50 = vld [vmem:[%s10674_s3 + $0x114] sm:$0xf0] }
 0x5a3   :  { %v6041_v42 = vor.u32 %v7169_v6, %v6040_v4  ;;  %v7164_v4 = vld [vmem:[%s10674_s3 + $0x118] sm:$0xf0] }
 0x5a4   :  { %7404 = vpow2.f32 %v5684_v34  ;;  %v7403_v9 = vpop.eup %7402 }
 0x5a5   :  { %v9386_v12 = vadd.f32 1.0, %v7403_v9 }
 0x5a6   :  { %3088 = vmatpush.bf16.msra.mxu3 %v6041_v42  ;;  %v6006_v42 = vld [vmem:[%s10674_s3 + $0xfc] sm:$0xf0] }
 0x5a7   :  { %v2290_v44 = vpop.f32.mrf.mxu3  ;;  %v2358_v26 = vand.u32 2147483648, %v9386_v12  ;;  %vm2352_vm13 = vweird.f32 %v9386_v12  ;;  %v2356_v60 = vand.u32 2147483647, %v9386_v12 }
 0x5a9   :  { %v2359_v34 = vor.u32 1.1754944e-38, %v2358_v26  ;;  %vm2357_vm15 = vcmp.eq.f32.partialorder %v2356_v60, 8.507059e+37  ;;  %v7162_v26 = vld [vmem:[%s10674_s3 + $0x10c] sm:$0xf] }
 0x5aa   :  { %v7405_v22 = vpop.eup %7404  ;;  %v9388_v10 = vpop.f32.mrf.mxu1  ;;  %v6021_v60 = vor.u32 %v7162_v26, %v6018_v50 }
 0x5ab   :  { %v2330_v16 = vadd.f32 1.0, %v7405_v22 }
 0x5ad   :  { %7406 = vrcp.f32 %v2330_v16  ;;  %v2343_v32 = vand.u32 2147483648, %v2330_v16  ;;  %v2341_v2 = vand.u32 2147483647, %v2330_v16  ;;  %vm2337_vm9 = vweird.f32 %v2330_v16 }
 0x5ae   :  { %7408 = vrcp.f32 %v9386_v12 }
 0x5af   :  { %v2344_v45 = vor.u32 1.1754944e-38, %v2343_v32  ;;  %vm2342_vm11 = vcmp.eq.f32.partialorder %v2341_v2, 8.507059e+37  ;;  %v2592_v2 = vpop.f32.mrf.mxu3 }
 0x5b2   :  { %v2842_v21 = vpop.f32.mrf.mxu1 }
 0x5b3   :  { %v7407_v29 = vpop.eup %7406  ;;  %v9477_v21 = vpop.f32.mrf.mxu2 }
 0x5b4   :  { %v9406_v14 = vpop.eup %7408  ;;  %v2333_v63 = vmul.f32 %v7407_v29, %v2330_v16  ;;  %vm2338_vm8 = vweird.f32 %v7407_v29 }
 0x5b5   :  { %v2348_v19 = vmul.f32 %v9406_v14, %v9386_v12  ;;  %vm2339_vm10 = vmor %vm2337_vm9, %vm2338_vm8  ;;  %vm2353_vm12 = vweird.f32 %v9406_v14 }
 0x5b6   :  { %v2334_v36 = vsub.f32 1.0, %v2333_v63  ;;  %vm2354_vm14 = vmor %vm2352_vm13, %vm2353_vm12  ;;  %v6054_v63 = vld [vmem:[%s10674_s3 + $0x15c] sm:$0xf0] }
 0x5b7   :  { %v2349_v23 = vsub.f32 1.0, %v2348_v19 }
 0x5b8   :  { %v2335_v11 = vmul.f32 %v7407_v29, %v2334_v36  ;;  %v6016_v36 = vld [vmem:[%s10674_s3 + $0x108] sm:$0xf] }
 0x5b9   :  { %v2350_v53 = vmul.f32 %v9406_v14, %v2349_v23  ;;  %v6060_v23 = vld [vmem:[%s10674_s3 + $0x158] sm:$0xf] }
 0x5ba   :  { %v2336_v54 = vadd.f32 %v7407_v29, %v2335_v11  ;;  %v9419_v38 = vpop.f32.mrf.mxu1  ;;  %v6073_v11 = vor.u32 %v7176_v35, %v6072_v5  ;;  %v7158_v5 = vld [vmem:[%s10674_s3 + $0xe8] sm:$0xf0] }
 0x5bb   :  { %v2351_v43 = vadd.f32 %v9406_v14, %v2350_v53  ;;  %v9496_v41 = vpop.f32.mrf.mxu2 }
 0x5bc   :  { %v2340_v48 = vsel %vm2339_vm10, %v7407_v29, %v2336_v54  ;;  %v6028_v29 = vld [vmem:[%s10674_s3 + $0x120] sm:$0xf]  ;;  %3112 = vmatpush.bf16.msrb.mxu1 %v6073_v11  ;;  %v7168_v54 = vld [vmem:[%s10674_s3 + $0x13c] sm:$0xf]  ;;  %v5982_v11 = vld [vmem:[%s10674_s3 + $0xcc] sm:$0xf0] }
 0x5bd   :  { %v2345_v51 = vsel %vm2342_vm11, %v2344_v45, %v2340_v48  ;;  %v2355_v7 = vsel %vm2354_vm14, %v9406_v14, %v2351_v43  ;;  %v7171_v14 = vld [vmem:[%s10674_s3 + $0x154] sm:$0xf]  ;;  %v2593_v45 = vadd.f32 %v2592_v2, %v9511_v24  ;;  %v6045_v55 = vor.u32 %v7168_v54, %v6042_v39  ;;  %v5988_v2 = vld [vmem:[%s10674_s3 + $0xc8] sm:$0xf] }
 0x5be   :  { %v2363_v27 = vmul.f32 %v2362_v0, %v2345_v51  ;;  %v2360_v44 = vsel %vm2357_vm15, %v2359_v34, %v2355_v7  ;;  %v6057_v8 = vor.u32 %v7171_v14, %v6054_v63  ;;  %v7160_v0 = vld [vmem:[%s10674_s3 + $0xf8] sm:$0xf0]  ;;  %v6061_v48 = vor.u32 %v7173_v46, %v6060_v23  ;;  %v7167_v43 = vld [vmem:[%s10674_s3 + $0x130] sm:$0xf0]  ;;  %v5994_v63 = vld [vmem:[%s10674_s3 + $0xe4] sm:$0xf0] }
 0x5bf   :  { %v6005_v51 = vor.u32 %v7160_v0, %v6004_v47  ;;  %v2874_v57 = vadd.f32 %v9419_v38, %v2593_v45  ;;  %v6030_v38 = vld [vmem:[%s10674_s3 + $0x12c] sm:$0xf0]  ;;  %v6037_v61 = vor.u32 %v7167_v43, %v6036_v33  ;;  %v6025_v7 = vor.u32 %v7164_v4, %v6024_v49  ;;  %v7159_v34 = vld [vmem:[%s10674_s3 + $0xf4] sm:$0xf]  ;;  %v7156_v14 = vld [vmem:[%s10674_s3 + $0xdc] sm:$0xf] }
 0x5c0   :  { %v2364_v58 = vadd.f32 %v2363_v27, %v304_v30  ;;  %3100 = vmatpush.bf16.msra.mxu0 %v6057_v8  ;;  %v6048_v30 = vld [vmem:[%s10674_s3 + $0x140] sm:$0xf]  ;;  %v7170_v27 = vld [vmem:[%s10674_s3 + $0x148] sm:$0xf0]  ;;  %3113 = vmatpush.bf16.msrb.mxu1 %v6061_v48  ;;  %v7155_v54 = vld [vmem:[%s10674_s3 + $0xd0] sm:$0xf0] }
 0x5c1   :  { %v6049_v53 = vor.u32 %v7170_v27, %v6048_v30  ;;  %v5945_v56 = vmul.f32 -1.442695, %v2874_v57  ;;  %v5989_v45 = vor.u32 %v7155_v54, %v5988_v2  ;;  %v9633_v27 = vld [vmem:[%s10677_s5 + $0x1] ss:$0 sm:$0xff]  ;;  %v9636_v57 = vperm.slane %v9475_v20, 2 }
 0x5c2   :  { %7410 = vtanh.f32 %v2364_v58  ;;  %v2855_v40 = vpop.f32.mrf.mxu1  ;;  %v7200_v2 = vld [vmem:[%s10674_s3 + $0x178] sm:$0xf0] }
 0x5c3   :  { %v9539_v58 = vpop.f32.mrf.mxu2  ;;  %v6033_v40 = vor.u32 %v7165_v18, %v6030_v38 }
 0x5c4   :  { %3101 = vmatpush.bf16.msra.mxu0 %v6045_v55  ;;  %3114 = vmatpush.bf16.msrb.mxu1 %v6049_v53 }
 0x5c8   :  { %v7411_v1 = vpop.eup %7410  ;;  %3102 = vmatpush.bf16.msra.mxu0 %v6033_v40  ;;  %3115 = vmatpush.bf16.msrb.mxu1 %v6037_v61 }
 0x5c9   :  { %v2366_v9 = vsub.f32 %v9299_v28, %v7411_v1 }
 0x5cb   :  { %v2367_v22 = vmul.f32 %v2366_v9, %v2360_v44  ;;  %v9556_v17 = vpop.f32.mrf.mxu2  ;;  %v6012_v9 = vld [vmem:[%s10674_s3 + $0xf8] sm:$0xf] }
 0x5cc   :  { %3103 = vmatpush.bf16.msra.mxu0 %v6021_v60  ;;  %3116 = vmatpush.bf16.msrb.mxu1 %v6025_v7 }
 0x5cd   :  { %v2368_v12 = vadd.f32 %v7411_v1, %v2367_v22  ;;  %v6009_v22 = vor.u32 %v7159_v34, %v6006_v42 }
 0x5cf   :  { %v2416_v16 = vpack.c.bf16 %v2368_v12, %v9299_v28  ;;  %4693 = vst [vmem:[%s10679_s9] sm:$0xff] %v2368_v12  ;;  %v9480_v28 = vperm.slane %v9475_v20, 0  ;;  %v7161_v12 = vld [vmem:[%s10674_s3 + $0x100] sm:$0xf0] }
 0x5d0   :  { %3104 = vmatpush.bf16.msra.mxu0 %v6009_v22 }
 0x5d1   :  { %2577 = vmatmul.bf16.gmra.mxu2 %v2416_v16  ;;  %2606 = vmatmul.bf16.gmra.mxu3 %v2416_v16  ;;  %v2564_v25 = vadd.f32 %v2563_v3, %v9480_v28  ;;  %v7157_v3 = vld [vmem:[%s10674_s3 + $0xe0] sm:$0xf0] }
 0x5d2   :  { %2635 = vmatmul.bf16.gmra.mxu0 %v2416_v16  ;;  %v5992_v16 = vld [vmem:[%s10674_s3 + $0xd8] sm:$0xf] }
 0x5d3   :  { %v2873_v31 = vadd.f32 %v9388_v10, %v2564_v25  ;;  %v7163_v10 = vld [vmem:[%s10674_s3 + $0x110] sm:$0xf0]  ;;  %v5993_v25 = vor.u32 %v7157_v3, %v5992_v16 }
 0x5d4   :  { %v6017_v32 = vor.u32 %v7163_v10, %v6016_v36  ;;  %v5997_v36 = vor.u32 %v7156_v14, %v5994_v63  ;;  %v6000_v10 = vld [vmem:[%s10674_s3 + $0xe0] sm:$0xf] }
 0x5d5   :  { %v5944_v19 = vmul.f32 -1.442695, %v2873_v31  ;;  %v7154_v31 = vld [vmem:[%s10674_s3 + $0xc8] sm:$0xf0]  ;;  %v6001_v35 = vor.u32 %v7158_v5, %v6000_v10  ;;  %v6194_v10 = vld [vmem:[%s10674_s3 + $0x168] sm:$0xf] }
 0x5d6   :  { %3105 = vmatpush.bf16.msra.mxu0 %v5997_v36  ;;  %v7199_v5 = vld [vmem:[%s10674_s3 + $0x170] sm:$0xf0] }
 0x5d7   :  { %7412 = vpow2.f32 %v5944_v19  ;;  %v7153_v19 = vld [vmem:[%s10674_s3 + $0xc4] sm:$0xf] }
 0x5d8   :  { %7414 = vpow2.f32 %v5945_v56  ;;  %v5985_v23 = vor.u32 %v7153_v19, %v5982_v11  ;;  %v7198_v19 = vld [vmem:[%s10674_s3 + $0x16c] sm:$0xf]  ;;  %v6202_v11 = vld [vmem:[%s10674_s3 + $0x170] sm:$0xf] }
 0x5da   :  { %3106 = vmatpush.bf16.msra.mxu0 %v5985_v23 }
 0x5dd   :  { %v7413_v59 = vpop.eup %7412 }
 0x5de   :  { %v9541_v52 = vadd.f32 1.0, %v7413_v59  ;;  %v7415_v6 = vpop.eup %7414  ;;  %v2621_v59 = vpop.f32.mrf.mxu0 }
 0x5df   :  { %v9579_v44 = vadd.f32 1.0, %v7415_v6 }
 0x5e0   :  { %7416 = vrcp.f32 %v9541_v52  ;;  %vm2888_vm1 = vweird.f32 %v9541_v52  ;;  %v2892_v30 = vand.u32 2147483647, %v9541_v52 }
 0x5e1   :  { %2865 = vmatmul.bf16.vlgmr.msrb.gmra.mxu2 %v9334_v15  ;;  %v7166_v15 = vld [vmem:[%s10674_s3 + $0x128] sm:$0xf0]  ;;  %7418 = vrcp.f32 %v9579_v44  ;;  %v2909_v20 = vand.u32 2147483648, %v9579_v44  ;;  %vm2903_vm5 = vweird.f32 %v9579_v44  ;;  %v2907_v60 = vand.u32 2147483647, %v9579_v44 }
 0x5e2   :  { %v6029_v13 = vor.u32 %v7166_v15, %v6028_v29  ;;  %v6013_v29 = vor.u32 %v7161_v12, %v6012_v9  ;;  %v5980_v15 = vld [vmem:[%s10674_s3 + $0xc0] sm:$0xf]  ;;  %vm2893_vm3 = vcmp.eq.f32.partialorder %v2892_v30, 8.507059e+37  ;;  %v6190_v30 = vld [vmem:[%s10674_s3 + $0x158] sm:$0xf] }
 0x5e3   :  { %v2910_v7 = vor.u32 1.1754944e-38, %v2909_v20  ;;  %vm2908_vm7 = vcmp.eq.f32.partialorder %v2907_v60, 8.507059e+37  ;;  %v7194_v60 = vld [vmem:[%s10674_s3 + $0x148] sm:$0xf0] }
 0x5e4   :  { %3089 = vmatpush.bf16.msra.mxu3 %v6029_v13  ;;  %3117 = vmatpush.bf16.msrb.mxu1 %v6013_v29 }
 0x5e6   :  { %v7417_v1 = vpop.eup %7416  ;;  %v9648_v12 = vpop.f32.mrf.mxu0 }
 0x5e7   :  { %v2884_v13 = vmul.f32 %v7417_v1, %v9541_v52  ;;  %v7419_v47 = vpop.eup %7418  ;;  %vm2889_vm0 = vweird.f32 %v7417_v1 }
 0x5e8   :  { %3090 = vmatpush.bf16.msra.mxu3 %v6017_v32  ;;  %v5981_v32 = vor.u32 %v7154_v31, %v5980_v15  ;;  %3118 = vmatpush.bf16.msrb.mxu1 %v6001_v35  ;;  %v2899_v48 = vmul.f32 %v7419_v47, %v9579_v44  ;;  %vm2890_vm2 = vmor %vm2888_vm1, %vm2889_vm0  ;;  %vm2904_vm4 = vweird.f32 %v7419_v47  ;;  %v2594_v44 = vpop.f32.mrf.mxu3  ;;  %v6196_v35 = vld [vmem:[%s10674_s3 + $0x174] sm:$0xf0] }
 0x5e9   :  { %v2885_v39 = vsub.f32 1.0, %v2884_v13  ;;  %vm2905_vm6 = vmor %vm2903_vm5, %vm2904_vm4  ;;  %v6199_v54 = vor.u32 %v7198_v19, %v6196_v35  ;;  %v6146_v35 = vld [vmem:[%s10674_s3 + $0x108] sm:$0xf] }
 0x5ea   :  { %v2900_v56 = vsub.f32 1.0, %v2899_v48 }
 0x5eb   :  { %v2886_v55 = vmul.f32 %v7417_v1, %v2885_v39  ;;  %v6203_v39 = vor.u32 %v7200_v2, %v6202_v11  ;;  %v7187_v11 = vld [vmem:[%s10674_s3 + $0x110] sm:$0xf0]  ;;  %v7186_v2 = vld [vmem:[%s10674_s3 + $0x10c] sm:$0xf] }
 0x5ec   :  { %3091 = vmatpush.bf16.msra.mxu3 %v6005_v51  ;;  %3119 = vmatpush.bf16.msrb.mxu1 %v5989_v45  ;;  %v2894_v51 = vand.u32 2147483648, %v9541_v52  ;;  %v2622_v52 = vadd.f32 %v2621_v59, %v9636_v57  ;;  %v2901_v61 = vmul.f32 %v7419_v47, %v2900_v56  ;;  %v6182_v45 = vld [vmem:[%s10674_s3 + $0x150] sm:$0xf] }
 0x5ed   :  { %v2887_v0 = vadd.f32 %v7417_v1, %v2886_v55  ;;  %3364 = vmatpush.bf16.msrb.mxu0 %v6203_v39  ;;  %v7196_v55 = vld [vmem:[%s10674_s3 + $0x158] sm:$0xf0]  ;;  %v6148_v39 = vld [vmem:[%s10674_s3 + $0x114] sm:$0xf0] }
 0x5ee   :  { %v2895_v38 = vor.u32 1.1754944e-38, %v2894_v51  ;;  %v2902_v49 = vadd.f32 %v7419_v47, %v2901_v61  ;;  %v9650_v16 = vpop.f32.mrf.mxu0  ;;  %v6183_v48 = vor.u32 %v7196_v55, %v6182_v45  ;;  %v6184_v51 = vld [vmem:[%s10674_s3 + $0x15c] sm:$0xf0]  ;;  %v6154_v45 = vld [vmem:[%s10674_s3 + $0x110] sm:$0xf] }
 0x5ef   :  { %v2891_v53 = vsel %vm2890_vm2, %v7417_v1, %v2887_v0  ;;  %v2595_v0 = vadd.f32 %v2594_v44, %v9511_v24  ;;  %v6166_v44 = vld [vmem:[%s10674_s3 + $0x128] sm:$0xf]  ;;  %v7188_v55 = vld [vmem:[%s10674_s3 + $0x118] sm:$0xf0] }
 0x5f0   :  { %3092 = vmatpush.bf16.msra.mxu3 %v5993_v25  ;;  %v2896_v40 = vsel %vm2893_vm3, %v2895_v38, %v2891_v53  ;;  %v2906_v4 = vsel %vm2905_vm6, %v7419_v47, %v2902_v49  ;;  %v9652_v3 = vpop.f32.mrf.mxu3  ;;  %v7195_v47 = vld [vmem:[%s10674_s3 + $0x154] sm:$0xf]  ;;  %v7197_v53 = vld [vmem:[%s10674_s3 + $0x160] sm:$0xf0] }
 0x5f1   :  { %v2911_v34 = vsel %vm2908_vm7, %v2910_v7, %v2906_v4  ;;  %v6187_v56 = vor.u32 %v7195_v47, %v6184_v51  ;;  %v2566_v4 = vadd.f32 %v9470_v62, %v9480_v28  ;;  %v6158_v7 = vld [vmem:[%s10674_s3 + $0x120] sm:$0xf]  ;;  %v6160_v62 = vld [vmem:[%s10674_s3 + $0x12c] sm:$0xf0]  ;;  %v6151_v51 = vor.u32 %v7186_v2, %v6148_v39 }
 0x5f4   :  { %3093 = vmatpush.bf16.msra.mxu3 %v5981_v32  ;;  %v6195_v32 = vor.u32 %v7199_v5, %v6194_v10  ;;  %v7191_v10 = vld [vmem:[%s10674_s3 + $0x130] sm:$0xf0] }
 0x5f6   :  { %v9654_v29 = vpop.f32.mrf.mxu0  ;;  %3338 = vmatpush.bf16.msra.mxu2 %v6195_v32  ;;  %v6167_v32 = vor.u32 %v7191_v10, %v6166_v44  ;;  %v6110_v44 = vld [vmem:[%s10674_s3 + $0xc0] sm:$0xf]  ;;  %v7178_v10 = vld [vmem:[%s10674_s3 + $0xc8] sm:$0xf0] }
 0x5f7   :  { %v6111_v2 = vor.u32 %v7178_v10, %v6110_v44  ;;  %v6326_v10 = vld [vmem:[%s10674_s3 + $0x174] sm:$0xf0] }
 0x5f8   :  { %3351 = vmatpush.bf16.msrb.mxu3 %v6199_v54 }
 0x5fa   :  { %3339 = vmatpush.bf16.msra.mxu2 %v6183_v48  ;;  %v6147_v48 = vor.u32 %v7187_v11, %v6146_v35  ;;  %v6118_v35 = vld [vmem:[%s10674_s3 + $0xc8] sm:$0xf]  ;;  %v7179_v11 = vld [vmem:[%s10674_s3 + $0xd0] sm:$0xf0] }
 0x5fb   :  { %v6119_v39 = vor.u32 %v7179_v11, %v6118_v35  ;;  %v6312_v11 = vld [vmem:[%s10674_s3 + $0x150] sm:$0xf] }
 0x5fc   :  { %3352 = vmatpush.bf16.msrb.mxu3 %v6187_v56  ;;  %v7183_v56 = vld [vmem:[%s10674_s3 + $0xf4] sm:$0xf] }
 0x5fe   :  { %v9658_v15 = vpop.f32.mrf.mxu0 }
 0x606   :  { %v9662_v25 = vpop.f32.mrf.mxu0 }
 0x64f   :  { %v9666_v14 = vpop.f32.mrf.mxu0 }
 0x654   :  { %v9603_v8 = vpop.f32.mrf.mxu2 }
 0x657   :  { %v9670_v36 = vpop.f32.mrf.mxu0 }
 0x65c   :  { %v9624_v46 = vpop.f32.mrf.mxu2 }
 0x664   :  { %v2866_v18 = vpop.f32.mrf.mxu2 }
 0x665   :  { %v2916_v33 = vadd.f32 %v9633_v27, %v2866_v18  ;;  %v6191_v18 = vor.u32 %v7197_v53, %v6190_v30  ;;  %v6134_v30 = vld [vmem:[%s10674_s3 + $0xf0] sm:$0xf]  ;;  %v7184_v53 = vld [vmem:[%s10674_s3 + $0xf8] sm:$0xf0] }
 0x667   :  { %v2917_v43 = vmul.f32 %v2916_v33, %v2896_v40  ;;  %3365 = vmatpush.bf16.msrb.mxu0 %v6191_v18  ;;  %v6170_v40 = vld [vmem:[%s10674_s3 + $0x138] sm:$0xf]  ;;  %v6136_v18 = vld [vmem:[%s10674_s3 + $0xfc] sm:$0xf0] }
 0x669   :  { %v2918_v26 = vadd.f32 %v2917_v43, %v2622_v52  ;;  %v7193_v52 = vld [vmem:[%s10674_s3 + $0x140] sm:$0xf0]  ;;  %v7192_v43 = vld [vmem:[%s10674_s3 + $0x13c] sm:$0xf] }
 0x66a   :  { %v6171_v61 = vor.u32 %v7193_v52, %v6170_v40  ;;  %v7185_v40 = vld [vmem:[%s10674_s3 + $0x100] sm:$0xf0]  ;;  %v6135_v52 = vor.u32 %v7184_v53, %v6134_v30 }
 0x66b   :  { %7420 = vtanh.f32 %v2918_v26  ;;  %v6172_v26 = vld [vmem:[%s10674_s3 + $0x144] sm:$0xf0] }
 0x66c   :  { %v2868_v50 = vpop.f32.mrf.mxu2  ;;  %v6175_v20 = vor.u32 %v7192_v43, %v6172_v26  ;;  %3340 = vmatpush.bf16.msra.mxu2 %v6171_v61  ;;  %v6139_v26 = vor.u32 %v7183_v56, %v6136_v18 }
 0x66d   :  { %v6178_v50 = vld [vmem:[%s10674_s3 + $0x140] sm:$0xf] }
 0x66e   :  { %3353 = vmatpush.bf16.msrb.mxu3 %v6175_v20 }
 0x671   :  { %v7421_v6 = vpop.eup %7420 }
 0x672   :  { %v2920_v1 = vsub.f32 %v9324_v37, %v7421_v6  ;;  %v9656_v37 = vpop.f32.mrf.mxu3 }
 0x674   :  { %v2921_v42 = vmul.f32 %v2920_v1, %v2911_v34  ;;  %v7190_v1 = vld [vmem:[%s10674_s3 + $0x128] sm:$0xf0]  ;;  %v7189_v34 = vld [vmem:[%s10674_s3 + $0x124] sm:$0xf] }
 0x675   :  { %v6163_v19 = vor.u32 %v7189_v34, %v6160_v62 }
 0x676   :  { %v9644_v9 = vadd.f32 %v7421_v6, %v2921_v42  ;;  %v6179_v6 = vor.u32 %v7194_v60, %v6178_v50  ;;  %v6122_v50 = vld [vmem:[%s10674_s3 + $0xd8] sm:$0xf]  ;;  %v7180_v60 = vld [vmem:[%s10674_s3 + $0xdc] sm:$0xf] }
 0x677   :  { %3354 = vmatpush.bf16.msrb.mxu3 %v6163_v19  ;;  %v7177_v19 = vld [vmem:[%s10674_s3 + $0xc4] sm:$0xf] }
 0x678   :  { %v2925_v22 = vpack.c.bf16 %v9644_v9, %v9644_v9  ;;  %3366 = vmatpush.bf16.msrb.mxu0 %v6179_v6  ;;  %v6130_v6 = vld [vmem:[%s10674_s3 + $0xe0] sm:$0xf] }
 0x67a   :  { %3094 = vmatmul.bf16.vlgmr.msra.gmra.mxu3 %v2925_v22  ;;  %3107 = vmatmul.bf16.vlgmr.msra.gmra.mxu0 %v2925_v22  ;;  %v9660_v13 = vpop.f32.mrf.mxu3 }
 0x67b   :  { %3120 = vmatmul.bf16.vlgmr.msrb.gmra.mxu1 %v2925_v22  ;;  %v6159_v22 = vor.u32 %v7190_v1, %v6158_v7  ;;  %3355 = vmatpush.bf16.msrb.mxu3 %v6151_v51  ;;  %v7182_v7 = vld [vmem:[%s10674_s3 + $0xe8] sm:$0xf0] }
 0x67c   :  { %3367 = vmatpush.bf16.msrb.mxu0 %v6167_v32  ;;  %v6112_v32 = vld [vmem:[%s10674_s3 + $0xcc] sm:$0xf0] }
 0x67d   :  { %3341 = vmatpush.bf16.msra.mxu2 %v6159_v22 }
 0x67f   :  { %3356 = vmatpush.bf16.msrb.mxu3 %v6139_v26 }
 0x681   :  { %3342 = vmatpush.bf16.msra.mxu2 %v6147_v48 }
 0x682   :  { %v9664_v31 = vpop.f32.mrf.mxu3 }
 0x685   :  { %3343 = vmatpush.bf16.msra.mxu2 %v6135_v52 }
 0x68a   :  { %v9668_v63 = vpop.f32.mrf.mxu3 }
 0x692   :  { %v9690_v23 = vpop.f32.mrf.mxu3 }
 0x6f7   :  { %v3108_v59 = vpop.f32.mrf.mxu0 }
 0x6f8   :  { %v3129_v38 = vadd.f32 %v3108_v59, %v2595_v0  ;;  %v9711_v33 = vpop.f32.mrf.mxu1  ;;  %v6155_v59 = vor.u32 %v7188_v55, %v6154_v45 }
 0x6fa   :  { %v6075_v49 = vmul.f32 -1.442695, %v3129_v38  ;;  %v6142_v38 = vld [vmem:[%s10674_s3 + $0xf8] sm:$0xf]  ;;  %3368 = vmatpush.bf16.msrb.mxu0 %v6155_v59 }
 0x6fb   :  { %v6143_v20 = vor.u32 %v7185_v40, %v6142_v38  ;;  %v3168_v38 = vadd.f32 %v9633_v27, %v9711_v33 }
 0x6fc   :  { %7422 = vpow2.f32 %v6075_v49  ;;  %v7181_v49 = vld [vmem:[%s10674_s3 + $0xe0] sm:$0xf0] }
 0x6fd   :  { %v3095_v42 = vpop.f32.mrf.mxu3 }
 0x6fe   :  { %v3128_v5 = vadd.f32 %v3095_v42, %v2566_v4  ;;  %v6124_v4 = vld [vmem:[%s10674_s3 + $0xe4] sm:$0xf0]  ;;  %v6123_v42 = vor.u32 %v7181_v49, %v6122_v50  ;;  %3369 = vmatpush.bf16.msrb.mxu0 %v6143_v20 }
 0x6ff   :  { %v3110_v54 = vpop.f32.mrf.mxu0  ;;  %v6127_v62 = vor.u32 %v7180_v60, %v6124_v4 }
 0x700   :  { %v6074_v47 = vmul.f32 -1.442695, %v3128_v5  ;;  %v3123_v0 = vpop.f32.mrf.mxu1  ;;  %v6131_v5 = vor.u32 %v7182_v7, %v6130_v6  ;;  %3344 = vmatpush.bf16.msra.mxu2 %v6123_v42  ;;  %v6115_v54 = vor.u32 %v7177_v19, %v6112_v32  ;;  %v7224_v19 = vld [vmem:[%s10674_s3 + $0x178] sm:$0xf0] }
 0x701   :  { %3357 = vmatpush.bf16.msrb.mxu3 %v6127_v62  ;;  %v7223_v62 = vld [vmem:[%s10674_s3 + $0x170] sm:$0xf0] }
 0x702   :  { %7424 = vpow2.f32 %v6074_v47  ;;  %v7423_v43 = vpop.eup %7422  ;;  %3370 = vmatpush.bf16.msrb.mxu0 %v6131_v5  ;;  %v6332_v5 = vld [vmem:[%s10674_s3 + $0x170] sm:$0xf] }
 0x703   :  { %v3137_v34 = vadd.f32 1.0, %v7423_v43  ;;  %v2624_v43 = vadd.f32 %v9648_v12, %v9636_v57  ;;  %v6333_v35 = vor.u32 %v7224_v19, %v6332_v5  ;;  %v7212_v5 = vld [vmem:[%s10674_s3 + $0x118] sm:$0xf0] }
 0x704   :  { %3345 = vmatpush.bf16.msra.mxu2 %v6111_v2  ;;  %v7220_v2 = vld [vmem:[%s10674_s3 + $0x158] sm:$0xf0] }
 0x705   :  { %v3097_v61 = vpop.f32.mrf.mxu3  ;;  %3358 = vmatpush.bf16.msrb.mxu3 %v6115_v54  ;;  %v3164_v20 = vand.u32 2147483648, %v3137_v34  ;;  %vm3158_vm13 = vweird.f32 %v3137_v34  ;;  %v3162_v60 = vand.u32 2147483647, %v3137_v34  ;;  %v7219_v54 = vld [vmem:[%s10674_s3 + $0x154] sm:$0xf] }
 0x706   :  { %3371 = vmatpush.bf16.msrb.mxu0 %v6119_v39  ;;  %v6313_v39 = vor.u32 %v7220_v2, %v6312_v11 }
 0x707   :  { %v3165_v7 = vor.u32 1.1754944e-38, %v3164_v20  ;;  %vm3163_vm15 = vcmp.eq.f32.partialorder %v3162_v60, 8.507059e+37  ;;  %v7213_v20 = vld [vmem:[%s10674_s3 + $0x124] sm:$0xf] }
 0x708   :  { %v7425_v1 = vpop.eup %7424 }
 0x709   :  { %v3136_v22 = vadd.f32 1.0, %v7425_v1  ;;  %3616 = vmatpush.bf16.msra.mxu3 %v6333_v35 }
 0x70b   :  { %7426 = vrcp.f32 %v3136_v22  ;;  %v3149_v51 = vand.u32 2147483648, %v3136_v22  ;;  %v3147_v53 = vand.u32 2147483647, %v3136_v22  ;;  %vm3143_vm9 = vweird.f32 %v3136_v22 }
 0x70c   :  { %7428 = vrcp.f32 %v3137_v34 }
 0x70d   :  { %v3150_v18 = vor.u32 1.1754944e-38, %v3149_v51  ;;  %vm3148_vm11 = vcmp.eq.f32.partialorder %v3147_v53, 8.507059e+37  ;;  %v7217_v53 = vld [vmem:[%s10674_s3 + $0x140] sm:$0xf0] }
 0x711   :  { %v7427_v45 = vpop.eup %7426 }
 0x712   :  { %v7429_v55 = vpop.eup %7428  ;;  %v3139_v47 = vmul.f32 %v7427_v45, %v3136_v22  ;;  %vm3144_vm8 = vweird.f32 %v7427_v45 }
 0x713   :  { %v3154_v48 = vmul.f32 %v7429_v55, %v3137_v34  ;;  %vm3145_vm10 = vmor %vm3143_vm9, %vm3144_vm8  ;;  %vm3159_vm12 = vweird.f32 %v7429_v55  ;;  %v6324_v34 = vld [vmem:[%s10674_s3 + $0x168] sm:$0xf] }
 0x714   :  { %v3140_v0 = vsub.f32 1.0, %v3139_v47  ;;  %vm3160_vm14 = vmor %vm3158_vm13, %vm3159_vm12  ;;  %v6325_v44 = vor.u32 %v7223_v62, %v6324_v34  ;;  %v7221_v47 = vld [vmem:[%s10674_s3 + $0x160] sm:$0xf0]  ;;  %v6276_v34 = vld [vmem:[%s10674_s3 + $0x108] sm:$0xf] }
 0x715   :  { %v3155_v56 = vsub.f32 1.0, %v3154_v48  ;;  %v7211_v62 = vld [vmem:[%s10674_s3 + $0x110] sm:$0xf0] }
 0x716   :  { %v3141_v30 = vmul.f32 %v7427_v45, %v3140_v0  ;;  %3590 = vmatpush.bf16.msra.mxu1 %v6325_v44  ;;  %v6278_v44 = vld [vmem:[%s10674_s3 + $0x114] sm:$0xf0]  ;;  %v6277_v11 = vor.u32 %v7211_v62, %v6276_v34 }
 0x717   :  { %v3156_v26 = vmul.f32 %v7429_v55, %v3155_v56 }
 0x718   :  { %v3142_v59 = vadd.f32 %v7427_v45, %v3141_v30  ;;  %v6300_v30 = vld [vmem:[%s10674_s3 + $0x138] sm:$0xf] }
 0x719   :  { %v3157_v49 = vadd.f32 %v7429_v55, %v3156_v26  ;;  %v6301_v56 = vor.u32 %v7217_v53, %v6300_v30  ;;  %v2598_v26 = vadd.f32 %v9652_v3, %v9511_v24  ;;  %v6290_v3 = vld [vmem:[%s10674_s3 + $0x12c] sm:$0xf0] }
 0x71a   :  { %v3146_v40 = vsel %vm3145_vm10, %v7427_v45, %v3142_v59  ;;  %v6314_v45 = vld [vmem:[%s10674_s3 + $0x15c] sm:$0xf0]  ;;  %3591 = vmatpush.bf16.msra.mxu1 %v6313_v39  ;;  %v7216_v59 = vld [vmem:[%s10674_s3 + $0x13c] sm:$0xf]  ;;  %v6264_v39 = vld [vmem:[%s10674_s3 + $0xf0] sm:$0xf] }
 0x71b   :  { %v3151_v52 = vsel %vm3148_vm11, %v3150_v18, %v3146_v40  ;;  %v3161_v4 = vsel %vm3160_vm14, %v7429_v55, %v3157_v49  ;;  %v6320_v55 = vld [vmem:[%s10674_s3 + $0x158] sm:$0xf]  ;;  %v6317_v0 = vor.u32 %v7219_v54, %v6314_v45  ;;  %v6302_v18 = vld [vmem:[%s10674_s3 + $0x144] sm:$0xf0]  ;;  %v7218_v40 = vld [vmem:[%s10674_s3 + $0x148] sm:$0xf0] }
 0x71c   :  { %v3169_v61 = vmul.f32 %v3168_v38, %v3151_v52  ;;  %v3166_v1 = vsel %vm3163_vm15, %v3165_v7, %v3161_v4  ;;  %v6321_v48 = vor.u32 %v7221_v47, %v6320_v55  ;;  %v6308_v38 = vld [vmem:[%s10674_s3 + $0x140] sm:$0xf]  ;;  %v6305_v52 = vor.u32 %v7216_v59, %v6302_v18  ;;  %v7214_v49 = vld [vmem:[%s10674_s3 + $0x128] sm:$0xf0]  ;;  %v7215_v7 = vld [vmem:[%s10674_s3 + $0x130] sm:$0xf0] }
 0x71d   :  { %v7208_v45 = vld [vmem:[%s10674_s3 + $0xf8] sm:$0xf0]  ;;  %v7207_v55 = vld [vmem:[%s10674_s3 + $0xf4] sm:$0xf]  ;;  %v6266_v47 = vld [vmem:[%s10674_s3 + $0xfc] sm:$0xf0] }
 0x71e   :  { %v3170_v50 = vadd.f32 %v3169_v61, %v2624_v43  ;;  %3617 = vmatpush.bf16.msra.mxu3 %v6321_v48  ;;  %v6309_v43 = vor.u32 %v7218_v40, %v6308_v38  ;;  %v2569_v61 = vadd.f32 %v9477_v21, %v9480_v28  ;;  %3592 = vmatpush.bf16.msra.mxu1 %v6301_v56  ;;  %v7209_v48 = vld [vmem:[%s10674_s3 + $0x100] sm:$0xf0]  ;;  %v6252_v38 = vld [vmem:[%s10674_s3 + $0xd8] sm:$0xf] }
 0x71f   :  { %v6265_v30 = vor.u32 %v7208_v45, %v6264_v39  ;;  %v6269_v56 = vor.u32 %v7207_v55, %v6266_v47  ;;  %v7205_v40 = vld [vmem:[%s10674_s3 + $0xe0] sm:$0xf0] }
 0x720   :  { %7430 = vtanh.f32 %v3170_v50  ;;  %v6288_v50 = vld [vmem:[%s10674_s3 + $0x120] sm:$0xf] }
 0x721   :  { %v6289_v21 = vor.u32 %v7214_v49, %v6288_v50  ;;  %v6253_v49 = vor.u32 %v7205_v40, %v6252_v38 }
 0x722   :  { %3618 = vmatpush.bf16.msra.mxu3 %v6309_v43  ;;  %v6254_v43 = vld [vmem:[%s10674_s3 + $0xe4] sm:$0xf0] }
 0x723   :  { %3593 = vmatpush.bf16.msra.mxu1 %v6289_v21 }
 0x726   :  { %v7431_v6 = vpop.eup %7430 }
 0x727   :  { %v3172_v33 = vsub.f32 %v9644_v9, %v7431_v6  ;;  %v7222_v9 = vld [vmem:[%s10674_s3 + $0x16c] sm:$0xf]  ;;  %3594 = vmatpush.bf16.msra.mxu1 %v6277_v11 }
 0x728   :  { %v6329_v32 = vor.u32 %v7222_v9, %v6326_v10  ;;  %v7210_v9 = vld [vmem:[%s10674_s3 + $0x10c] sm:$0xf]  ;;  %v6284_v10 = vld [vmem:[%s10674_s3 + $0x110] sm:$0xf] }
 0x729   :  { %v3173_v42 = vmul.f32 %v3172_v33, %v3166_v1  ;;  %v6281_v2 = vor.u32 %v7210_v9, %v6278_v44  ;;  %v6285_v54 = vor.u32 %v7212_v5, %v6284_v10 }
 0x72a   :  { %3603 = vmatpush.bf16.msrb.mxu2 %v6329_v32 }
 0x72b   :  { %v9828_v22 = vadd.f32 %v7431_v6, %v3173_v42  ;;  %v6296_v6 = vld [vmem:[%s10674_s3 + $0x128] sm:$0xf]  ;;  %v6293_v42 = vor.u32 %v7213_v20, %v6290_v3  ;;  %3595 = vmatpush.bf16.msra.mxu1 %v6265_v30  ;;  %v6240_v20 = vld [vmem:[%s10674_s3 + $0xc0] sm:$0xf] }
 0x72d   :  { %v3177_v12 = vpack.c.bf16 %v9828_v22, %v9828_v22 }
 0x72e   :  { %3604 = vmatpush.bf16.msrb.mxu2 %v6317_v0  ;;  %v6272_v0 = vld [vmem:[%s10674_s3 + $0xf8] sm:$0xf] }
 0x72f   :  { %3346 = vmatmul.bf16.vlgmr.msra.gmra.mxu2 %v3177_v12  ;;  %3359 = vmatmul.bf16.vlgmr.msrb.gmra.mxu3 %v3177_v12  ;;  %v6273_v18 = vor.u32 %v7209_v48, %v6272_v0  ;;  %v2627_v48 = vadd.f32 %v9650_v16, %v9636_v57 }
 0x730   :  { %3372 = vmatmul.bf16.vlgmr.msrb.gmra.mxu0 %v3177_v12  ;;  %v6297_v12 = vor.u32 %v7215_v7, %v6296_v6  ;;  %v7201_v7 = vld [vmem:[%s10674_s3 + $0xc4] sm:$0xf]  ;;  %3596 = vmatpush.bf16.msra.mxu1 %v6253_v49  ;;  %v6454_v49 = vld [vmem:[%s10674_s3 + $0x168] sm:$0xf] }
 0x732   :  { %3605 = vmatpush.bf16.msrb.mxu2 %v6305_v52  ;;  %3619 = vmatpush.bf16.msra.mxu3 %v6297_v12  ;;  %v7204_v52 = vld [vmem:[%s10674_s3 + $0xdc] sm:$0xf]  ;;  %v7203_v12 = vld [vmem:[%s10674_s3 + $0xd0] sm:$0xf0] }
 0x733   :  { %v6257_v3 = vor.u32 %v7204_v52, %v6254_v43 }
 0x736   :  { %3606 = vmatpush.bf16.msrb.mxu2 %v6293_v42  ;;  %3620 = vmatpush.bf16.msra.mxu3 %v6285_v54  ;;  %v6248_v42 = vld [vmem:[%s10674_s3 + $0xc8] sm:$0xf] }
 0x737   :  { %v6249_v9 = vor.u32 %v7203_v12, %v6248_v42  ;;  %v7243_v42 = vld [vmem:[%s10674_s3 + $0x154] sm:$0xf] }
 0x73a   :  { %3607 = vmatpush.bf16.msrb.mxu2 %v6281_v2  ;;  %3621 = vmatpush.bf16.msra.mxu3 %v6273_v18 }
 0x73e   :  { %3608 = vmatpush.bf16.msrb.mxu2 %v6269_v56 }
 0x742   :  { %3609 = vmatpush.bf16.msrb.mxu2 %v6257_v3  ;;  %v7248_v3 = vld [vmem:[%s10674_s3 + $0x178] sm:$0xf0] }
 0x7ad   :  { %v9868_v51 = vpop.f32.mrf.mxu0 }
 0x7ae   :  { %v3420_v55 = vadd.f32 %v9633_v27, %v9868_v51 }
 0x7b2   :  { %v3347_v60 = vpop.f32.mrf.mxu2  ;;  %v3360_v4 = vpop.f32.mrf.mxu3 }
 0x7b3   :  { %v3380_v33 = vadd.f32 %v3347_v60, %v2569_v61  ;;  %v3381_v1 = vadd.f32 %v3360_v4, %v2598_v26  ;;  %v6260_v61 = vld [vmem:[%s10674_s3 + $0xe0] sm:$0xf]  ;;  %v7206_v26 = vld [vmem:[%s10674_s3 + $0xe8] sm:$0xf0] }
 0x7b4   :  { %v7202_v60 = vld [vmem:[%s10674_s3 + $0xc8] sm:$0xf0]  ;;  %v6261_v6 = vor.u32 %v7206_v26, %v6260_v61 }
 0x7b5   :  { %v6204_v19 = vmul.f32 -1.442695, %v3380_v33  ;;  %v6205_v32 = vmul.f32 -1.442695, %v3381_v1  ;;  %v3375_v35 = vpop.f32.mrf.mxu0  ;;  %v6242_v33 = vld [vmem:[%s10674_s3 + $0xcc] sm:$0xf0]  ;;  %v6241_v34 = vor.u32 %v7202_v60, %v6240_v20 }
 0x7b6   :  { %3622 = vmatpush.bf16.msra.mxu3 %v6261_v6  ;;  %v6245_v62 = vor.u32 %v7201_v7, %v6242_v33  ;;  %v7247_v20 = vld [vmem:[%s10674_s3 + $0x170] sm:$0xf0]  ;;  %v6442_v33 = vld [vmem:[%s10674_s3 + $0x150] sm:$0xf] }
 0x7b7   :  { %7432 = vpow2.f32 %v6204_v19  ;;  %3597 = vmatpush.bf16.msra.mxu1 %v6241_v34  ;;  %v6455_v60 = vor.u32 %v7247_v20, %v6454_v49  ;;  %v6444_v34 = vld [vmem:[%s10674_s3 + $0x15c] sm:$0xf0]  ;;  %v6408_v49 = vld [vmem:[%s10674_s3 + $0x114] sm:$0xf0]  ;;  %v6414_v20 = vld [vmem:[%s10674_s3 + $0x110] sm:$0xf] }
 0x7b8   :  { %7434 = vpow2.f32 %v6205_v32  ;;  %3610 = vmatpush.bf16.msrb.mxu2 %v6245_v62  ;;  %v6450_v62 = vld [vmem:[%s10674_s3 + $0x158] sm:$0xf] }
 0x7b9   :  { %3842 = vmatpush.bf16.msra.mxu0 %v6455_v60 }
 0x7ba   :  { %v3349_v53 = vpop.f32.mrf.mxu2  ;;  %v3362_v59 = vpop.f32.mrf.mxu3  ;;  %3623 = vmatpush.bf16.msra.mxu3 %v6249_v9  ;;  %v7245_v9 = vld [vmem:[%s10674_s3 + $0x160] sm:$0xf0] }
 0x7bd   :  { %v7433_v50 = vpop.eup %7432 }
 0x7be   :  { %v7435_v4 = vpop.eup %7434  ;;  %v3388_v21 = vadd.f32 1.0, %v7433_v50 }
 0x7bf   :  { %v3389_v1 = vadd.f32 1.0, %v7435_v4  ;;  %v6456_v4 = vld [vmem:[%s10674_s3 + $0x174] sm:$0xf0] }
 0x7c0   :  { %7436 = vrcp.f32 %v3388_v21  ;;  %v3401_v32 = vand.u32 2147483648, %v3388_v21  ;;  %v3399_v2 = vand.u32 2147483647, %v3388_v21  ;;  %vm3395_vm1 = vweird.f32 %v3388_v21 }
 0x7c1   :  { %7438 = vrcp.f32 %v3389_v1  ;;  %v3416_v18 = vand.u32 2147483648, %v3389_v1  ;;  %vm3410_vm5 = vweird.f32 %v3389_v1  ;;  %v3414_v38 = vand.u32 2147483647, %v3389_v1 }
 0x7c2   :  { %v3402_v39 = vor.u32 1.1754944e-38, %v3401_v32  ;;  %vm3400_vm3 = vcmp.eq.f32.partialorder %v3399_v2, 8.507059e+37  ;;  %v7240_v32 = vld [vmem:[%s10674_s3 + $0x13c] sm:$0xf]  ;;  %v6438_v2 = vld [vmem:[%s10674_s3 + $0x140] sm:$0xf] }
 0x7c3   :  { %v3417_v43 = vor.u32 1.1754944e-38, %v3416_v18  ;;  %vm3415_vm7 = vcmp.eq.f32.partialorder %v3414_v38, 8.507059e+37  ;;  %v7239_v18 = vld [vmem:[%s10674_s3 + $0x130] sm:$0xf0] }
 0x7c6   :  { %v7437_v44 = vpop.eup %7436 }
 0x7c7   :  { %v7439_v10 = vpop.eup %7438  ;;  %v3391_v5 = vmul.f32 %v7437_v44, %v3388_v21  ;;  %vm3396_vm0 = vweird.f32 %v7437_v44  ;;  %v6462_v21 = vld [vmem:[%s10674_s3 + $0x170] sm:$0xf] }
 0x7c8   :  { %v3406_v35 = vmul.f32 %v7439_v10, %v3389_v1  ;;  %vm3397_vm2 = vmor %vm3395_vm1, %vm3396_vm0  ;;  %vm3411_vm4 = vweird.f32 %v7439_v10  ;;  %v6463_v7 = vor.u32 %v7248_v3, %v6462_v21  ;;  %v7244_v1 = vld [vmem:[%s10674_s3 + $0x158] sm:$0xf0] }
 0x7c9   :  { %v3392_v19 = vsub.f32 1.0, %v3391_v5  ;;  %vm3412_vm6 = vmor %vm3410_vm5, %vm3411_vm4  ;;  %v6443_v12 = vor.u32 %v7244_v1, %v6442_v33  ;;  %v6430_v5 = vld [vmem:[%s10674_s3 + $0x138] sm:$0xf]  ;;  %v7232_v33 = vld [vmem:[%s10674_s3 + $0xf8] sm:$0xf0] }
 0x7ca   :  { %v3407_v45 = vsub.f32 1.0, %v3406_v35  ;;  %3868 = vmatpush.bf16.msra.mxu2 %v6463_v7  ;;  %v6394_v7 = vld [vmem:[%s10674_s3 + $0xf0] sm:$0xf]  ;;  %v7231_v1 = vld [vmem:[%s10674_s3 + $0xf4] sm:$0xf] }
 0x7cb   :  { %v3393_v11 = vmul.f32 %v7437_v44, %v3392_v19  ;;  %3843 = vmatpush.bf16.msra.mxu0 %v6443_v12  ;;  %v7241_v19 = vld [vmem:[%s10674_s3 + $0x140] sm:$0xf0]  ;;  %v6395_v12 = vor.u32 %v7232_v33, %v6394_v7 }
 0x7cc   :  { %v3408_v53 = vmul.f32 %v7439_v10, %v3407_v45  ;;  %v6431_v35 = vor.u32 %v7241_v19, %v6430_v5 }
 0x7cd   :  { %v3394_v54 = vadd.f32 %v7437_v44, %v3393_v11  ;;  %v6432_v11 = vld [vmem:[%s10674_s3 + $0x144] sm:$0xf0] }
 0x7ce   :  { %v3409_v56 = vadd.f32 %v7439_v10, %v3408_v53 }
 0x7cf   :  { %v3398_v47 = vsel %vm3397_vm2, %v7437_v44, %v3394_v54  ;;  %v6447_v44 = vor.u32 %v7243_v42, %v6444_v34  ;;  %v7242_v54 = vld [vmem:[%s10674_s3 + $0x148] sm:$0xf0]  ;;  %3844 = vmatpush.bf16.msra.mxu0 %v6431_v35  ;;  %v6396_v34 = vld [vmem:[%s10674_s3 + $0xfc] sm:$0xf0]  ;;  %v7229_v35 = vld [vmem:[%s10674_s3 + $0xe0] sm:$0xf0] }
 0x7d0   :  { %v3403_v0 = vsel %vm3400_vm3, %v3402_v39, %v3398_v47  ;;  %v3413_v40 = vsel %vm3412_vm6, %v7439_v10, %v3409_v56  ;;  %v6451_v10 = vor.u32 %v7245_v9, %v6450_v62  ;;  %v6435_v39 = vor.u32 %v7240_v32, %v6432_v11  ;;  %v6426_v56 = vld [vmem:[%s10674_s3 + $0x128] sm:$0xf]  ;;  %v6402_v62 = vld [vmem:[%s10674_s3 + $0xf8] sm:$0xf] }
 0x7d1   :  { %v3421_v30 = vmul.f32 %v3420_v55, %v3403_v0  ;;  %v3418_v61 = vsel %vm3415_vm7, %v3417_v43, %v3413_v40  ;;  %v6439_v45 = vor.u32 %v7242_v54, %v6438_v2  ;;  %v2571_v55 = vadd.f32 %v9496_v41, %v9480_v28  ;;  %v6418_v0 = vld [vmem:[%s10674_s3 + $0x120] sm:$0xf]  ;;  %v6420_v41 = vld [vmem:[%s10674_s3 + $0x12c] sm:$0xf0]  ;;  %v6406_v43 = vld [vmem:[%s10674_s3 + $0x108] sm:$0xf] }
 0x7d2   :  { %3869 = vmatpush.bf16.msra.mxu2 %v6451_v10  ;;  %v6427_v40 = vor.u32 %v7239_v18, %v6426_v56  ;;  %v6399_v9 = vor.u32 %v7231_v1, %v6396_v34  ;;  %v6382_v32 = vld [vmem:[%s10674_s3 + $0xd8] sm:$0xf]  ;;  %v7228_v2 = vld [vmem:[%s10674_s3 + $0xdc] sm:$0xf]  ;;  %v6384_v54 = vld [vmem:[%s10674_s3 + $0xe4] sm:$0xf0] }
 0x7d3   :  { %v3422_v59 = vadd.f32 %v3421_v30, %v2627_v48  ;;  %v7238_v48 = vld [vmem:[%s10674_s3 + $0x128] sm:$0xf0]  ;;  %v7237_v30 = vld [vmem:[%s10674_s3 + $0x124] sm:$0xf]  ;;  %v6383_v11 = vor.u32 %v7229_v35, %v6382_v32  ;;  %v6372_v56 = vld [vmem:[%s10674_s3 + $0xcc] sm:$0xf0] }
 0x7d4   :  { %v6423_v38 = vor.u32 %v7237_v30, %v6420_v41  ;;  %v6370_v30 = vld [vmem:[%s10674_s3 + $0xc0] sm:$0xf]  ;;  %v6378_v18 = vld [vmem:[%s10674_s3 + $0xc8] sm:$0xf] }
 0x7d5   :  { %7440 = vtanh.f32 %v3422_v59  ;;  %v6419_v59 = vor.u32 %v7238_v48, %v6418_v0  ;;  %v6387_v0 = vor.u32 %v7228_v2, %v6384_v54  ;;  %v6584_v2 = vld [vmem:[%s10674_s3 + $0x168] sm:$0xf]  ;;  %v7271_v54 = vld [vmem:[%s10674_s3 + $0x170] sm:$0xf0] }
 0x7d6   :  { %3870 = vmatpush.bf16.msra.mxu2 %v6439_v45 }
 0x7d7   :  { %3845 = vmatpush.bf16.msra.mxu0 %v6419_v59  ;;  %v7225_v59 = vld [vmem:[%s10674_s3 + $0xc4] sm:$0xf] }
 0x7da   :  { %3871 = vmatpush.bf16.msra.mxu2 %v6427_v40  ;;  %v6375_v40 = vor.u32 %v7225_v59, %v6372_v56  ;;  %v7267_v59 = vld [vmem:[%s10674_s3 + $0x154] sm:$0xf]  ;;  %v6574_v56 = vld [vmem:[%s10674_s3 + $0x15c] sm:$0xf0] }
 0x7db   :  { %v7441_v52 = vpop.eup %7440 }
 0x7dc   :  { %v3424_v51 = vsub.f32 %v9828_v22, %v7441_v52  ;;  %v7246_v22 = vld [vmem:[%s10674_s3 + $0x16c] sm:$0xf] }
 0x7dd   :  { %v6459_v6 = vor.u32 %v7246_v22, %v6456_v4  ;;  %v7236_v22 = vld [vmem:[%s10674_s3 + $0x118] sm:$0xf0] }
 0x7de   :  { %v3425_v26 = vmul.f32 %v3424_v51, %v3418_v61  ;;  %v7235_v51 = vld [vmem:[%s10674_s3 + $0x110] sm:$0xf0]  ;;  %v7234_v61 = vld [vmem:[%s10674_s3 + $0x10c] sm:$0xf]  ;;  %v6415_v21 = vor.u32 %v7236_v22, %v6414_v20 }
 0x7df   :  { %3855 = vmatpush.bf16.msrb.mxu1 %v6459_v6  ;;  %v6411_v4 = vor.u32 %v7234_v61, %v6408_v49 }
 0x7e0   :  { %v9987_v50 = vadd.f32 %v7441_v52, %v3425_v26  ;;  %v2600_v26 = vadd.f32 %v9656_v37, %v9511_v24  ;;  %3872 = vmatpush.bf16.msra.mxu2 %v6415_v21 }
 0x7e2   :  { %v3429_v16 = vpack.c.bf16 %v9987_v50, %v9987_v50 }
 0x7e3   :  { %3856 = vmatpush.bf16.msrb.mxu1 %v6447_v44  ;;  %v7233_v44 = vld [vmem:[%s10674_s3 + $0x100] sm:$0xf0] }
 0x7e4   :  { %3598 = vmatmul.bf16.vlgmr.msra.gmra.mxu1 %v3429_v16  ;;  %3611 = vmatmul.bf16.vlgmr.msrb.gmra.mxu2 %v3429_v16  ;;  %v6403_v5 = vor.u32 %v7233_v44, %v6402_v62 }
 0x7e5   :  { %3624 = vmatmul.bf16.vlgmr.msra.gmra.mxu3 %v3429_v16  ;;  %v6407_v16 = vor.u32 %v7235_v51, %v6406_v43 }
 0x7e6   :  { %3873 = vmatpush.bf16.msra.mxu2 %v6403_v5 }
 0x7e7   :  { %3857 = vmatpush.bf16.msrb.mxu1 %v6435_v39  ;;  %3846 = vmatpush.bf16.msra.mxu0 %v6407_v16  ;;  %v6390_v39 = vld [vmem:[%s10674_s3 + $0xe0] sm:$0xf] }
 0x7eb   :  { %3858 = vmatpush.bf16.msrb.mxu1 %v6423_v38  ;;  %3847 = vmatpush.bf16.msra.mxu0 %v6395_v12 }
 0x7ef   :  { %3859 = vmatpush.bf16.msrb.mxu1 %v6411_v4  ;;  %3848 = vmatpush.bf16.msra.mxu0 %v6383_v11 }
 0x7f3   :  { %3860 = vmatpush.bf16.msrb.mxu1 %v6399_v9 }
 0x7f7   :  { %3861 = vmatpush.bf16.msrb.mxu1 %v6387_v0 }
 0x7fb   :  { %3862 = vmatpush.bf16.msrb.mxu1 %v6375_v40  ;;  %v6577_v40 = vor.u32 %v7267_v59, %v6574_v56  ;;  %v6532_v59 = vld [vmem:[%s10674_s3 + $0xf8] sm:$0xf] }
 0x861   :  { %v3599_v47 = vpop.f32.mrf.mxu1 }
 0x862   :  { %v3632_v53 = vadd.f32 %v3599_v47, %v2571_v55  ;;  %v7230_v55 = vld [vmem:[%s10674_s3 + $0xe8] sm:$0xf0] }
 0x863   :  { %v6391_v48 = vor.u32 %v7230_v55, %v6390_v39  ;;  %v6585_v39 = vor.u32 %v7271_v54, %v6584_v2  ;;  %v6592_v55 = vld [vmem:[%s10674_s3 + $0x170] sm:$0xf]  ;;  %v7260_v2 = vld [vmem:[%s10674_s3 + $0x118] sm:$0xf0] }
 0x864   :  { %v6334_v52 = vmul.f32 -1.442695, %v3632_v53  ;;  %v7226_v53 = vld [vmem:[%s10674_s3 + $0xc8] sm:$0xf0] }
 0x865   :  { %v6371_v41 = vor.u32 %v7226_v53, %v6370_v30  ;;  %3874 = vmatpush.bf16.msra.mxu2 %v6391_v48  ;;  %4094 = vmatpush.bf16.msrb.mxu3 %v6585_v39  ;;  %v6572_v30 = vld [vmem:[%s10674_s3 + $0x150] sm:$0xf]  ;;  %v7268_v53 = vld [vmem:[%s10674_s3 + $0x158] sm:$0xf0] }
 0x866   :  { %7442 = vpow2.f32 %v6334_v52  ;;  %v7227_v52 = vld [vmem:[%s10674_s3 + $0xd0] sm:$0xf0] }
 0x867   :  { %v3612_v60 = vpop.f32.mrf.mxu2  ;;  %v6379_v51 = vor.u32 %v7227_v52, %v6378_v18  ;;  %3849 = vmatpush.bf16.msra.mxu0 %v6371_v41  ;;  %v6573_v41 = vor.u32 %v7268_v53, %v6572_v30  ;;  %v6580_v18 = vld [vmem:[%s10674_s3 + $0x158] sm:$0xf]  ;;  %v6526_v53 = vld [vmem:[%s10674_s3 + $0xfc] sm:$0xf0] }
 0x868   :  { %v3633_v3 = vadd.f32 %v3612_v60, %v2600_v26  ;;  %v10085_v6 = vpop.f32.mrf.mxu3 }
 0x869   :  { %v3601_v37 = vpop.f32.mrf.mxu1  ;;  %3875 = vmatpush.bf16.msra.mxu2 %v6379_v51  ;;  %v3672_v33 = vadd.f32 %v9633_v27, %v10085_v6  ;;  %4095 = vmatpush.bf16.msrb.mxu3 %v6573_v41  ;;  %v7265_v51 = vld [vmem:[%s10674_s3 + $0x140] sm:$0xf0] }
 0x86a   :  { %v6335_v42 = vmul.f32 -1.442695, %v3633_v3  ;;  %v7257_v41 = vld [vmem:[%s10674_s3 + $0x100] sm:$0xf0] }
 0x86c   :  { %v7443_v10 = vpop.eup %7442  ;;  %7444 = vpow2.f32 %v6335_v42  ;;  %v2629_v42 = vadd.f32 %v9654_v29, %v9636_v57 }
 0x86d   :  { %v3640_v19 = vadd.f32 1.0, %v7443_v10 }
 0x86f   :  { %7446 = vrcp.f32 %v3640_v19  ;;  %v3614_v45 = vpop.f32.mrf.mxu2  ;;  %v3653_v49 = vand.u32 2147483648, %v3640_v19  ;;  %v3651_v22 = vand.u32 2147483647, %v3640_v19  ;;  %vm3647_vm9 = vweird.f32 %v3640_v19 }
 0x870   :  { %v3627_v47 = vpop.f32.mrf.mxu3  ;;  %v6586_v45 = vld [vmem:[%s10674_s3 + $0x174] sm:$0xf0] }
 0x871   :  { %v3654_v3 = vor.u32 1.1754944e-38, %v3653_v49  ;;  %vm3652_vm11 = vcmp.eq.f32.partialorder %v3651_v22, 8.507059e+37  ;;  %v7272_v47 = vld [vmem:[%s10674_s3 + $0x178] sm:$0xf0]  ;;  %v6568_v49 = vld [vmem:[%s10674_s3 + $0x140] sm:$0xf] }
 0x872   :  { %v7445_v38 = vpop.eup %7444  ;;  %v6593_v48 = vor.u32 %v7272_v47, %v6592_v55  ;;  %v6524_v47 = vld [vmem:[%s10674_s3 + $0xf0] sm:$0xf] }
 0x873   :  { %v3641_v43 = vadd.f32 1.0, %v7445_v38  ;;  %v7269_v38 = vld [vmem:[%s10674_s3 + $0x160] sm:$0xf0] }
 0x874   :  { %4120 = vmatpush.bf16.msra.mxu1 %v6593_v48  ;;  %v6581_v52 = vor.u32 %v7269_v38, %v6580_v18  ;;  %v7255_v48 = vld [vmem:[%s10674_s3 + $0xf4] sm:$0xf]  ;;  %v6533_v18 = vor.u32 %v7257_v41, %v6532_v59 }
 0x875   :  { %v7447_v61 = vpop.eup %7446  ;;  %7448 = vrcp.f32 %v3641_v43  ;;  %v3668_v44 = vand.u32 2147483648, %v3641_v43  ;;  %vm3662_vm13 = vweird.f32 %v3641_v43  ;;  %v3666_v10 = vand.u32 2147483647, %v3641_v43 }
 0x876   :  { %v3643_v26 = vmul.f32 %v7447_v61, %v3640_v19  ;;  %vm3648_vm8 = vweird.f32 %v7447_v61  ;;  %v6529_v56 = vor.u32 %v7255_v48, %v6526_v53 }
 0x877   :  { %vm3649_vm10 = vmor %vm3647_vm9, %vm3648_vm8  ;;  %v3669_v32 = vor.u32 1.1754944e-38, %v3668_v44  ;;  %vm3667_vm15 = vcmp.eq.f32.partialorder %v3666_v10, 8.507059e+37 }
 0x878   :  { %v3644_v16 = vsub.f32 1.0, %v3643_v26  ;;  %4121 = vmatpush.bf16.msra.mxu1 %v6581_v52 }
 0x87a   :  { %v3645_v20 = vmul.f32 %v7447_v61, %v3644_v16  ;;  %v6562_v16 = vld [vmem:[%s10674_s3 + $0x144] sm:$0xf0] }
 0x87b   :  { %v7449_v60 = vpop.eup %7448 }
 0x87c   :  { %v3658_v4 = vmul.f32 %v7449_v60, %v3641_v43  ;;  %v3646_v21 = vadd.f32 %v7447_v61, %v3645_v20  ;;  %vm3663_vm12 = vweird.f32 %v7449_v60  ;;  %v6560_v43 = vld [vmem:[%s10674_s3 + $0x138] sm:$0xf]  ;;  %v7266_v20 = vld [vmem:[%s10674_s3 + $0x148] sm:$0xf0] }
 0x87d   :  { %vm3664_vm14 = vmor %vm3662_vm13, %vm3663_vm12  ;;  %v6561_v26 = vor.u32 %v7265_v51, %v6560_v43  ;;  %v6512_v43 = vld [vmem:[%s10674_s3 + $0xd8] sm:$0xf]  ;;  %v7253_v51 = vld [vmem:[%s10674_s3 + $0xe0] sm:$0xf0] }
 0x87e   :  { %v3659_v37 = vsub.f32 1.0, %v3658_v4  ;;  %v3650_v7 = vsel %vm3649_vm10, %v7447_v61, %v3646_v21  ;;  %v7264_v61 = vld [vmem:[%s10674_s3 + $0x13c] sm:$0xf]  ;;  %v2574_v4 = vadd.f32 %v9539_v58, %v9480_v28  ;;  %v2603_v21 = vadd.f32 %v9660_v13, %v9511_v24  ;;  %v7261_v58 = vld [vmem:[%s10674_s3 + $0x124] sm:$0xf] }
 0x87f   :  { %v3655_v1 = vsel %vm3652_vm11, %v3654_v3, %v3650_v7  ;;  %v6565_v22 = vor.u32 %v7264_v61, %v6562_v16  ;;  %4096 = vmatpush.bf16.msrb.mxu3 %v6561_v26  ;;  %v6548_v7 = vld [vmem:[%s10674_s3 + $0x120] sm:$0xf]  ;;  %v6513_v26 = vor.u32 %v7253_v51, %v6512_v43  ;;  %v7252_v16 = vld [vmem:[%s10674_s3 + $0xdc] sm:$0xf]  ;;  %v7295_v43 = vld [vmem:[%s10674_s3 + $0x170] sm:$0xf0] }
 0x880   :  { %v3673_v12 = vmul.f32 %v3672_v33, %v3655_v1  ;;  %v3660_v34 = vmul.f32 %v7449_v60, %v3659_v37  ;;  %v7262_v33 = vld [vmem:[%s10674_s3 + $0x128] sm:$0xf0] }
 0x881   :  { %v6549_v13 = vor.u32 %v7262_v33, %v6548_v7  ;;  %v7249_v33 = vld [vmem:[%s10674_s3 + $0xc4] sm:$0xf] }
 0x882   :  { %v3674_v62 = vadd.f32 %v3673_v12, %v2629_v42  ;;  %v3661_v9 = vadd.f32 %v7449_v60, %v3660_v34  ;;  %v6550_v12 = vld [vmem:[%s10674_s3 + $0x12c] sm:$0xf0]  ;;  %v6556_v34 = vld [vmem:[%s10674_s3 + $0x128] sm:$0xf] }
 0x883   :  { %4097 = vmatpush.bf16.msrb.mxu3 %v6549_v13  ;;  %v7251_v13 = vld [vmem:[%s10674_s3 + $0xd0] sm:$0xf0] }
 0x884   :  { %7450 = vtanh.f32 %v3674_v62  ;;  %v3665_v5 = vsel %vm3664_vm14, %v7449_v60, %v3661_v9  ;;  %v6569_v60 = vor.u32 %v7266_v20, %v6568_v49  ;;  %v7263_v62 = vld [vmem:[%s10674_s3 + $0x130] sm:$0xf0]  ;;  %v6553_v9 = vor.u32 %v7261_v58, %v6550_v12  ;;  %v6514_v49 = vld [vmem:[%s10674_s3 + $0xe4] sm:$0xf0]  ;;  %v6520_v20 = vld [vmem:[%s10674_s3 + $0xe0] sm:$0xf] }
 0x885   :  { %v3670_v6 = vsel %vm3667_vm15, %v3669_v32, %v3665_v5  ;;  %v6557_v44 = vor.u32 %v7263_v62, %v6556_v34  ;;  %v7259_v32 = vld [vmem:[%s10674_s3 + $0x110] sm:$0xf0]  ;;  %v6502_v58 = vld [vmem:[%s10674_s3 + $0xcc] sm:$0xf0] }
 0x886   :  { %4122 = vmatpush.bf16.msra.mxu1 %v6569_v60  ;;  %v7254_v60 = vld [vmem:[%s10674_s3 + $0xe8] sm:$0xf0] }
 0x88a   :  { %v7451_v19 = vpop.eup %7450  ;;  %4123 = vmatpush.bf16.msra.mxu1 %v6557_v44 }
 0x88b   :  { %v3676_v27 = vsub.f32 %v9987_v50, %v7451_v19  ;;  %v7270_v50 = vld [vmem:[%s10674_s3 + $0x16c] sm:$0xf] }
 0x88c   :  { %v6589_v0 = vor.u32 %v7270_v50, %v6586_v45 }
 0x88d   :  { %v3677_v35 = vmul.f32 %v3676_v27, %v3670_v6  ;;  %v7258_v27 = vld [vmem:[%s10674_s3 + $0x10c] sm:$0xf] }
 0x88e   :  { %4107 = vmatpush.bf16.msrb.mxu0 %v6589_v0  ;;  %v7256_v0 = vld [vmem:[%s10674_s3 + $0xf8] sm:$0xf0] }
 0x88f   :  { %v10146_v11 = vadd.f32 %v7451_v19, %v3677_v35  ;;  %v6536_v19 = vld [vmem:[%s10674_s3 + $0x108] sm:$0xf]  ;;  %v6538_v35 = vld [vmem:[%s10674_s3 + $0x114] sm:$0xf0]  ;;  %v6525_v30 = vor.u32 %v7256_v0, %v6524_v47 }
 0x890   :  { %v6537_v6 = vor.u32 %v7259_v32, %v6536_v19  ;;  %v6541_v54 = vor.u32 %v7258_v27, %v6538_v35 }
 0x891   :  { %v3681_v29 = vpack.c.bf16 %v10146_v11, %v10146_v11 }
 0x892   :  { %4108 = vmatpush.bf16.msrb.mxu0 %v6577_v40  ;;  %4098 = vmatpush.bf16.msrb.mxu3 %v6537_v6 }
 0x893   :  { %3850 = vmatmul.bf16.vlgmr.msra.gmra.mxu0 %v3681_v29  ;;  %3863 = vmatmul.bf16.vlgmr.msrb.gmra.mxu1 %v3681_v29 }
 0x894   :  { %3876 = vmatmul.bf16.vlgmr.msra.gmra.mxu2 %v3681_v29  ;;  %v6544_v29 = vld [vmem:[%s10674_s3 + $0x110] sm:$0xf] }
 0x895   :  { %v6545_v50 = vor.u32 %v7260_v2, %v6544_v29  ;;  %v10303_v2 = vld [vmem:[%s10677_s5 + $0x1] ss:$0 sm:$0xff] }
 0x896   :  { %4109 = vmatpush.bf16.msrb.mxu0 %v6565_v22  ;;  %4099 = vmatpush.bf16.msrb.mxu3 %v6525_v30 }
 0x897   :  { %4124 = vmatpush.bf16.msra.mxu1 %v6545_v50 }
 0x89a   :  { %4110 = vmatpush.bf16.msrb.mxu0 %v6553_v9  ;;  %4100 = vmatpush.bf16.msrb.mxu3 %v6513_v26  ;;  %v6722_v26 = vld [vmem:[%s10674_s3 + $0x170] sm:$0xf] }
 0x89b   :  { %4125 = vmatpush.bf16.msra.mxu1 %v6533_v18 }
 0x89e   :  { %4111 = vmatpush.bf16.msrb.mxu0 %v6541_v54 }
 0x8a2   :  { %4112 = vmatpush.bf16.msrb.mxu0 %v6529_v56 }
 0x910   :  { %v3851_v3 = vpop.f32.mrf.mxu0  ;;  %v3864_v37 = vpop.f32.mrf.mxu1 }
 0x911   :  { %v3884_v1 = vadd.f32 %v3851_v3, %v2574_v4  ;;  %v3885_v42 = vadd.f32 %v3864_v37, %v2603_v21  ;;  %v6517_v4 = vor.u32 %v7252_v16, %v6514_v49  ;;  %v6521_v21 = vor.u32 %v7254_v60, %v6520_v20  ;;  %v6500_v3 = vld [vmem:[%s10674_s3 + $0xc0] sm:$0xf]  ;;  %v7250_v37 = vld [vmem:[%s10674_s3 + $0xc8] sm:$0xf0]  ;;  %v7296_v16 = vld [vmem:[%s10674_s3 + $0x178] sm:$0xf0] }
 0x912   :  { %v6501_v7 = vor.u32 %v7250_v37, %v6500_v3  ;;  %v6723_v20 = vor.u32 %v7296_v16, %v6722_v26  ;;  %v7292_v60 = vld [vmem:[%s10674_s3 + $0x158] sm:$0xf0]  ;;  %v6704_v37 = vld [vmem:[%s10674_s3 + $0x15c] sm:$0xf0]  ;;  %v7279_v16 = vld [vmem:[%s10674_s3 + $0xf4] sm:$0xf] }
 0x913   :  { %v6464_v10 = vmul.f32 -1.442695, %v3884_v1  ;;  %v6465_v5 = vmul.f32 -1.442695, %v3885_v42  ;;  %4113 = vmatpush.bf16.msrb.mxu0 %v6517_v4  ;;  %4126 = vmatpush.bf16.msra.mxu1 %v6521_v21  ;;  %v6505_v1 = vor.u32 %v7249_v33, %v6502_v58  ;;  %v6508_v42 = vld [vmem:[%s10674_s3 + $0xc8] sm:$0xf]  ;;  %v2605_v21 = vadd.f32 %v9664_v31, %v9511_v24 }
 0x914   :  { %4101 = vmatpush.bf16.msrb.mxu3 %v6501_v7  ;;  %v6509_v12 = vor.u32 %v7251_v13, %v6508_v42  ;;  %v7291_v4 = vld [vmem:[%s10674_s3 + $0x154] sm:$0xf]  ;;  %v6710_v7 = vld [vmem:[%s10674_s3 + $0x158] sm:$0xf]  ;;  %v7293_v33 = vld [vmem:[%s10674_s3 + $0x160] sm:$0xf0] }
 0x915   :  { %7452 = vpow2.f32 %v6464_v10  ;;  %v6711_v42 = vor.u32 %v7293_v33, %v6710_v7  ;;  %v6690_v31 = vld [vmem:[%s10674_s3 + $0x138] sm:$0xf]  ;;  %v7277_v7 = vld [vmem:[%s10674_s3 + $0xe0] sm:$0xf0] }
 0x916   :  { %7454 = vpow2.f32 %v6465_v5 }
 0x917   :  { %v10244_v39 = vpop.f32.mrf.mxu2  ;;  %4114 = vmatpush.bf16.msrb.mxu0 %v6505_v1  ;;  %4127 = vmatpush.bf16.msra.mxu1 %v6509_v12  ;;  %v6707_v1 = vor.u32 %v7291_v4, %v6704_v37  ;;  %v6642_v37 = vld [vmem:[%s10674_s3 + $0xd8] sm:$0xf] }
 0x918   :  { %v3853_v45 = vpop.f32.mrf.mxu0  ;;  %v3866_v55 = vpop.f32.mrf.mxu1  ;;  %v3924_v54 = vadd.f32 %v10303_v2, %v10244_v39 }
 0x919   :  { %v2632_v45 = vadd.f32 %v9658_v15, %v9636_v57 }
 0x91b   :  { %v7453_v38 = vpop.eup %7452  ;;  %4372 = vmatpush.bf16.msra.mxu0 %v6723_v20  ;;  %v6662_v20 = vld [vmem:[%s10674_s3 + $0xf8] sm:$0xf] }
 0x91c   :  { %v7455_v40 = vpop.eup %7454  ;;  %v3892_v52 = vadd.f32 1.0, %v7453_v38 }
 0x91d   :  { %v3893_v61 = vadd.f32 1.0, %v7455_v40 }
 0x91e   :  { %7456 = vrcp.f32 %v3892_v52  ;;  %v3905_v5 = vand.u32 2147483648, %v3892_v52  ;;  %v3903_v32 = vand.u32 2147483647, %v3892_v52  ;;  %vm3899_vm1 = vweird.f32 %v3892_v52 }
 0x91f   :  { %7458 = vrcp.f32 %v3893_v61  ;;  %v3879_v22 = vpop.f32.mrf.mxu2  ;;  %v3920_v30 = vand.u32 2147483648, %v3893_v61  ;;  %vm3914_vm5 = vweird.f32 %v3893_v61  ;;  %v3918_v53 = vand.u32 2147483647, %v3893_v61  ;;  %4373 = vmatpush.bf16.msra.mxu0 %v6711_v42  ;;  %v6650_v42 = vld [vmem:[%s10674_s3 + $0xe0] sm:$0xf] }
 0x920   :  { %v3906_v35 = vor.u32 1.1754944e-38, %v3905_v5  ;;  %vm3904_vm3 = vcmp.eq.f32.partialorder %v3903_v32, 8.507059e+37  ;;  %v6702_v22 = vld [vmem:[%s10674_s3 + $0x150] sm:$0xf]  ;;  %v7290_v32 = vld [vmem:[%s10674_s3 + $0x148] sm:$0xf0] }
 0x921   :  { %v3921_v56 = vor.u32 1.1754944e-38, %v3920_v30  ;;  %vm3919_vm7 = vcmp.eq.f32.partialorder %v3918_v53, 8.507059e+37  ;;  %v6703_v3 = vor.u32 %v7292_v60, %v6702_v22  ;;  %v6666_v53 = vld [vmem:[%s10674_s3 + $0x108] sm:$0xf]  ;;  %v7281_v22 = vld [vmem:[%s10674_s3 + $0x100] sm:$0xf0] }
 0x922   :  { %v6663_v33 = vor.u32 %v7281_v22, %v6662_v20 }
 0x924   :  { %v7457_v34 = vpop.eup %7456 }
 0x925   :  { %v7459_v62 = vpop.eup %7458  ;;  %v3895_v9 = vmul.f32 %v7457_v34, %v3892_v52  ;;  %vm3900_vm0 = vweird.f32 %v7457_v34  ;;  %v6714_v52 = vld [vmem:[%s10674_s3 + $0x168] sm:$0xf] }
 0x926   :  { %v3910_v10 = vmul.f32 %v7459_v62, %v3893_v61  ;;  %vm3901_vm2 = vmor %vm3899_vm1, %vm3900_vm0  ;;  %vm3915_vm4 = vweird.f32 %v7459_v62  ;;  %v6715_v51 = vor.u32 %v7295_v43, %v6714_v52  ;;  %v6716_v61 = vld [vmem:[%s10674_s3 + $0x174] sm:$0xf0] }
 0x927   :  { %v3896_v44 = vsub.f32 1.0, %v3895_v9  ;;  %vm3916_vm6 = vmor %vm3914_vm5, %vm3915_vm4 }
 0x928   :  { %v3911_v6 = vsub.f32 1.0, %v3910_v10  ;;  %4346 = vmatpush.bf16.msrb.mxu2 %v6715_v51  ;;  %v6698_v10 = vld [vmem:[%s10674_s3 + $0x140] sm:$0xf]  ;;  %v6654_v51 = vld [vmem:[%s10674_s3 + $0xf0] sm:$0xf] }
 0x929   :  { %v3897_v19 = vmul.f32 %v7457_v34, %v3896_v44  ;;  %v6692_v44 = vld [vmem:[%s10674_s3 + $0x144] sm:$0xf0] }
 0x92a   :  { %v3912_v47 = vmul.f32 %v7459_v62, %v3911_v6  ;;  %v6699_v6 = vor.u32 %v7290_v32, %v6698_v10  ;;  %v6630_v10 = vld [vmem:[%s10674_s3 + $0xc0] sm:$0xf]  ;;  %v7273_v32 = vld [vmem:[%s10674_s3 + $0xc4] sm:$0xf] }
 0x92b   :  { %v3898_v27 = vadd.f32 %v7457_v34, %v3897_v19 }
 0x92c   :  { %v3913_v48 = vadd.f32 %v7459_v62, %v3912_v47  ;;  %4347 = vmatpush.bf16.msrb.mxu2 %v6703_v3  ;;  %v7287_v47 = vld [vmem:[%s10674_s3 + $0x130] sm:$0xf0]  ;;  %4374 = vmatpush.bf16.msra.mxu0 %v6699_v6  ;;  %v6638_v6 = vld [vmem:[%s10674_s3 + $0xc8] sm:$0xf] }
 0x92d   :  { %v3902_v29 = vsel %vm3901_vm2, %v7457_v34, %v3898_v27  ;;  %v7289_v34 = vld [vmem:[%s10674_s3 + $0x140] sm:$0xf0]  ;;  %v2576_v27 = vadd.f32 %v9556_v17, %v9480_v28  ;;  %v6680_v17 = vld [vmem:[%s10674_s3 + $0x12c] sm:$0xf0] }
 0x92e   :  { %v3907_v50 = vsel %vm3904_vm3, %v3906_v35, %v3902_v29  ;;  %v3917_v59 = vsel %vm3916_vm6, %v7459_v62, %v3913_v48  ;;  %v7288_v62 = vld [vmem:[%s10674_s3 + $0x13c] sm:$0xf]  ;;  %v6691_v9 = vor.u32 %v7289_v34, %v6690_v31  ;;  %v6678_v35 = vld [vmem:[%s10674_s3 + $0x120] sm:$0xf]  ;;  %v7286_v29 = vld [vmem:[%s10674_s3 + $0x128] sm:$0xf0] }
 0x92f   :  { %v3925_v55 = vmul.f32 %v3924_v54, %v3907_v50  ;;  %v3922_v18 = vsel %vm3919_vm7, %v3921_v56, %v3917_v59  ;;  %v6695_v19 = vor.u32 %v7288_v62, %v6692_v44  ;;  %v7285_v54 = vld [vmem:[%s10674_s3 + $0x124] sm:$0xf]  ;;  %v7283_v59 = vld [vmem:[%s10674_s3 + $0x110] sm:$0xf0]  ;;  %v6643_v62 = vor.u32 %v7277_v7, %v6642_v37  ;;  %v6846_v7 = vld [vmem:[%s10674_s3 + $0x174] sm:$0xf0] }
 0x930   :  { %4348 = vmatpush.bf16.msrb.mxu2 %v6691_v9  ;;  %v6683_v48 = vor.u32 %v7285_v54, %v6680_v17  ;;  %v6667_v43 = vor.u32 %v7283_v59, %v6666_v53 }
 0x931   :  { %v3926_v0 = vadd.f32 %v3925_v55, %v2632_v45  ;;  %v6679_v45 = vor.u32 %v7286_v29, %v6678_v35  ;;  %v6686_v55 = vld [vmem:[%s10674_s3 + $0x128] sm:$0xf]  ;;  %v7275_v35 = vld [vmem:[%s10674_s3 + $0xd0] sm:$0xf0] }
 0x932   :  { %v6687_v30 = vor.u32 %v7287_v47, %v6686_v55 }
 0x933   :  { %7460 = vtanh.f32 %v3926_v0 }
 0x934   :  { %4349 = vmatpush.bf16.msrb.mxu2 %v6679_v45  ;;  %4375 = vmatpush.bf16.msra.mxu0 %v6687_v30 }
 0x938   :  { %4350 = vmatpush.bf16.msrb.mxu2 %v6667_v43 }
 0x939   :  { %v7461_v41 = vpop.eup %7460 }
 0x93a   :  { %v3928_v39 = vsub.f32 %v10146_v11, %v7461_v41  ;;  %v7294_v11 = vld [vmem:[%s10674_s3 + $0x16c] sm:$0xf] }
 0x93b   :  { %v6719_v49 = vor.u32 %v7294_v11, %v6716_v61  ;;  %v7280_v61 = vld [vmem:[%s10674_s3 + $0xf8] sm:$0xf0] }
 0x93c   :  { %v3929_v38 = vmul.f32 %v3928_v39, %v3922_v18  ;;  %v6668_v39 = vld [vmem:[%s10674_s3 + $0x114] sm:$0xf0]  ;;  %v6674_v18 = vld [vmem:[%s10674_s3 + $0x110] sm:$0xf]  ;;  %v6655_v60 = vor.u32 %v7280_v61, %v6654_v51 }
 0x93d   :  { %4359 = vmatpush.bf16.msra.mxu3 %v6719_v49  ;;  %v6656_v49 = vld [vmem:[%s10674_s3 + $0xfc] sm:$0xf0] }
 0x93e   :  { %v10310_v40 = vadd.f32 %v7461_v41, %v3929_v38  ;;  %v7282_v41 = vld [vmem:[%s10674_s3 + $0x10c] sm:$0xf]  ;;  %v7284_v38 = vld [vmem:[%s10674_s3 + $0x118] sm:$0xf0]  ;;  %v6659_v3 = vor.u32 %v7279_v16, %v6656_v49  ;;  %4351 = vmatpush.bf16.msrb.mxu2 %v6655_v60 }
 0x93f   :  { %v6671_v11 = vor.u32 %v7282_v41, %v6668_v39  ;;  %v6675_v26 = vor.u32 %v7284_v38, %v6674_v18 }
 0x940   :  { %v3933_v15 = vpack.c.bf16 %v10310_v40, %v10310_v40 }
 0x941   :  { %4360 = vmatpush.bf16.msra.mxu3 %v6707_v1  ;;  %4376 = vmatpush.bf16.msra.mxu0 %v6675_v26  ;;  %v6644_v1 = vld [vmem:[%s10674_s3 + $0xe4] sm:$0xf0] }
 0x942   :  { %4102 = vmatmul.bf16.vlgmr.msrb.gmra.mxu3 %v3933_v15  ;;  %4115 = vmatmul.bf16.vlgmr.msrb.gmra.mxu0 %v3933_v15 }
 0x943   :  { %4128 = vmatmul.bf16.vlgmr.msra.gmra.mxu1 %v3933_v15  ;;  %4352 = vmatpush.bf16.msrb.mxu2 %v6643_v62 }
 0x945   :  { %4361 = vmatpush.bf16.msra.mxu3 %v6695_v19  ;;  %4377 = vmatpush.bf16.msra.mxu0 %v6663_v33  ;;  %v6852_v33 = vld [vmem:[%s10674_s3 + $0x170] sm:$0xf] }
 0x949   :  { %4362 = vmatpush.bf16.msra.mxu3 %v6683_v48 }
 0x94d   :  { %4363 = vmatpush.bf16.msra.mxu3 %v6671_v11 }
 0x951   :  { %4364 = vmatpush.bf16.msra.mxu3 %v6659_v3  ;;  %v7319_v3 = vld [vmem:[%s10674_s3 + $0x170] sm:$0xf0] }
 0x9bf   :  { %v4116_v58 = vpop.f32.mrf.mxu0 }
 0x9c0   :  { %v4137_v13 = vadd.f32 %v4116_v58, %v2605_v21  ;;  %v10352_v12 = vpop.f32.mrf.mxu1  ;;  %v7276_v58 = vld [vmem:[%s10674_s3 + $0xdc] sm:$0xf] }
 0x9c1   :  { %v6647_v44 = vor.u32 %v7276_v58, %v6644_v1  ;;  %v4176_v39 = vadd.f32 %v10303_v2, %v10352_v12  ;;  %v7320_v58 = vld [vmem:[%s10674_s3 + $0x178] sm:$0xf0] }
 0x9c2   :  { %v6595_v5 = vmul.f32 -1.442695, %v4137_v13  ;;  %v7278_v13 = vld [vmem:[%s10674_s3 + $0xe8] sm:$0xf0] }
 0x9c3   :  { %v6651_v19 = vor.u32 %v7278_v13, %v6650_v42  ;;  %4365 = vmatpush.bf16.msra.mxu3 %v6647_v44  ;;  %v6853_v42 = vor.u32 %v7320_v58, %v6852_v33  ;;  %v6832_v13 = vld [vmem:[%s10674_s3 + $0x150] sm:$0xf]  ;;  %v6840_v44 = vld [vmem:[%s10674_s3 + $0x158] sm:$0xf]  ;;  %v7305_v33 = vld [vmem:[%s10674_s3 + $0x100] sm:$0xf0] }
 0x9c4   :  { %7462 = vpow2.f32 %v6595_v5  ;;  %v7274_v5 = vld [vmem:[%s10674_s3 + $0xc8] sm:$0xf0] }
 0x9c5   :  { %v4103_v50 = vpop.f32.mrf.mxu3  ;;  %v6631_v29 = vor.u32 %v7274_v5, %v6630_v10  ;;  %4378 = vmatpush.bf16.msra.mxu0 %v6651_v19  ;;  %v7317_v10 = vld [vmem:[%s10674_s3 + $0x160] sm:$0xf0] }
 0x9c6   :  { %v4136_v0 = vadd.f32 %v4103_v50, %v2576_v27  ;;  %v6632_v27 = vld [vmem:[%s10674_s3 + $0xcc] sm:$0xf0]  ;;  %v6639_v50 = vor.u32 %v7275_v35, %v6638_v6  ;;  %v6841_v19 = vor.u32 %v7317_v10, %v6840_v44  ;;  %v7313_v6 = vld [vmem:[%s10674_s3 + $0x140] sm:$0xf0]  ;;  %v7312_v35 = vld [vmem:[%s10674_s3 + $0x13c] sm:$0xf] }
 0x9c7   :  { %v4118_v56 = vpop.f32.mrf.mxu0  ;;  %v6635_v54 = vor.u32 %v7273_v32, %v6632_v27  ;;  %4353 = vmatpush.bf16.msrb.mxu2 %v6631_v29  ;;  %v6820_v27 = vld [vmem:[%s10674_s3 + $0x138] sm:$0xf]  ;;  %v6774_v44 = vld [vmem:[%s10674_s3 + $0xe4] sm:$0xf0]  ;;  %v6780_v10 = vld [vmem:[%s10674_s3 + $0xe0] sm:$0xf] }
 0x9c8   :  { %v6594_v15 = vmul.f32 -1.442695, %v4136_v0  ;;  %v4131_v52 = vpop.f32.mrf.mxu1  ;;  %v6821_v29 = vor.u32 %v7313_v6, %v6820_v27  ;;  %v6760_v6 = vld [vmem:[%s10674_s3 + $0xc0] sm:$0xf] }
 0x9c9   :  { %4366 = vmatpush.bf16.msra.mxu3 %v6635_v54  ;;  %4379 = vmatpush.bf16.msra.mxu0 %v6639_v50  ;;  %v6822_v54 = vld [vmem:[%s10674_s3 + $0x144] sm:$0xf0]  ;;  %v6828_v50 = vld [vmem:[%s10674_s3 + $0x140] sm:$0xf] }
 0x9ca   :  { %7464 = vpow2.f32 %v6594_v15  ;;  %v7463_v4 = vpop.eup %7462  ;;  %v2634_v15 = vadd.f32 %v9662_v25, %v9636_v57 }
 0x9cb   :  { %v4145_v34 = vadd.f32 1.0, %v7463_v4 }
 0x9cd   :  { %v4105_v21 = vpop.f32.mrf.mxu3  ;;  %v4172_v61 = vand.u32 2147483648, %v4145_v34  ;;  %vm4166_vm13 = vweird.f32 %v4145_v34  ;;  %v4170_v26 = vand.u32 2147483647, %v4145_v34  ;;  %4624 = vmatpush.bf16.msrb.mxu3 %v6853_v42 }
 0x9ce   :  { %v6844_v21 = vld [vmem:[%s10674_s3 + $0x168] sm:$0xf] }
 0x9cf   :  { %v4173_v20 = vor.u32 1.1754944e-38, %v4172_v61  ;;  %vm4171_vm15 = vcmp.eq.f32.partialorder %v4170_v26, 8.507059e+37  ;;  %v6845_v37 = vor.u32 %v7319_v3, %v6844_v21  ;;  %v6798_v61 = vld [vmem:[%s10674_s3 + $0x114] sm:$0xf0]  ;;  %v6804_v26 = vld [vmem:[%s10674_s3 + $0x110] sm:$0xf] }
 0x9d0   :  { %v7465_v31 = vpop.eup %7464  ;;  %v6784_v21 = vld [vmem:[%s10674_s3 + $0xf0] sm:$0xf]  ;;  %v7304_v3 = vld [vmem:[%s10674_s3 + $0xf8] sm:$0xf0] }
 0x9d1   :  { %v4144_v9 = vadd.f32 1.0, %v7465_v31  ;;  %4598 = vmatpush.bf16.msrb.mxu1 %v6845_v37  ;;  %v7316_v31 = vld [vmem:[%s10674_s3 + $0x158] sm:$0xf0]  ;;  %4625 = vmatpush.bf16.msrb.mxu3 %v6841_v19  ;;  %v6786_v37 = vld [vmem:[%s10674_s3 + $0xfc] sm:$0xf0]  ;;  %v6785_v58 = vor.u32 %v7304_v3, %v6784_v21 }
 0x9d2   :  { %v6833_v62 = vor.u32 %v7316_v31, %v6832_v13 }
 0x9d3   :  { %7466 = vrcp.f32 %v4144_v9  ;;  %v4157_v48 = vand.u32 2147483648, %v4144_v9  ;;  %v4155_v53 = vand.u32 2147483647, %v4144_v9  ;;  %vm4151_vm9 = vweird.f32 %v4144_v9 }
 0x9d4   :  { %7468 = vrcp.f32 %v4145_v34 }
 0x9d5   :  { %v4158_v56 = vor.u32 1.1754944e-38, %v4157_v48  ;;  %vm4156_vm11 = vcmp.eq.f32.partialorder %v4155_v53, 8.507059e+37  ;;  %4599 = vmatpush.bf16.msrb.mxu1 %v6833_v62  ;;  %v6808_v48 = vld [vmem:[%s10674_s3 + $0x120] sm:$0xf]  ;;  %v7309_v53 = vld [vmem:[%s10674_s3 + $0x124] sm:$0xf] }
 0x9d6   :  { %v7301_v62 = vld [vmem:[%s10674_s3 + $0xe0] sm:$0xf0] }
 0x9d9   :  { %v7467_v45 = vpop.eup %7466  ;;  %4600 = vmatpush.bf16.msrb.mxu1 %v6821_v29 }
 0x9da   :  { %v7469_v17 = vpop.eup %7468  ;;  %v4147_v55 = vmul.f32 %v7467_v45, %v4144_v9  ;;  %vm4152_vm8 = vweird.f32 %v7467_v45  ;;  %v6834_v9 = vld [vmem:[%s10674_s3 + $0x15c] sm:$0xf0] }
 0x9db   :  { %v4162_v0 = vmul.f32 %v7469_v17, %v4145_v34  ;;  %vm4153_vm10 = vmor %vm4151_vm9, %vm4152_vm8  ;;  %vm4167_vm12 = vweird.f32 %v7469_v17  ;;  %v7315_v34 = vld [vmem:[%s10674_s3 + $0x154] sm:$0xf] }
 0x9dc   :  { %v4148_v47 = vsub.f32 1.0, %v4147_v55  ;;  %vm4168_vm14 = vmor %vm4166_vm13, %vm4167_vm12  ;;  %v6837_v5 = vor.u32 %v7315_v34, %v6834_v9  ;;  %v6772_v34 = vld [vmem:[%s10674_s3 + $0xd8] sm:$0xf]  ;;  %v7300_v9 = vld [vmem:[%s10674_s3 + $0xdc] sm:$0xf] }
 0x9dd   :  { %v4163_v41 = vsub.f32 1.0, %v4162_v0  ;;  %v2608_v0 = vadd.f32 %v9668_v63, %v9511_v24  ;;  %v6810_v63 = vld [vmem:[%s10674_s3 + $0x12c] sm:$0xf0]  ;;  %v6773_v27 = vor.u32 %v7301_v62, %v6772_v34 }
 0x9de   :  { %v4149_v30 = vmul.f32 %v7467_v45, %v4148_v47  ;;  %v2579_v47 = vadd.f32 %v9603_v8, %v9480_v28 }
 0x9df   :  { %v4164_v43 = vmul.f32 %v7469_v17, %v4163_v41 }
 0x9e0   :  { %v4150_v59 = vadd.f32 %v7467_v45, %v4149_v30  ;;  %v7310_v30 = vld [vmem:[%s10674_s3 + $0x128] sm:$0xf0] }
 0x9e1   :  { %v4165_v51 = vadd.f32 %v7469_v17, %v4164_v43  ;;  %v6809_v8 = vor.u32 %v7310_v30, %v6808_v48  ;;  %v6796_v43 = vld [vmem:[%s10674_s3 + $0x108] sm:$0xf]  ;;  %v7299_v48 = vld [vmem:[%s10674_s3 + $0xd0] sm:$0xf0] }
 0x9e2   :  { %v4154_v18 = vsel %vm4153_vm10, %v7467_v45, %v4150_v59  ;;  %v7314_v45 = vld [vmem:[%s10674_s3 + $0x148] sm:$0xf0] }
 0x9e3   :  { %v4159_v38 = vsel %vm4156_vm11, %v4158_v56, %v4154_v18  ;;  %v4169_v16 = vsel %vm4168_vm14, %v7469_v17, %v4165_v51  ;;  %v6825_v17 = vor.u32 %v7312_v35, %v6822_v54  ;;  %v6829_v55 = vor.u32 %v7314_v45, %v6828_v50  ;;  %v6816_v56 = vld [vmem:[%s10674_s3 + $0x128] sm:$0xf]  ;;  %v7306_v51 = vld [vmem:[%s10674_s3 + $0x10c] sm:$0xf]  ;;  %4601 = vmatpush.bf16.msrb.mxu1 %v6809_v8 }
 0x9e4   :  { %v4177_v52 = vmul.f32 %v4176_v39, %v4159_v38  ;;  %v4174_v22 = vsel %vm4171_vm15, %v4173_v20, %v4169_v16  ;;  %v7311_v39 = vld [vmem:[%s10674_s3 + $0x130] sm:$0xf0]  ;;  %v7308_v16 = vld [vmem:[%s10674_s3 + $0x118] sm:$0xf0]  ;;  %v7298_v35 = vld [vmem:[%s10674_s3 + $0xc8] sm:$0xf0]  ;;  %v6777_v50 = vor.u32 %v7300_v9, %v6774_v44 }
 0x9e5   :  { %4626 = vmatpush.bf16.msrb.mxu3 %v6829_v55  ;;  %v6762_v55 = vld [vmem:[%s10674_s3 + $0xcc] sm:$0xf0]  ;;  %v6761_v30 = vor.u32 %v7298_v35, %v6760_v6 }
 0x9e6   :  { %v4178_v11 = vadd.f32 %v4177_v52, %v2634_v15  ;;  %v6813_v15 = vor.u32 %v7309_v53, %v6810_v63  ;;  %v6817_v52 = vor.u32 %v7311_v39, %v6816_v56  ;;  %v7327_v35 = vld [vmem:[%s10681_s6 + $0x30] sm:$0xff] }
 0x9e8   :  { %7470 = vtanh.f32 %v4178_v11  ;;  %v7307_v11 = vld [vmem:[%s10674_s3 + $0x110] sm:$0xf0] }
 0x9e9   :  { %4627 = vmatpush.bf16.msrb.mxu3 %v6817_v52 }
 0x9ee   :  { %v7471_v49 = vpop.eup %7470 }
 0x9ef   :  { %v4180_v12 = vsub.f32 %v10310_v40, %v7471_v49  ;;  %v7318_v40 = vld [vmem:[%s10674_s3 + $0x16c] sm:$0xf] }
 0x9f0   :  { %v6849_v1 = vor.u32 %v7318_v40, %v6846_v7  ;;  %v7303_v40 = vld [vmem:[%s10674_s3 + $0xf4] sm:$0xf]  ;;  %v6792_v7 = vld [vmem:[%s10674_s3 + $0xf8] sm:$0xf] }
 0x9f1   :  { %v4181_v60 = vmul.f32 %v4180_v12, %v4174_v22  ;;  %v6797_v22 = vor.u32 %v7307_v11, %v6796_v43  ;;  %v6789_v13 = vor.u32 %v7303_v40, %v6786_v37  ;;  %v6793_v31 = vor.u32 %v7305_v33, %v6792_v7 }
 0x9f2   :  { %4611 = vmatpush.bf16.msra.mxu2 %v6849_v1 }
 0x9f3   :  { %v10469_v4 = vadd.f32 %v7471_v49, %v4181_v60  ;;  %v6801_v60 = vor.u32 %v7306_v51, %v6798_v61  ;;  %4602 = vmatpush.bf16.msrb.mxu1 %v6797_v22 }
 0x9f5   :  { %v4185_v25 = vpack.c.bf16 %v10469_v4, %v10469_v4 }
 0x9f6   :  { %4612 = vmatpush.bf16.msra.mxu2 %v6837_v5  ;;  %v7302_v5 = vld [vmem:[%s10674_s3 + $0xe8] sm:$0xf0] }
 0x9f7   :  { %4354 = vmatmul.bf16.vlgmr.msrb.gmra.mxu2 %v4185_v25  ;;  %4367 = vmatmul.bf16.vlgmr.msra.gmra.mxu3 %v4185_v25  ;;  %v6781_v45 = vor.u32 %v7302_v5, %v6780_v10 }
 0x9f8   :  { %4380 = vmatmul.bf16.vlgmr.msra.gmra.mxu0 %v4185_v25  ;;  %v6805_v25 = vor.u32 %v7308_v16, %v6804_v26  ;;  %4603 = vmatpush.bf16.msrb.mxu1 %v6785_v58  ;;  %v2637_v16 = vadd.f32 %v9666_v14, %v9636_v57  ;;  %v2581_v58 = vadd.f32 %v9624_v46, %v9480_v28  ;;  %v7328_v28 = vld [vmem:[%s10681_s6 + $0x38] sm:$0xff] }
 0x9f9   :  { %4784 = vmatpush.bf16.msrb.mxu0 %v7328_v28 }
 0x9fa   :  { %4613 = vmatpush.bf16.msra.mxu2 %v6825_v17  ;;  %4628 = vmatpush.bf16.msrb.mxu3 %v6805_v25  ;;  %v7297_v17 = vld [vmem:[%s10674_s3 + $0xc4] sm:$0xf] }
 0x9fb   :  { %v6765_v53 = vor.u32 %v7297_v17, %v6762_v55  ;;  %v7326_v17 = vld [vmem:[%s10681_s6 + $0x28] sm:$0xff] }
 0x9fc   :  { %4604 = vmatpush.bf16.msrb.mxu1 %v6773_v27 }
 0x9fd   :  { %4785 = vmatpush.bf16.msrb.mxu0 %v7327_v35 }
 0x9fe   :  { %4614 = vmatpush.bf16.msra.mxu2 %v6813_v15  ;;  %4629 = vmatpush.bf16.msrb.mxu3 %v6793_v31  ;;  %v2610_v31 = vadd.f32 %v9690_v23, %v9511_v24 }
 0xa00   :  { %4605 = vmatpush.bf16.msrb.mxu1 %v6761_v30 }
 0xa01   :  { %4786 = vmatpush.bf16.msrb.mxu0 %v7326_v17 }
 0xa02   :  { %4615 = vmatpush.bf16.msra.mxu2 %v6801_v60  ;;  %4630 = vmatpush.bf16.msrb.mxu3 %v6781_v45 }
 0xa06   :  { %4616 = vmatpush.bf16.msra.mxu2 %v6789_v13 }
 0xa0a   :  { %4617 = vmatpush.bf16.msra.mxu2 %v6777_v50 }
 0xa0e   :  { %4618 = vmatpush.bf16.msra.mxu2 %v6765_v53 }
 0xa75   :  { %v10509_v32 = vpop.f32.mrf.mxu0 }
 0xa76   :  { %v4428_v51 = vadd.f32 %v10303_v2, %v10509_v32 }
 0xa7a   :  { %v4355_v59 = vpop.f32.mrf.mxu2  ;;  %v4368_v41 = vpop.f32.mrf.mxu3 }
 0xa7b   :  { %v4388_v18 = vadd.f32 %v4355_v59, %v2579_v47  ;;  %v4389_v38 = vadd.f32 %v4368_v41, %v2608_v0  ;;  %v6768_v0 = vld [vmem:[%s10674_s3 + $0xc8] sm:$0xf] }
 0xa7c   :  { %v6769_v59 = vor.u32 %v7299_v48, %v6768_v0  ;;  %v7325_v48 = vld [vmem:[%s10681_s6 + $0x20] sm:$0xff] }
 0xa7d   :  { %v6724_v49 = vmul.f32 -1.442695, %v4388_v18  ;;  %v6725_v20 = vmul.f32 -1.442695, %v4389_v38  ;;  %v4383_v12 = vpop.f32.mrf.mxu0  ;;  %4787 = vmatpush.bf16.msrb.mxu0 %v7325_v48 }
 0xa7e   :  { %4631 = vmatpush.bf16.msrb.mxu3 %v6769_v59 }
 0xa7f   :  { %7472 = vpow2.f32 %v6724_v49 }
 0xa80   :  { %7474 = vpow2.f32 %v6725_v20 }
 0xa82   :  { %v4357_v1 = vpop.f32.mrf.mxu2  ;;  %v4370_v42 = vpop.f32.mrf.mxu3 }
 0xa85   :  { %v7473_v19 = vpop.eup %7472 }
 0xa86   :  { %v7475_v29 = vpop.eup %7474  ;;  %v4396_v54 = vadd.f32 1.0, %v7473_v19 }
 0xa87   :  { %v4397_v47 = vadd.f32 1.0, %v7475_v29 }
 0xa88   :  { %7476 = vrcp.f32 %v4396_v54  ;;  %v4409_v39 = vand.u32 2147483648, %v4396_v54  ;;  %v4407_v15 = vand.u32 2147483647, %v4396_v54  ;;  %vm4403_vm1 = vweird.f32 %v4396_v54 }
 0xa89   :  { %7478 = vrcp.f32 %v4397_v47  ;;  %v4424_v60 = vand.u32 2147483648, %v4397_v47  ;;  %vm4418_vm5 = vweird.f32 %v4397_v47  ;;  %v4422_v25 = vand.u32 2147483647, %v4397_v47 }
 0xa8a   :  { %v4410_v43 = vor.u32 1.1754944e-38, %v4409_v39  ;;  %vm4408_vm3 = vcmp.eq.f32.partialorder %v4407_v15, 8.507059e+37  ;;  %v7324_v39 = vld [vmem:[%s10681_s6 + $0x18] sm:$0xff]  ;;  %v7323_v15 = vld [vmem:[%s10681_s6 + $0x10] sm:$0xff] }
 0xa8b   :  { %v4425_v40 = vor.u32 1.1754944e-38, %v4424_v60  ;;  %vm4423_vm7 = vcmp.eq.f32.partialorder %v4422_v25, 8.507059e+37  ;;  %4788 = vmatpush.bf16.msrb.mxu0 %v7324_v39 }
 0xa8e   :  { %v7477_v41 = vpop.eup %7476 }
 0xa8f   :  { %v7479_v8 = vpop.eup %7478  ;;  %v4399_v63 = vmul.f32 %v7477_v41, %v4396_v54  ;;  %vm4404_vm0 = vweird.f32 %v7477_v41  ;;  %4789 = vmatpush.bf16.msrb.mxu0 %v7323_v15 }
 0xa90   :  { %v4414_v18 = vmul.f32 %v7479_v8, %v4397_v47  ;;  %vm4405_vm2 = vmor %vm4403_vm1, %vm4404_vm0  ;;  %vm4419_vm4 = vweird.f32 %v7479_v8 }
 0xa91   :  { %v4400_v56 = vsub.f32 1.0, %v4399_v63  ;;  %vm4420_vm6 = vmor %vm4418_vm5, %vm4419_vm4  ;;  %v2639_v63 = vadd.f32 %v9670_v36, %v9636_v57  ;;  %v7322_v57 = vld [vmem:[%s10681_s6 + $0x8] sm:$0xff] }
 0xa92   :  { %v4415_v11 = vsub.f32 1.0, %v4414_v18 }
 0xa93   :  { %v4401_v38 = vmul.f32 %v7477_v41, %v4400_v56  ;;  %4790 = vmatpush.bf16.msrb.mxu0 %v7322_v57 }
 0xa94   :  { %v4416_v20 = vmul.f32 %v7479_v8, %v4415_v11 }
 0xa95   :  { %v4402_v52 = vadd.f32 %v7477_v41, %v4401_v38 }
 0xa96   :  { %v4417_v22 = vadd.f32 %v7479_v8, %v4416_v20 }
 0xa97   :  { %v4406_v61 = vsel %vm4405_vm2, %v7477_v41, %v4402_v52 }
 0xa98   :  { %v4411_v26 = vsel %vm4408_vm3, %v4410_v43, %v4406_v61  ;;  %v4421_v21 = vsel %vm4420_vm6, %v7479_v8, %v4417_v22 }
 0xa99   :  { %v4429_v49 = vmul.f32 %v4428_v51, %v4411_v26  ;;  %v4426_v37 = vsel %vm4423_vm7, %v4425_v40, %v4421_v21 }
 0xa9b   :  { %v4430_v12 = vadd.f32 %v4429_v49, %v2637_v16  ;;  %v7321_v16 = vld [vmem:[%s10681_s6] sm:$0xff] }
 0xa9c   :  { %4791 = vmatpush.bf16.msrb.mxu0 %v7321_v16 }
 0xa9d   :  { %7480 = vtanh.f32 %v4430_v12 }
 0xaa3   :  { %v7481_v3 = vpop.eup %7480 }
 0xaa4   :  { %v4432_v32 = vsub.f32 %v10469_v4, %v7481_v3 }
 0xaa6   :  { %v4433_v7 = vmul.f32 %v4432_v32, %v4426_v37 }
 0xaa8   :  { %v10628_v33 = vadd.f32 %v7481_v3, %v4433_v7 }
 0xaaa   :  { %v4437_v14 = vpack.c.bf16 %v10628_v33, %v10628_v33 }
 0xaac   :  { %4606 = vmatmul.bf16.vlgmr.msrb.gmra.mxu1 %v4437_v14  ;;  %4619 = vmatmul.bf16.vlgmr.msra.gmra.mxu2 %v4437_v14 }
 0xaad   :  { %4632 = vmatmul.bf16.vlgmr.msrb.gmra.mxu3 %v4437_v14 }
 0xb29   :  { %v4607_v1 = vpop.f32.mrf.mxu1 }
 0xb2a   :  { %v4640_v42 = vadd.f32 %v4607_v1, %v2581_v58 }
 0xb2c   :  { %v6854_v13 = vmul.f32 -1.442695, %v4640_v42  ;;  %v7331_v42 = vld [vmem:[%s10680_s7] ss:$0 sm:$0xff] }
 0xb2e   :  { %7482 = vpow2.f32 %v6854_v13 }
 0xb2f   :  { %v4620_v4 = vpop.f32.mrf.mxu2 }
 0xb30   :  { %v4641_v34 = vadd.f32 %v4620_v4, %v2610_v31  ;;  %v4633_v62 = vpop.f32.mrf.mxu3 }
 0xb31   :  { %v4609_v9 = vpop.f32.mrf.mxu1  ;;  %v4680_v41 = vadd.f32 %v10303_v2, %v4633_v62 }
 0xb32   :  { %v6855_v44 = vmul.f32 -1.442695, %v4641_v34 }
 0xb34   :  { %v7483_v10 = vpop.eup %7482  ;;  %7484 = vpow2.f32 %v6855_v44 }
 0xb35   :  { %v4648_v5 = vadd.f32 1.0, %v7483_v10 }
 0xb37   :  { %7486 = vrcp.f32 %v4648_v5  ;;  %v4622_v19 = vpop.f32.mrf.mxu2  ;;  %v4661_v54 = vand.u32 2147483648, %v4648_v5  ;;  %v4659_v45 = vand.u32 2147483647, %v4648_v5  ;;  %vm4655_vm9 = vweird.f32 %v4648_v5 }
 0xb38   :  { %v4635_v27 = vpop.f32.mrf.mxu3 }
 0xb39   :  { %v4662_v30 = vor.u32 1.1754944e-38, %v4661_v54  ;;  %vm4660_vm11 = vcmp.eq.f32.partialorder %v4659_v45, 8.507059e+37 }
 0xb3a   :  { %v7485_v6 = vpop.eup %7484 }
 0xb3b   :  { %v4649_v46 = vadd.f32 1.0, %v7485_v6 }
 0xb3d   :  { %v7487_v24 = vpop.eup %7486  ;;  %7488 = vrcp.f32 %v4649_v46  ;;  %v4676_v2 = vand.u32 2147483648, %v4649_v46  ;;  %vm4670_vm13 = vweird.f32 %v4649_v46  ;;  %v4674_v43 = vand.u32 2147483647, %v4649_v46 }
 0xb3e   :  { %v4651_v23 = vmul.f32 %v7487_v24, %v4648_v5  ;;  %vm4656_vm8 = vweird.f32 %v7487_v24 }
 0xb3f   :  { %vm4657_vm10 = vmor %vm4655_vm9, %vm4656_vm8  ;;  %v4677_v51 = vor.u32 1.1754944e-38, %v4676_v2  ;;  %vm4675_vm15 = vcmp.eq.f32.partialorder %v4674_v43, 8.507059e+37 }
 0xb40   :  { %v4652_v29 = vsub.f32 1.0, %v4651_v23 }
 0xb42   :  { %v4653_v50 = vmul.f32 %v7487_v24, %v4652_v29 }
 0xb43   :  { %v7489_v55 = vpop.eup %7488 }
 0xb44   :  { %v4666_v47 = vmul.f32 %v7489_v55, %v4649_v46  ;;  %v4654_v0 = vadd.f32 %v7487_v24, %v4653_v50  ;;  %vm4671_vm12 = vweird.f32 %v7489_v55 }
 0xb45   :  { %vm4672_vm14 = vmor %vm4670_vm13, %vm4671_vm12 }
 0xb46   :  { %v4667_v53 = vsub.f32 1.0, %v4666_v47  ;;  %v4658_v59 = vsel %vm4657_vm10, %v7487_v24, %v4654_v0 }
 0xb47   :  { %v4663_v8 = vsel %vm4660_vm11, %v4662_v30, %v4658_v59 }
 0xb48   :  { %v4681_v56 = vmul.f32 %v4680_v41, %v4663_v8  ;;  %v4668_v18 = vmul.f32 %v7489_v55, %v4667_v53 }
 0xb4a   :  { %v4682_v38 = vadd.f32 %v4681_v56, %v2639_v63  ;;  %v4669_v52 = vadd.f32 %v7489_v55, %v4668_v18 }
 0xb4c   :  { %7490 = vtanh.f32 %v4682_v38  ;;  %v4673_v36 = vsel %vm4672_vm14, %v7489_v55, %v4669_v52 }
 0xb4d   :  { %v4678_v26 = vsel %vm4675_vm15, %v4677_v51, %v4673_v36 }
 0xb52   :  { %v7491_v11 = vpop.eup %7490 }
 0xb53   :  { %v4684_v61 = vsub.f32 %v10628_v33, %v7491_v11 }
 0xb55   :  { %v4685_v49 = vmul.f32 %v4684_v61, %v4678_v26 }
 0xb57   :  { %v4686_v20 = vadd.f32 %v7491_v11, %v4685_v49 }
 0xb59   :  { %4694 = vst [vmem:[%s10679_s9 + $0x8] sm:$0xff] %v4686_v20  ;;  %v6856_v12 = vmul.f32 -1.442695, %v4686_v20 }
 0xb5b   :  { %7492 = vpow2.f32 %v6856_v12 }
 0xb61   :  { %v7493_v22 = vpop.eup %7492 }
 0xb62   :  { %v4699_v60 = vadd.f32 1.0, %v7493_v22 }
 0xb64   :  { %7494 = vrcp.f32 %v4699_v60  ;;  %v4711_v40 = vand.u32 2147483648, %v4699_v60  ;;  %v4709_v37 = vand.u32 2147483647, %v4699_v60  ;;  %vm4705_vm1 = vweird.f32 %v4699_v60 }
 0xb66   :  { %v4712_v33 = vor.u32 1.1754944e-38, %v4711_v40  ;;  %vm4710_vm3 = vcmp.eq.f32.partialorder %v4709_v37, 8.507059e+37 }
 0xb6a   :  { %v7495_v25 = vpop.eup %7494 }
 0xb6b   :  { %v4701_v21 = vmul.f32 %v7495_v25, %v4699_v60  ;;  %vm4706_vm0 = vweird.f32 %v7495_v25 }
 0xb6c   :  { %vm4707_vm2 = vmor %vm4705_vm1, %vm4706_vm0 }
 0xb6d   :  { %v4702_v3 = vsub.f32 1.0, %v4701_v21 }
 0xb6f   :  { %v4703_v32 = vmul.f32 %v7495_v25, %v4702_v3 }
 0xb71   :  { %v4704_v7 = vadd.f32 %v7495_v25, %v4703_v32 }
 0xb73   :  { %v4708_v14 = vsel %vm4707_vm2, %v7495_v25, %v4704_v7 }
 0xb74   :  { %v4713_v58 = vsel %vm4710_vm3, %v4712_v33, %v4708_v14 }
 0xb75   :  { %v4715_v1 = vpack.c.bf16 %v4713_v58, %v4713_v58 }
 0xb77   :  { %4792 = vmatmul.bf16.vlgmr.msrb.gmra.mxu0 %v4715_v1 }
 0xbf4   :  { %v4793_v13 = vpop.f32.mrf.mxu0 }
 0xbf5   :  { %v4794_v31 = vadd.f32 %v7331_v42, %v4793_v13 }
 0xbf7   :  { %4797 = vst [vmem:[%s10682_s8] sm:$0xff] %v4794_v31 }
 0xbfc   :  { %v4795_v4 = vpop.f32.mrf.mxu0 }

</bundles_post_ra>
